<compile_context>
chip_gen: v7x
topology: tpu7x:2x2x1
jax: 0.10.0
libtpu: 0.0.40
codegen_flags: <defaults>
</compile_context>

<pallas_src>
import numpy as np
import jax
import jax.numpy as jnp
from jax.experimental import pallas as pl
from jax.experimental.pallas import tpu as pltpu

VMEM = pltpu.MemorySpace.VMEM
SMEM = pltpu.MemorySpace.SMEM

LANE = 128  # pad hidden widths to full lane width


# ------------------------- parameter initialization (natural layout) -----------------


def init_linear(key, fan_in, fan_out):
    kw, kb = jax.random.split(key)
    bound = 1.0 / np.sqrt(fan_in)
    W = jax.random.uniform(kw, (fan_in, fan_out), jnp.float32, -bound, bound)
    b = jax.random.uniform(kb, (1, fan_out), jnp.float32, -bound, bound)
    return W, b


def init_mlp(key, in_c, out_c, n_layers, hidden):
    keys = jax.random.split(key, n_layers)
    dims = [in_c] + [hidden] * (n_layers - 1) + [out_c]
    return [init_linear(keys[i], dims[i], dims[i + 1]) for i in range(n_layers)]


def init_pivae_params(key, x_dim, z_dim, u_dim,
                      encoder_n_layers=4, encoder_hidden_size=64,
                      decoder_n_blocks=2, decoder_layers_per_gin_block=3,
                      decoder_layers_per_gin=3, decoder_hidden_size=32):
    keys = jax.random.split(key, 6)
    dec_hidden = max(decoder_hidden_size, x_dim // 4)
    params = {}
    # discrete label prior: embedding tables (nn.Embedding default init ~ N(0,1))
    params["embed_mean"] = jax.random.normal(keys[0], (u_dim, z_dim), jnp.float32)
    params["embed_log_var"] = jax.random.normal(keys[1], (u_dim, z_dim), jnp.float32)
    # encoder (Tanh hidden activations): two MLPs x -> z
    params["enc_mu"] = init_mlp(keys[2], x_dim, z_dim, encoder_n_layers, encoder_hidden_size)
    params["enc_sig"] = init_mlp(keys[3], x_dim, z_dim, encoder_n_layers, encoder_hidden_size)
    # decoder lift MLP (ReLU hidden activations, 3 layers) z -> x_dim - z_dim
    params["dec_lift"] = init_mlp(keys[4], z_dim, x_dim - z_dim, 3, dec_hidden)
    # decoder GIN blocks: [Permutation, GINBlock] x decoder_n_blocks
    split = x_dim // 2
    perms, gin_blocks = [], []
    bkeys = jax.random.split(keys[5], decoder_n_blocks)
    for b in range(decoder_n_blocks):
        pk, mk = jax.random.split(bkeys[b])
        perms.append(jax.random.permutation(pk, x_dim))
        lkeys = jax.random.split(mk, decoder_layers_per_gin_block)
        gin_blocks.append([
            init_mlp(lkeys[l], split, 2 * split - 1, decoder_layers_per_gin, dec_hidden)
            for l in range(decoder_layers_per_gin_block)
        ])
    params["perms"] = perms
    params["gin_blocks"] = gin_blocks
    # TODO(synk): obs_noise_model (nn.Linear(1, x_dim, bias=False)) is only used for the
    # gaussian observation model; unused here since obs_model="poisson".
    return params


# --------------------------- packing into the fused/kernel layout --------------------


def _pad_mlp_hidden(mlp, hp):
    """Zero-pad hidden widths of [(W [in,out], b [1,out]), ...] to `hp` lanes.
    Padded units are exact zeros through ReLU/Tanh, so the computed function is
    unchanged; the final layer's output width is untouched."""
    n = len(mlp)
    out = []
    for i, (W, b) in enumerate(mlp):
        W = np.asarray(W, np.float32)
        b = np.asarray(b, np.float32)
        if i > 0 and W.shape[0] < hp:   # match previous layer's padded fan-out
            W = np.concatenate([W, np.zeros((hp - W.shape[0], W.shape[1]), np.float32)], 0)
        if i < n - 1 and W.shape[1] < hp:  # pad hidden fan-out
            pad = hp - W.shape[1]
            W = np.concatenate([W, np.zeros((W.shape[0], pad), np.float32)], 1)
            b = np.concatenate([b, np.zeros((1, pad), np.float32)], 1)
        out.append((W, b))
    return out


def pack_pivae_params(params, x_dim, z_dim, lane=LANE):
    """Repack natural-layout params into the flat, lane-friendly layout consumed by
    the fused kernel. Pure host-side preprocessing (numpy), done once."""
    f32 = np.float32
    S = x_dim // 2
    Z = z_dim

    def A(t):
        return np.asarray(t, f32)

    packed = []

    # ---- encoder: fuse mu/sig MLPs into one 2H-wide hidden chain --------------------
    mu, sg = params["enc_mu"], params["enc_sig"]
    n_enc_hidden = len(mu) - 1
    W0 = np.concatenate([A(mu[0][0]), A(sg[0][0])], axis=1)       # [x_dim, 2H]
    b0 = np.concatenate([A(mu[0][1]), A(sg[0][1])], axis=1)
    packed += [W0[:S, :], W0[S:, :], b0]                          # split rows for (xa, xb)
    for i in range(1, n_enc_hidden):                              # block-diagonal middles
        Wm, bm = A(mu[i][0]), A(mu[i][1])
        Ws, bs = A(sg[i][0]), A(sg[i][1])
        W = np.zeros((Wm.shape[0] + Ws.shape[0], Wm.shape[1] + Ws.shape[1]), f32)
        W[:Wm.shape[0], :Wm.shape[1]] = Wm
        W[Wm.shape[0]:, Wm.shape[1]:] = Ws
        packed += [W, np.concatenate([bm, bs], axis=1)]
    Wm, bm = A(mu[-1][0]), A(mu[-1][1])                           # two small heads
    Ws, bs = A(sg[-1][0]), A(sg[-1][1])
    packed += [np.concatenate([Wm, np.zeros_like(Ws)], axis=0), bm,
               np.concatenate([np.zeros_like(Wm), Ws], axis=0), bs]

    # ---- decoder lift MLP: pad hidden to `lane`, split output into (a-tail, b) ------
    lift = _pad_mlp_hidden(params["dec_lift"], lane)
    n_lift_hidden = len(lift) - 1
    for W, b in lift[:-1]:
        packed += [W, b]
    WL, bL = lift[-1]                                             # [Hp, x_dim - z_dim]
    e_z = np.eye(Z, S, dtype=f32)                                 # embeds z into first Z cols
    Wa = np.concatenate([np.zeros((WL.shape[0], Z), f32), WL[:, :S - Z]], axis=1)
    ba = np.concatenate([np.zeros((1, Z), f32), bL[:, :S - Z]], axis=1)
    Wb = WL[:, S - Z:]
    bb = bL[:, S - Z:]
    packed += [e_z, Wa, ba, Wb, bb]

    # ---- permutations -> 4 stacked [S,S] block matrices ------------------------------
    Paa, Pab, Pba, Pbb = [], [], [], []
    for perm in params["perms"]:
        p = np.asarray(perm)
        P = np.zeros((x_dim, x_dim), f32)
        P[p, np.arange(x_dim)] = 1.0                              # (x @ P)[:, j] = x[:, p[j]]
        Paa.append(P[:S, :S]); Pab.append(P[:S, S:])
        Pba.append(P[S:, :S]); Pbb.append(P[S:, S:])
    packed += [np.stack(Paa), np.stack(Pab), np.stack(Pba), np.stack(Pbb)]

    # ---- GIN layers: pad hidden, split st head into (s-padded, t), stack all layers --
    all_layers = [lp for blk in params["gin_blocks"] for lp in blk]
    n_gin_hidden = len(all_layers[0]) - 1
    gw_h = [[] for _ in range(n_gin_hidden)]
    gb_h = [[] for _ in range(n_gin_hidden)]
    gWs, gbs, gWt, gbt = [], [], [], []
    for lp in all_layers:
        lp_p = _pad_mlp_hidden(lp, lane)
        for h in range(n_gin_hidden):
            gw_h[h].append(lp_p[h][0]); gb_h[h].append(lp_p[h][1])
        WL, bL = lp_p[-1]                                          # [Hp, 2S - 1]
        ns = S - 1
        gWs.append(np.concatenate([WL[:, :ns], np.zeros((WL.shape[0], 1), f32)], axis=1))
        gbs.append(np.concatenate([bL[:, :ns], np.zeros((1, 1), f32)], axis=1))
        gWt.append(WL[:, ns:]); gbt.append(bL[:, ns:])
    for h in range(n_gin_hidden):
        packed += [np.stack(gw_h[h]), np.stack(gb_h[h])]
    mask_last = np.zeros((1, S), f32)
    mask_last[0, -1] = 1.0
    packed += [mask_last, np.stack(gWs), np.stack(gbs), np.stack(gWt), np.stack(gbt)]

    cfg = dict(x_dim=x_dim, z_dim=Z, split=S,
               n_enc_hidden=n_enc_hidden,
               n_lift_hidden=n_lift_hidden,
               n_gin_hidden=n_gin_hidden,
               n_blocks=len(params["gin_blocks"]),
               layers_per_block=len(params["gin_blocks"][0]))
    return [jnp.asarray(w) for w in packed], cfg


# --------------------------------- fused Pallas kernel -------------------------------


def _make_fused_kernel(cfg, n_total):
    n_enc_hidden = cfg["n_enc_hidden"]
    n_lift_hidden = cfg["n_lift_hidden"]
    n_gin_hidden = cfg["n_gin_hidden"]
    n_blocks = cfg["n_blocks"]
    lpb = cfg["layers_per_block"]
    inv_n = 1.0 / float(n_total)

    def dot(a, b):
        return jnp.dot(a, b, preferred_element_type=jnp.float32)

    def softplus(x):
        return jnp.maximum(x, 0.0) + jnp.log1p(jnp.exp(-jnp.abs(x)))

    def kernel(*refs):
        it = iter(refs)
        nx = lambda: next(it)

        # ---- data tiles -----------------------------------------------------------
        xa_ref = nx(); xb_ref = nx(); lm_ref = nx(); llv_ref = nx(); eps_ref = nx()
        # ---- encoder (fused mu|sig) -------------------------------------------------
        ew0a = nx(); ew0b = nx(); eb0 = nx()
        enc_rest = [(nx(), nx()) for _ in range(n_enc_hidden - 1)]
        wmu = nx(); bmu = nx(); wsig = nx(); bsig = nx()
        # ---- decoder lift -----------------------------------------------------------
        lift_hs = [(nx(), nx()) for _ in range(n_lift_hidden)]
        e_z = nx(); wa = nx(); ba = nx(); wb = nx(); bb = nx()
        # ---- permutations + GIN layers (stacked over layers) ------------------------
        paa = nx(); pab = nx(); pba = nx(); pbb = nx()
        gin_hs = [(nx(), nx()) for _ in range(n_gin_hidden)]
        mask_ref = nx(); gws = nx(); gbs = nx(); gwt = nx(); gbt = nx()
        # ---- output + scratch -------------------------------------------------------
        out_ref = nx()
        acc_ref = nx()

        step = pl.program_id(0)
        xa = xa_ref[...]
        xb = xb_ref[...]

        # ================= encoder: fused mu/sig MLP chain (Tanh hidden) =============
        h = jnp.tanh(dot(xa, ew0a[...]) + dot(xb, ew0b[...]) + eb0[...])
        for w_ref, b_ref in enc_rest:
            h = jnp.tanh(dot(h, w_ref[...]) + b_ref[...])
        z_mean = dot(h, wmu[...]) + bmu[...]
        z_log_var = dot(h, wsig[...]) + bsig[...]

        # ============ posterior product-of-Gaussians + reparameterized sample ========
        lm = lm_ref[...]
        llv = llv_ref[...]
        d = z_log_var - llv
        ed = jnp.exp(-jnp.abs(d))                       # single EUP exp, in (0, 1]
        r = pl.reciprocal(1.0 + ed, approx=True)        # ~ sigmoid(|d|)
        sig = jnp.where(d >= 0.0, r, 1.0 - r)           # sigmoid(d), saturates cleanly
        post_mean = z_mean * (1.0 - sig) + lm * sig
        post_log_var = jnp.minimum(z_log_var, llv) - jnp.log1p(ed)   # stable logaddexp form
        z = post_mean + jnp.exp(0.5 * post_log_var) * eps_ref[...]

        # ====================== decoder lift MLP (ReLU hidden) =======================
        hl = z
        for w_ref, b_ref in lift_hs:
            hl = jnp.maximum(dot(hl, w_ref[...]) + b_ref[...], 0.0)
        # a = [z | y[:, :S-Z]],  b = y[:, S-Z:]   (built by matmuls, no lane slicing)
        a = dot(z, e_z[...]) + dot(hl, wa[...]) + ba[...]
        b = dot(hl, wb[...]) + bb[...]

        # ================= GIN blocks (permutations folded in as matmuls) ============
        mask = mask_ref[...]
        li = 0
        for blk in range(n_blocks):
            na = dot(a, paa[blk]) + dot(b, pba[blk])
            nb = dot(a, pab[blk]) + dot(b, pbb[blk])
            a, b = na, nb
            for _ in range(lpb):
                hg = a
                for w_ref, b_ref in gin_hs:                      # inner MLP (ReLU)
                    hg = jnp.maximum(dot(hg, w_ref[li]) + b_ref[li], 0.0)
                s = 0.1 * jnp.tanh(dot(hg, gws[li]) + gbs[li])   # last column is exactly 0
                t = dot(hg, gwt[li]) + gbt[li]
                s = s - mask * jnp.sum(s, axis=-1, keepdims=True)  # volume-preserving
                a, b = b * jnp.exp(s) + t, a                     # coupling + swap (= concat)
                li += 1

        # ==================== softplus (Poisson) + loss (NLL + KL) ===================
        fr_a = jnp.clip(softplus(a), 1e-7, 1e7)
        fr_b = jnp.clip(softplus(b), 1e-7, 1e7)
        obs = (jnp.sum(fr_a - xa * jnp.log(fr_a), axis=-1, keepdims=True)
               + jnp.sum(fr_b - xb * jnp.log(fr_b), axis=-1, keepdims=True))
        diff2 = (post_mean - lm) ** 2
        kl = (1.0 + post_log_var - llv
              - diff2 * jnp.exp(-llv) - jnp.exp(post_log_var - llv))
        kl = 0.5 * jnp.sum(kl, axis=-1, keepdims=True)
        tile_sum = jnp.sum(obs - kl)

        @pl.when(step == 0)
        def _init():
            acc_ref[0] = 0.0

        acc_ref[0] += tile_sum

        @pl.when(step == pl.num_programs(0) - 1)
        def _finalize():
            out_ref[0, 0] = acc_ref[0] * inv_n

    return kernel


def _pick_batch_tile(n, max_tile=512):
    if n <= max_tile:
        return n
    if n % 8 != 0:
        return n
    tb = max_tile - (max_tile % 8)
    while n % tb != 0:
        tb -= 8
    return tb


def pivae_fused_loss(packed, cfg, xa, xb, lam_mean, lam_log_var, eps):
    n = xa.shape[0]
    tb = _pick_batch_tile(n)
    grid = (n // tb,)
    kernel = _make_fused_kernel(cfg, n)

    def batch_spec(width):
        return pl.BlockSpec((tb, width), lambda i: (i, 0), memory_space=VMEM)

    def const_spec(arr):
        nd = arr.ndim
        return pl.BlockSpec(arr.shape, lambda i, _nd=nd: (0,) * _nd, memory_space=VMEM)

    data = (xa, xb, lam_mean, lam_log_var, eps)
    in_specs = [batch_spec(a.shape[1]) for a in data] + [const_spec(w) for w in packed]

    out = pl.pallas_call(
        kernel,
        grid=grid,
        out_shape=jax.ShapeDtypeStruct((1, 1), jnp.float32),
        in_specs=in_specs,
        out_specs=pl.BlockSpec((1, 1), lambda i: (0, 0), memory_space=SMEM),
        scratch_shapes=[pltpu.SMEM((1,), jnp.float32)],
        compiler_params=pltpu.CompilerParams(
            # the scalar loss is accumulated across batch tiles -> reduction axis.
            # (for multi-TensorCore chips one would emit per-tile partial sums instead
            #  and mark this axis "parallel".)
            dimension_semantics=("arbitrary",),
        ),
    )(*data, *packed)
    return out[0, 0]


def pivae_forward(packed, cfg, embed_mean, embed_log_var, x, u, eps):
    # discrete label prior: embedding lookup (plain-JAX indexing glue)
    lam_mean = embed_mean[u]
    lam_log_var = embed_log_var[u]
    # x is split into halves outside the kernel so the fused kernel never does a
    # lane-misaligned slice; the GIN state is carried as two width-split halves.
    S = cfg["split"]
    xa = x[:, :S]
    xb = x[:, S:]
    return pivae_fused_loss(packed, cfg, xa, xb, lam_mean, lam_log_var, eps)


if __name__ == "__main__":
    N, x_dim, z_dim, u_dim = 8, 16, 2, 3
    key = jax.random.PRNGKey(0)
    kp, kx, ku, ke = jax.random.split(key, 4)

    params = init_pivae_params(kp, x_dim, z_dim, u_dim)
    packed, cfg = pack_pivae_params(params, x_dim, z_dim)

    # observed data (positive, Poisson-rate-like), discrete labels, reparam noise
    x = jax.random.uniform(kx, (N, x_dim), jnp.float32, 0.0, 5.0)
    u = jax.random.randint(ku, (N,), 0, u_dim)
    eps = jax.random.normal(ke, (N, z_dim), jnp.float32)

    fwd = jax.jit(lambda pk, em, elv, x_, u_, e_: pivae_forward(pk, cfg, em, elv, x_, u_, e_))
    loss = fwd(packed, params["embed_mean"], params["embed_log_var"], x, u, eps)
    jax.block_until_ready(loss)
    print("KERNEL_OK")
</pallas_src>

<mosaic_0001>
module attributes {stable_mosaic.version = 11 : i64} {
  func.func @kernel(%arg0: i32, %arg1: memref<8x8xf32, #tpu.memory_space<vmem>>, %arg2: memref<8x8xf32, #tpu.memory_space<vmem>>, %arg3: memref<8x2xf32, #tpu.memory_space<vmem>>, %arg4: memref<8x2xf32, #tpu.memory_space<vmem>>, %arg5: memref<8x2xf32, #tpu.memory_space<vmem>>, %arg6: memref<8x128xf32, #tpu.memory_space<vmem>>, %arg7: memref<8x128xf32, #tpu.memory_space<vmem>>, %arg8: memref<1x128xf32, #tpu.memory_space<vmem>>, %arg9: memref<128x128xf32, #tpu.memory_space<vmem>>, %arg10: memref<1x128xf32, #tpu.memory_space<vmem>>, %arg11: memref<128x128xf32, #tpu.memory_space<vmem>>, %arg12: memref<1x128xf32, #tpu.memory_space<vmem>>, %arg13: memref<128x2xf32, #tpu.memory_space<vmem>>, %arg14: memref<1x2xf32, #tpu.memory_space<vmem>>, %arg15: memref<128x2xf32, #tpu.memory_space<vmem>>, %arg16: memref<1x2xf32, #tpu.memory_space<vmem>>, %arg17: memref<2x128xf32, #tpu.memory_space<vmem>>, %arg18: memref<1x128xf32, #tpu.memory_space<vmem>>, %arg19: memref<128x128xf32, #tpu.memory_space<vmem>>, %arg20: memref<1x128xf32, #tpu.memory_space<vmem>>, %arg21: memref<2x8xf32, #tpu.memory_space<vmem>>, %arg22: memref<128x8xf32, #tpu.memory_space<vmem>>, %arg23: memref<1x8xf32, #tpu.memory_space<vmem>>, %arg24: memref<128x8xf32, #tpu.memory_space<vmem>>, %arg25: memref<1x8xf32, #tpu.memory_space<vmem>>, %arg26: memref<2x8x8xf32, #tpu.memory_space<vmem>>, %arg27: memref<2x8x8xf32, #tpu.memory_space<vmem>>, %arg28: memref<2x8x8xf32, #tpu.memory_space<vmem>>, %arg29: memref<2x8x8xf32, #tpu.memory_space<vmem>>, %arg30: memref<6x8x128xf32, #tpu.memory_space<vmem>>, %arg31: memref<6x1x128xf32, #tpu.memory_space<vmem>>, %arg32: memref<6x128x128xf32, #tpu.memory_space<vmem>>, %arg33: memref<6x1x128xf32, #tpu.memory_space<vmem>>, %arg34: memref<1x8xf32, #tpu.memory_space<vmem>>, %arg35: memref<6x128x8xf32, #tpu.memory_space<vmem>>, %arg36: memref<6x1x8xf32, #tpu.memory_space<vmem>>, %arg37: memref<6x128x8xf32, #tpu.memory_space<vmem>>, %arg38: memref<6x1x8xf32, #tpu.memory_space<vmem>>, %arg39: memref<1x1xf32, #tpu.memory_space<smem>>, %arg40: memref<1xf32, #tpu.memory_space<smem>>) attributes {dimension_semantics = [#tpu.dimension_semantics<arbitrary>], iteration_bounds = array<i64: 1>, scalar_prefetch = 0 : i64, scratch_operands = 1 : i64, tpu.core_type = #tpu.core_type<tc>, window_params = [{transform_indices = @transform_0, window_bounds = array<i64: 8, 8>}, {transform_indices = @transform_1, window_bounds = array<i64: 8, 8>}, {transform_indices = @transform_2, window_bounds = array<i64: 8, 2>}, {transform_indices = @transform_3, window_bounds = array<i64: 8, 2>}, {transform_indices = @transform_4, window_bounds = array<i64: 8, 2>}, {pipeline_mode = #tpu.pipeline_mode<synchronous>, transform_indices = @transform_5, window_bounds = array<i64: 8, 128>}, {pipeline_mode = #tpu.pipeline_mode<synchronous>, transform_indices = @transform_6, window_bounds = array<i64: 8, 128>}, {pipeline_mode = #tpu.pipeline_mode<synchronous>, transform_indices = @transform_7, window_bounds = array<i64: 1, 128>}, {pipeline_mode = #tpu.pipeline_mode<synchronous>, transform_indices = @transform_8, window_bounds = array<i64: 128, 128>}, {pipeline_mode = #tpu.pipeline_mode<synchronous>, transform_indices = @transform_9, window_bounds = array<i64: 1, 128>}, {pipeline_mode = #tpu.pipeline_mode<synchronous>, transform_indices = @transform_10, window_bounds = array<i64: 128, 128>}, {pipeline_mode = #tpu.pipeline_mode<synchronous>, transform_indices = @transform_11, window_bounds = array<i64: 1, 128>}, {pipeline_mode = #tpu.pipeline_mode<synchronous>, transform_indices = @transform_12, window_bounds = array<i64: 128, 2>}, {pipeline_mode = #tpu.pipeline_mode<synchronous>, transform_indices = @transform_13, window_bounds = array<i64: 1, 2>}, {pipeline_mode = #tpu.pipeline_mode<synchronous>, transform_indices = @transform_14, window_bounds = array<i64: 128, 2>}, {pipeline_mode = #tpu.pipeline_mode<synchronous>, transform_indices = @transform_15, window_bounds = array<i64: 1, 2>}, {pipeline_mode = #tpu.pipeline_mode<synchronous>, transform_indices = @transform_16, window_bounds = array<i64: 2, 128>}, {pipeline_mode = #tpu.pipeline_mode<synchronous>, transform_indices = @transform_17, window_bounds = array<i64: 1, 128>}, {pipeline_mode = #tpu.pipeline_mode<synchronous>, transform_indices = @transform_18, window_bounds = array<i64: 128, 128>}, {pipeline_mode = #tpu.pipeline_mode<synchronous>, transform_indices = @transform_19, window_bounds = array<i64: 1, 128>}, {pipeline_mode = #tpu.pipeline_mode<synchronous>, transform_indices = @transform_20, window_bounds = array<i64: 2, 8>}, {pipeline_mode = #tpu.pipeline_mode<synchronous>, transform_indices = @transform_21, window_bounds = array<i64: 128, 8>}, {pipeline_mode = #tpu.pipeline_mode<synchronous>, transform_indices = @transform_22, window_bounds = array<i64: 1, 8>}, {pipeline_mode = #tpu.pipeline_mode<synchronous>, transform_indices = @transform_23, window_bounds = array<i64: 128, 8>}, {pipeline_mode = #tpu.pipeline_mode<synchronous>, transform_indices = @transform_24, window_bounds = array<i64: 1, 8>}, {pipeline_mode = #tpu.pipeline_mode<synchronous>, transform_indices = @transform_25, window_bounds = array<i64: 2, 8, 8>}, {pipeline_mode = #tpu.pipeline_mode<synchronous>, transform_indices = @transform_26, window_bounds = array<i64: 2, 8, 8>}, {pipeline_mode = #tpu.pipeline_mode<synchronous>, transform_indices = @transform_27, window_bounds = array<i64: 2, 8, 8>}, {pipeline_mode = #tpu.pipeline_mode<synchronous>, transform_indices = @transform_28, window_bounds = array<i64: 2, 8, 8>}, {pipeline_mode = #tpu.pipeline_mode<synchronous>, transform_indices = @transform_29, window_bounds = array<i64: 6, 8, 128>}, {pipeline_mode = #tpu.pipeline_mode<synchronous>, transform_indices = @transform_30, window_bounds = array<i64: 6, 1, 128>}, {pipeline_mode = #tpu.pipeline_mode<synchronous>, transform_indices = @transform_31, window_bounds = array<i64: 6, 128, 128>}, {pipeline_mode = #tpu.pipeline_mode<synchronous>, transform_indices = @transform_32, window_bounds = array<i64: 6, 1, 128>}, {pipeline_mode = #tpu.pipeline_mode<synchronous>, transform_indices = @transform_33, window_bounds = array<i64: 1, 8>}, {pipeline_mode = #tpu.pipeline_mode<synchronous>, transform_indices = @transform_34, window_bounds = array<i64: 6, 128, 8>}, {pipeline_mode = #tpu.pipeline_mode<synchronous>, transform_indices = @transform_35, window_bounds = array<i64: 6, 1, 8>}, {pipeline_mode = #tpu.pipeline_mode<synchronous>, transform_indices = @transform_36, window_bounds = array<i64: 6, 128, 8>}, {pipeline_mode = #tpu.pipeline_mode<synchronous>, transform_indices = @transform_37, window_bounds = array<i64: 6, 1, 8>}, {transform_indices = @transform_38, window_bounds = array<i64: 1, 1>}]} {
    %c0 = arith.constant 0 : index
    %c0_0 = arith.constant 0 : index
    %0 = vector.load %arg1[%c0, %c0_0] : memref<8x8xf32, #tpu.memory_space<vmem>>, vector<8x8xf32>
    %c0_1 = arith.constant 0 : index
    %c0_2 = arith.constant 0 : index
    %1 = vector.load %arg2[%c0_1, %c0_2] : memref<8x8xf32, #tpu.memory_space<vmem>>, vector<8x8xf32>
    %c0_3 = arith.constant 0 : index
    %c0_4 = arith.constant 0 : index
    %2 = vector.load %arg6[%c0_3, %c0_4] : memref<8x128xf32, #tpu.memory_space<vmem>>, vector<8x128xf32>
    %cst = arith.constant dense<0.000000e+00> : vector<8x128xf32>
    %3 = tpu.matmul %0, %2, %cst {dimension_numbers = #tpu.dot_dimension_numbers<[1], [0], [0], [1], [0, 0, 1, 1], [], []>} : vector<8x8xf32>, vector<8x128xf32>, vector<8x128xf32> -> vector<8x128xf32>
    %c0_5 = arith.constant 0 : index
    %c0_6 = arith.constant 0 : index
    %4 = vector.load %arg7[%c0_5, %c0_6] : memref<8x128xf32, #tpu.memory_space<vmem>>, vector<8x128xf32>
    %cst_7 = arith.constant dense<0.000000e+00> : vector<8x128xf32>
    %5 = tpu.matmul %1, %4, %cst_7 {dimension_numbers = #tpu.dot_dimension_numbers<[1], [0], [0], [1], [0, 0, 1, 1], [], []>} : vector<8x8xf32>, vector<8x128xf32>, vector<8x128xf32> -> vector<8x128xf32>
    %6 = arith.addf %3, %5 : vector<8x128xf32>
    %c0_8 = arith.constant 0 : index
    %c0_9 = arith.constant 0 : index
    %7 = vector.load %arg8[%c0_8, %c0_9] : memref<1x128xf32, #tpu.memory_space<vmem>>, vector<1x128xf32>
    %8 = vector.broadcast %7 : vector<1x128xf32> to vector<8x128xf32>
    %9 = arith.addf %6, %8 : vector<8x128xf32>
    %10 = math.tanh %9 : vector<8x128xf32>
    %c0_10 = arith.constant 0 : index
    %c0_11 = arith.constant 0 : index
    %11 = vector.load %arg9[%c0_10, %c0_11] : memref<128x128xf32, #tpu.memory_space<vmem>>, vector<128x128xf32>
    %cst_12 = arith.constant dense<0.000000e+00> : vector<8x128xf32>
    %12 = tpu.matmul %10, %11, %cst_12 {dimension_numbers = #tpu.dot_dimension_numbers<[1], [0], [0], [1], [0, 0, 1, 1], [], []>} : vector<8x128xf32>, vector<128x128xf32>, vector<8x128xf32> -> vector<8x128xf32>
    %c0_13 = arith.constant 0 : index
    %c0_14 = arith.constant 0 : index
    %13 = vector.load %arg10[%c0_13, %c0_14] : memref<1x128xf32, #tpu.memory_space<vmem>>, vector<1x128xf32>
    %14 = vector.broadcast %13 : vector<1x128xf32> to vector<8x128xf32>
    %15 = arith.addf %12, %14 : vector<8x128xf32>
    %16 = math.tanh %15 : vector<8x128xf32>
    %c0_15 = arith.constant 0 : index
    %c0_16 = arith.constant 0 : index
    %17 = vector.load %arg11[%c0_15, %c0_16] : memref<128x128xf32, #tpu.memory_space<vmem>>, vector<128x128xf32>
    %cst_17 = arith.constant dense<0.000000e+00> : vector<8x128xf32>
    %18 = tpu.matmul %16, %17, %cst_17 {dimension_numbers = #tpu.dot_dimension_numbers<[1], [0], [0], [1], [0, 0, 1, 1], [], []>} : vector<8x128xf32>, vector<128x128xf32>, vector<8x128xf32> -> vector<8x128xf32>
    %c0_18 = arith.constant 0 : index
    %c0_19 = arith.constant 0 : index
    %19 = vector.load %arg12[%c0_18, %c0_19] : memref<1x128xf32, #tpu.memory_space<vmem>>, vector<1x128xf32>
    %20 = vector.broadcast %19 : vector<1x128xf32> to vector<8x128xf32>
    %21 = arith.addf %18, %20 : vector<8x128xf32>
    %22 = math.tanh %21 : vector<8x128xf32>
    %c0_20 = arith.constant 0 : index
    %c0_21 = arith.constant 0 : index
    %23 = vector.load %arg13[%c0_20, %c0_21] : memref<128x2xf32, #tpu.memory_space<vmem>>, vector<128x2xf32>
    %cst_22 = arith.constant dense<0.000000e+00> : vector<8x2xf32>
    %24 = tpu.matmul %22, %23, %cst_22 {dimension_numbers = #tpu.dot_dimension_numbers<[1], [0], [0], [1], [0, 0, 1, 1], [], []>} : vector<8x128xf32>, vector<128x2xf32>, vector<8x2xf32> -> vector<8x2xf32>
    %c0_23 = arith.constant 0 : index
    %c0_24 = arith.constant 0 : index
    %25 = vector.load %arg14[%c0_23, %c0_24] : memref<1x2xf32, #tpu.memory_space<vmem>>, vector<1x2xf32>
    %26 = vector.broadcast %25 : vector<1x2xf32> to vector<8x2xf32>
    %27 = arith.addf %24, %26 : vector<8x2xf32>
    %c0_25 = arith.constant 0 : index
    %c0_26 = arith.constant 0 : index
    %28 = vector.load %arg15[%c0_25, %c0_26] : memref<128x2xf32, #tpu.memory_space<vmem>>, vector<128x2xf32>
    %cst_27 = arith.constant dense<0.000000e+00> : vector<8x2xf32>
    %29 = tpu.matmul %22, %28, %cst_27 {dimension_numbers = #tpu.dot_dimension_numbers<[1], [0], [0], [1], [0, 0, 1, 1], [], []>} : vector<8x128xf32>, vector<128x2xf32>, vector<8x2xf32> -> vector<8x2xf32>
    %c0_28 = arith.constant 0 : index
    %c0_29 = arith.constant 0 : index
    %30 = vector.load %arg16[%c0_28, %c0_29] : memref<1x2xf32, #tpu.memory_space<vmem>>, vector<1x2xf32>
    %31 = vector.broadcast %30 : vector<1x2xf32> to vector<8x2xf32>
    %32 = arith.addf %29, %31 : vector<8x2xf32>
    %c0_30 = arith.constant 0 : index
    %c0_31 = arith.constant 0 : index
    %33 = vector.load %arg3[%c0_30, %c0_31] : memref<8x2xf32, #tpu.memory_space<vmem>>, vector<8x2xf32>
    %c0_32 = arith.constant 0 : index
    %c0_33 = arith.constant 0 : index
    %34 = vector.load %arg4[%c0_32, %c0_33] : memref<8x2xf32, #tpu.memory_space<vmem>>, vector<8x2xf32>
    %35 = arith.subf %32, %34 : vector<8x2xf32>
    %36 = math.absf %35 : vector<8x2xf32>
    %cst_34 = arith.constant 0.000000e+00 : f32
    %37 = vector.broadcast %cst_34 : f32 to vector<8x2xf32>
    %38 = arith.subf %37, %36 : vector<8x2xf32>
    %39 = math.exp %38 : vector<8x2xf32>
    %cst_35 = arith.constant 1.000000e+00 : f32
    %40 = vector.broadcast %cst_35 : f32 to vector<8x2xf32>
    %41 = arith.addf %40, %39 : vector<8x2xf32>
    %42 = tpu.reciprocal %41 {approx = true} : vector<8x2xf32> -> vector<8x2xf32>
    %cst_36 = arith.constant 0.000000e+00 : f32
    %43 = vector.broadcast %cst_36 : f32 to vector<8x2xf32>
    %44 = arith.cmpf oge, %35, %43 : vector<8x2xf32>
    %cst_37 = arith.constant 1.000000e+00 : f32
    %45 = vector.broadcast %cst_37 : f32 to vector<8x2xf32>
    %46 = arith.subf %45, %42 : vector<8x2xf32>
    %47 = arith.select %44, %42, %46 : vector<8x2xi1>, vector<8x2xf32>
    %cst_38 = arith.constant 1.000000e+00 : f32
    %48 = vector.broadcast %cst_38 : f32 to vector<8x2xf32>
    %49 = arith.subf %48, %47 : vector<8x2xf32>
    %50 = arith.mulf %27, %49 : vector<8x2xf32>
    %51 = arith.mulf %33, %47 : vector<8x2xf32>
    %52 = arith.addf %50, %51 : vector<8x2xf32>
    %53 = arith.minimumf %32, %34 : vector<8x2xf32>
    %54 = math.log1p %39 : vector<8x2xf32>
    %55 = arith.subf %53, %54 : vector<8x2xf32>
    %cst_39 = arith.constant 5.000000e-01 : f32
    %56 = vector.broadcast %cst_39 : f32 to vector<8x2xf32>
    %57 = arith.mulf %56, %55 : vector<8x2xf32>
    %58 = math.exp %57 : vector<8x2xf32>
    %c0_40 = arith.constant 0 : index
    %c0_41 = arith.constant 0 : index
    %59 = vector.load %arg5[%c0_40, %c0_41] : memref<8x2xf32, #tpu.memory_space<vmem>>, vector<8x2xf32>
    %60 = arith.mulf %58, %59 : vector<8x2xf32>
    %61 = arith.addf %52, %60 : vector<8x2xf32>
    %c0_42 = arith.constant 0 : index
    %c0_43 = arith.constant 0 : index
    %62 = vector.load %arg17[%c0_42, %c0_43] : memref<2x128xf32, #tpu.memory_space<vmem>>, vector<2x128xf32>
    %cst_44 = arith.constant dense<0.000000e+00> : vector<8x128xf32>
    %63 = tpu.matmul %61, %62, %cst_44 {dimension_numbers = #tpu.dot_dimension_numbers<[1], [0], [0], [1], [0, 0, 1, 1], [], []>} : vector<8x2xf32>, vector<2x128xf32>, vector<8x128xf32> -> vector<8x128xf32>
    %c0_45 = arith.constant 0 : index
    %c0_46 = arith.constant 0 : index
    %64 = vector.load %arg18[%c0_45, %c0_46] : memref<1x128xf32, #tpu.memory_space<vmem>>, vector<1x128xf32>
    %65 = vector.broadcast %64 : vector<1x128xf32> to vector<8x128xf32>
    %66 = arith.addf %63, %65 : vector<8x128xf32>
    %cst_47 = arith.constant 0.000000e+00 : f32
    %67 = vector.broadcast %cst_47 : f32 to vector<8x128xf32>
    %68 = arith.maximumf %66, %67 : vector<8x128xf32>
    %c0_48 = arith.constant 0 : index
    %c0_49 = arith.constant 0 : index
    %69 = vector.load %arg19[%c0_48, %c0_49] : memref<128x128xf32, #tpu.memory_space<vmem>>, vector<128x128xf32>
    %cst_50 = arith.constant dense<0.000000e+00> : vector<8x128xf32>
    %70 = tpu.matmul %68, %69, %cst_50 {dimension_numbers = #tpu.dot_dimension_numbers<[1], [0], [0], [1], [0, 0, 1, 1], [], []>} : vector<8x128xf32>, vector<128x128xf32>, vector<8x128xf32> -> vector<8x128xf32>
    %c0_51 = arith.constant 0 : index
    %c0_52 = arith.constant 0 : index
    %71 = vector.load %arg20[%c0_51, %c0_52] : memref<1x128xf32, #tpu.memory_space<vmem>>, vector<1x128xf32>
    %72 = vector.broadcast %71 : vector<1x128xf32> to vector<8x128xf32>
    %73 = arith.addf %70, %72 : vector<8x128xf32>
    %cst_53 = arith.constant 0.000000e+00 : f32
    %74 = vector.broadcast %cst_53 : f32 to vector<8x128xf32>
    %75 = arith.maximumf %73, %74 : vector<8x128xf32>
    %c0_54 = arith.constant 0 : index
    %c0_55 = arith.constant 0 : index
    %76 = vector.load %arg21[%c0_54, %c0_55] : memref<2x8xf32, #tpu.memory_space<vmem>>, vector<2x8xf32>
    %cst_56 = arith.constant dense<0.000000e+00> : vector<8x8xf32>
    %77 = tpu.matmul %61, %76, %cst_56 {dimension_numbers = #tpu.dot_dimension_numbers<[1], [0], [0], [1], [0, 0, 1, 1], [], []>} : vector<8x2xf32>, vector<2x8xf32>, vector<8x8xf32> -> vector<8x8xf32>
    %c0_57 = arith.constant 0 : index
    %c0_58 = arith.constant 0 : index
    %78 = vector.load %arg22[%c0_57, %c0_58] : memref<128x8xf32, #tpu.memory_space<vmem>>, vector<128x8xf32>
    %cst_59 = arith.constant dense<0.000000e+00> : vector<8x8xf32>
    %79 = tpu.matmul %75, %78, %cst_59 {dimension_numbers = #tpu.dot_dimension_numbers<[1], [0], [0], [1], [0, 0, 1, 1], [], []>} : vector<8x128xf32>, vector<128x8xf32>, vector<8x8xf32> -> vector<8x8xf32>
    %80 = arith.addf %77, %79 : vector<8x8xf32>
    %c0_60 = arith.constant 0 : index
    %c0_61 = arith.constant 0 : index
    %81 = vector.load %arg23[%c0_60, %c0_61] : memref<1x8xf32, #tpu.memory_space<vmem>>, vector<1x8xf32>
    %82 = vector.broadcast %81 : vector<1x8xf32> to vector<8x8xf32>
    %83 = arith.addf %80, %82 : vector<8x8xf32>
    %c0_62 = arith.constant 0 : index
    %c0_63 = arith.constant 0 : index
    %84 = vector.load %arg24[%c0_62, %c0_63] : memref<128x8xf32, #tpu.memory_space<vmem>>, vector<128x8xf32>
    %cst_64 = arith.constant dense<0.000000e+00> : vector<8x8xf32>
    %85 = tpu.matmul %75, %84, %cst_64 {dimension_numbers = #tpu.dot_dimension_numbers<[1], [0], [0], [1], [0, 0, 1, 1], [], []>} : vector<8x128xf32>, vector<128x8xf32>, vector<8x8xf32> -> vector<8x8xf32>
    %c0_65 = arith.constant 0 : index
    %c0_66 = arith.constant 0 : index
    %86 = vector.load %arg25[%c0_65, %c0_66] : memref<1x8xf32, #tpu.memory_space<vmem>>, vector<1x8xf32>
    %87 = vector.broadcast %86 : vector<1x8xf32> to vector<8x8xf32>
    %88 = arith.addf %85, %87 : vector<8x8xf32>
    %c0_67 = arith.constant 0 : index
    %c0_68 = arith.constant 0 : index
    %89 = vector.load %arg34[%c0_67, %c0_68] : memref<1x8xf32, #tpu.memory_space<vmem>>, vector<1x8xf32>
    %c0_69 = arith.constant 0 : index
    %c0_70 = arith.constant 0 : index
    %c0_71 = arith.constant 0 : index
    %90 = vector.load %arg26[%c0_69, %c0_70, %c0_71] : memref<2x8x8xf32, #tpu.memory_space<vmem>>, vector<1x8x8xf32>
    %91 = vector.shape_cast %90 : vector<1x8x8xf32> to vector<8x8xf32>
    %cst_72 = arith.constant dense<0.000000e+00> : vector<8x8xf32>
    %92 = tpu.matmul %83, %91, %cst_72 {dimension_numbers = #tpu.dot_dimension_numbers<[1], [0], [0], [1], [0, 0, 1, 1], [], []>} : vector<8x8xf32>, vector<8x8xf32>, vector<8x8xf32> -> vector<8x8xf32>
    %c0_73 = arith.constant 0 : index
    %c0_74 = arith.constant 0 : index
    %c0_75 = arith.constant 0 : index
    %93 = vector.load %arg28[%c0_73, %c0_74, %c0_75] : memref<2x8x8xf32, #tpu.memory_space<vmem>>, vector<1x8x8xf32>
    %94 = vector.shape_cast %93 : vector<1x8x8xf32> to vector<8x8xf32>
    %cst_76 = arith.constant dense<0.000000e+00> : vector<8x8xf32>
    %95 = tpu.matmul %88, %94, %cst_76 {dimension_numbers = #tpu.dot_dimension_numbers<[1], [0], [0], [1], [0, 0, 1, 1], [], []>} : vector<8x8xf32>, vector<8x8xf32>, vector<8x8xf32> -> vector<8x8xf32>
    %96 = arith.addf %92, %95 : vector<8x8xf32>
    %c0_77 = arith.constant 0 : index
    %c0_78 = arith.constant 0 : index
    %c0_79 = arith.constant 0 : index
    %97 = vector.load %arg27[%c0_77, %c0_78, %c0_79] : memref<2x8x8xf32, #tpu.memory_space<vmem>>, vector<1x8x8xf32>
    %98 = vector.shape_cast %97 : vector<1x8x8xf32> to vector<8x8xf32>
    %cst_80 = arith.constant dense<0.000000e+00> : vector<8x8xf32>
    %99 = tpu.matmul %83, %98, %cst_80 {dimension_numbers = #tpu.dot_dimension_numbers<[1], [0], [0], [1], [0, 0, 1, 1], [], []>} : vector<8x8xf32>, vector<8x8xf32>, vector<8x8xf32> -> vector<8x8xf32>
    %c0_81 = arith.constant 0 : index
    %c0_82 = arith.constant 0 : index
    %c0_83 = arith.constant 0 : index
    %100 = vector.load %arg29[%c0_81, %c0_82, %c0_83] : memref<2x8x8xf32, #tpu.memory_space<vmem>>, vector<1x8x8xf32>
    %101 = vector.shape_cast %100 : vector<1x8x8xf32> to vector<8x8xf32>
    %cst_84 = arith.constant dense<0.000000e+00> : vector<8x8xf32>
    %102 = tpu.matmul %88, %101, %cst_84 {dimension_numbers = #tpu.dot_dimension_numbers<[1], [0], [0], [1], [0, 0, 1, 1], [], []>} : vector<8x8xf32>, vector<8x8xf32>, vector<8x8xf32> -> vector<8x8xf32>
    %103 = arith.addf %99, %102 : vector<8x8xf32>
    %c0_85 = arith.constant 0 : index
    %c0_86 = arith.constant 0 : index
    %c0_87 = arith.constant 0 : index
    %104 = vector.load %arg30[%c0_85, %c0_86, %c0_87] : memref<6x8x128xf32, #tpu.memory_space<vmem>>, vector<1x8x128xf32>
    %105 = vector.shape_cast %104 : vector<1x8x128xf32> to vector<8x128xf32>
    %cst_88 = arith.constant dense<0.000000e+00> : vector<8x128xf32>
    %106 = tpu.matmul %96, %105, %cst_88 {dimension_numbers = #tpu.dot_dimension_numbers<[1], [0], [0], [1], [0, 0, 1, 1], [], []>} : vector<8x8xf32>, vector<8x128xf32>, vector<8x128xf32> -> vector<8x128xf32>
    %c0_89 = arith.constant 0 : index
    %c0_90 = arith.constant 0 : index
    %c0_91 = arith.constant 0 : index
    %107 = vector.load %arg31[%c0_89, %c0_90, %c0_91] : memref<6x1x128xf32, #tpu.memory_space<vmem>>, vector<1x1x128xf32>
    %108 = vector.shape_cast %107 : vector<1x1x128xf32> to vector<1x128xf32>
    %109 = vector.broadcast %108 : vector<1x128xf32> to vector<8x128xf32>
    %110 = arith.addf %106, %109 : vector<8x128xf32>
    %cst_92 = arith.constant 0.000000e+00 : f32
    %111 = vector.broadcast %cst_92 : f32 to vector<8x128xf32>
    %112 = arith.maximumf %110, %111 : vector<8x128xf32>
    %c0_93 = arith.constant 0 : index
    %c0_94 = arith.constant 0 : index
    %c0_95 = arith.constant 0 : index
    %113 = vector.load %arg32[%c0_93, %c0_94, %c0_95] : memref<6x128x128xf32, #tpu.memory_space<vmem>>, vector<1x128x128xf32>
    %114 = vector.shape_cast %113 : vector<1x128x128xf32> to vector<128x128xf32>
    %cst_96 = arith.constant dense<0.000000e+00> : vector<8x128xf32>
    %115 = tpu.matmul %112, %114, %cst_96 {dimension_numbers = #tpu.dot_dimension_numbers<[1], [0], [0], [1], [0, 0, 1, 1], [], []>} : vector<8x128xf32>, vector<128x128xf32>, vector<8x128xf32> -> vector<8x128xf32>
    %c0_97 = arith.constant 0 : index
    %c0_98 = arith.constant 0 : index
    %c0_99 = arith.constant 0 : index
    %116 = vector.load %arg33[%c0_97, %c0_98, %c0_99] : memref<6x1x128xf32, #tpu.memory_space<vmem>>, vector<1x1x128xf32>
    %117 = vector.shape_cast %116 : vector<1x1x128xf32> to vector<1x128xf32>
    %118 = vector.broadcast %117 : vector<1x128xf32> to vector<8x128xf32>
    %119 = arith.addf %115, %118 : vector<8x128xf32>
    %cst_100 = arith.constant 0.000000e+00 : f32
    %120 = vector.broadcast %cst_100 : f32 to vector<8x128xf32>
    %121 = arith.maximumf %119, %120 : vector<8x128xf32>
    %c0_101 = arith.constant 0 : index
    %c0_102 = arith.constant 0 : index
    %c0_103 = arith.constant 0 : index
    %122 = vector.load %arg35[%c0_101, %c0_102, %c0_103] : memref<6x128x8xf32, #tpu.memory_space<vmem>>, vector<1x128x8xf32>
    %123 = vector.shape_cast %122 : vector<1x128x8xf32> to vector<128x8xf32>
    %cst_104 = arith.constant dense<0.000000e+00> : vector<8x8xf32>
    %124 = tpu.matmul %121, %123, %cst_104 {dimension_numbers = #tpu.dot_dimension_numbers<[1], [0], [0], [1], [0, 0, 1, 1], [], []>} : vector<8x128xf32>, vector<128x8xf32>, vector<8x8xf32> -> vector<8x8xf32>
    %c0_105 = arith.constant 0 : index
    %c0_106 = arith.constant 0 : index
    %c0_107 = arith.constant 0 : index
    %125 = vector.load %arg36[%c0_105, %c0_106, %c0_107] : memref<6x1x8xf32, #tpu.memory_space<vmem>>, vector<1x1x8xf32>
    %126 = vector.shape_cast %125 : vector<1x1x8xf32> to vector<1x8xf32>
    %127 = vector.broadcast %126 : vector<1x8xf32> to vector<8x8xf32>
    %128 = arith.addf %124, %127 : vector<8x8xf32>
    %129 = math.tanh %128 : vector<8x8xf32>
    %cst_108 = arith.constant 1.000000e-01 : f32
    %130 = vector.broadcast %cst_108 : f32 to vector<8x8xf32>
    %131 = arith.mulf %130, %129 : vector<8x8xf32>
    %c0_109 = arith.constant 0 : index
    %c0_110 = arith.constant 0 : index
    %c0_111 = arith.constant 0 : index
    %132 = vector.load %arg37[%c0_109, %c0_110, %c0_111] : memref<6x128x8xf32, #tpu.memory_space<vmem>>, vector<1x128x8xf32>
    %133 = vector.shape_cast %132 : vector<1x128x8xf32> to vector<128x8xf32>
    %cst_112 = arith.constant dense<0.000000e+00> : vector<8x8xf32>
    %134 = tpu.matmul %121, %133, %cst_112 {dimension_numbers = #tpu.dot_dimension_numbers<[1], [0], [0], [1], [0, 0, 1, 1], [], []>} : vector<8x128xf32>, vector<128x8xf32>, vector<8x8xf32> -> vector<8x8xf32>
    %c0_113 = arith.constant 0 : index
    %c0_114 = arith.constant 0 : index
    %c0_115 = arith.constant 0 : index
    %135 = vector.load %arg38[%c0_113, %c0_114, %c0_115] : memref<6x1x8xf32, #tpu.memory_space<vmem>>, vector<1x1x8xf32>
    %136 = vector.shape_cast %135 : vector<1x1x8xf32> to vector<1x8xf32>
    %137 = vector.broadcast %136 : vector<1x8xf32> to vector<8x8xf32>
    %138 = arith.addf %134, %137 : vector<8x8xf32>
    %cst_116 = arith.constant dense<0.000000e+00> : vector<8xf32>
    %139 = vector.multi_reduction <add>, %131, %cst_116 [1] : vector<8x8xf32> to vector<8xf32>
    %140 = vector.shape_cast %139 : vector<8xf32> to vector<8x1xf32>
    %141 = vector.broadcast %89 : vector<1x8xf32> to vector<8x8xf32>
    %142 = vector.broadcast %140 : vector<8x1xf32> to vector<8x8xf32>
    %143 = arith.mulf %141, %142 : vector<8x8xf32>
    %144 = arith.subf %131, %143 : vector<8x8xf32>
    %145 = math.exp %144 : vector<8x8xf32>
    %146 = arith.mulf %103, %145 : vector<8x8xf32>
    %147 = arith.addf %146, %138 : vector<8x8xf32>
    %c1 = arith.constant 1 : index
    %c0_117 = arith.constant 0 : index
    %c0_118 = arith.constant 0 : index
    %148 = vector.load %arg30[%c1, %c0_117, %c0_118] : memref<6x8x128xf32, #tpu.memory_space<vmem>>, vector<1x8x128xf32>
    %149 = vector.shape_cast %148 : vector<1x8x128xf32> to vector<8x128xf32>
    %cst_119 = arith.constant dense<0.000000e+00> : vector<8x128xf32>
    %150 = tpu.matmul %147, %149, %cst_119 {dimension_numbers = #tpu.dot_dimension_numbers<[1], [0], [0], [1], [0, 0, 1, 1], [], []>} : vector<8x8xf32>, vector<8x128xf32>, vector<8x128xf32> -> vector<8x128xf32>
    %c1_120 = arith.constant 1 : index
    %c0_121 = arith.constant 0 : index
    %c0_122 = arith.constant 0 : index
    %151 = vector.load %arg31[%c1_120, %c0_121, %c0_122] : memref<6x1x128xf32, #tpu.memory_space<vmem>>, vector<1x1x128xf32>
    %152 = vector.shape_cast %151 : vector<1x1x128xf32> to vector<1x128xf32>
    %153 = vector.broadcast %152 : vector<1x128xf32> to vector<8x128xf32>
    %154 = arith.addf %150, %153 : vector<8x128xf32>
    %cst_123 = arith.constant 0.000000e+00 : f32
    %155 = vector.broadcast %cst_123 : f32 to vector<8x128xf32>
    %156 = arith.maximumf %154, %155 : vector<8x128xf32>
    %c1_124 = arith.constant 1 : index
    %c0_125 = arith.constant 0 : index
    %c0_126 = arith.constant 0 : index
    %157 = vector.load %arg32[%c1_124, %c0_125, %c0_126] : memref<6x128x128xf32, #tpu.memory_space<vmem>>, vector<1x128x128xf32>
    %158 = vector.shape_cast %157 : vector<1x128x128xf32> to vector<128x128xf32>
    %cst_127 = arith.constant dense<0.000000e+00> : vector<8x128xf32>
    %159 = tpu.matmul %156, %158, %cst_127 {dimension_numbers = #tpu.dot_dimension_numbers<[1], [0], [0], [1], [0, 0, 1, 1], [], []>} : vector<8x128xf32>, vector<128x128xf32>, vector<8x128xf32> -> vector<8x128xf32>
    %c1_128 = arith.constant 1 : index
    %c0_129 = arith.constant 0 : index
    %c0_130 = arith.constant 0 : index
    %160 = vector.load %arg33[%c1_128, %c0_129, %c0_130] : memref<6x1x128xf32, #tpu.memory_space<vmem>>, vector<1x1x128xf32>
    %161 = vector.shape_cast %160 : vector<1x1x128xf32> to vector<1x128xf32>
    %162 = vector.broadcast %161 : vector<1x128xf32> to vector<8x128xf32>
    %163 = arith.addf %159, %162 : vector<8x128xf32>
    %cst_131 = arith.constant 0.000000e+00 : f32
    %164 = vector.broadcast %cst_131 : f32 to vector<8x128xf32>
    %165 = arith.maximumf %163, %164 : vector<8x128xf32>
    %c1_132 = arith.constant 1 : index
    %c0_133 = arith.constant 0 : index
    %c0_134 = arith.constant 0 : index
    %166 = vector.load %arg35[%c1_132, %c0_133, %c0_134] : memref<6x128x8xf32, #tpu.memory_space<vmem>>, vector<1x128x8xf32>
    %167 = vector.shape_cast %166 : vector<1x128x8xf32> to vector<128x8xf32>
    %cst_135 = arith.constant dense<0.000000e+00> : vector<8x8xf32>
    %168 = tpu.matmul %165, %167, %cst_135 {dimension_numbers = #tpu.dot_dimension_numbers<[1], [0], [0], [1], [0, 0, 1, 1], [], []>} : vector<8x128xf32>, vector<128x8xf32>, vector<8x8xf32> -> vector<8x8xf32>
    %c1_136 = arith.constant 1 : index
    %c0_137 = arith.constant 0 : index
    %c0_138 = arith.constant 0 : index
    %169 = vector.load %arg36[%c1_136, %c0_137, %c0_138] : memref<6x1x8xf32, #tpu.memory_space<vmem>>, vector<1x1x8xf32>
    %170 = vector.shape_cast %169 : vector<1x1x8xf32> to vector<1x8xf32>
    %171 = vector.broadcast %170 : vector<1x8xf32> to vector<8x8xf32>
    %172 = arith.addf %168, %171 : vector<8x8xf32>
    %173 = math.tanh %172 : vector<8x8xf32>
    %cst_139 = arith.constant 1.000000e-01 : f32
    %174 = vector.broadcast %cst_139 : f32 to vector<8x8xf32>
    %175 = arith.mulf %174, %173 : vector<8x8xf32>
    %c1_140 = arith.constant 1 : index
    %c0_141 = arith.constant 0 : index
    %c0_142 = arith.constant 0 : index
    %176 = vector.load %arg37[%c1_140, %c0_141, %c0_142] : memref<6x128x8xf32, #tpu.memory_space<vmem>>, vector<1x128x8xf32>
    %177 = vector.shape_cast %176 : vector<1x128x8xf32> to vector<128x8xf32>
    %cst_143 = arith.constant dense<0.000000e+00> : vector<8x8xf32>
    %178 = tpu.matmul %165, %177, %cst_143 {dimension_numbers = #tpu.dot_dimension_numbers<[1], [0], [0], [1], [0, 0, 1, 1], [], []>} : vector<8x128xf32>, vector<128x8xf32>, vector<8x8xf32> -> vector<8x8xf32>
    %c1_144 = arith.constant 1 : index
    %c0_145 = arith.constant 0 : index
    %c0_146 = arith.constant 0 : index
    %179 = vector.load %arg38[%c1_144, %c0_145, %c0_146] : memref<6x1x8xf32, #tpu.memory_space<vmem>>, vector<1x1x8xf32>
    %180 = vector.shape_cast %179 : vector<1x1x8xf32> to vector<1x8xf32>
    %181 = vector.broadcast %180 : vector<1x8xf32> to vector<8x8xf32>
    %182 = arith.addf %178, %181 : vector<8x8xf32>
    %cst_147 = arith.constant dense<0.000000e+00> : vector<8xf32>
    %183 = vector.multi_reduction <add>, %175, %cst_147 [1] : vector<8x8xf32> to vector<8xf32>
    %184 = vector.shape_cast %183 : vector<8xf32> to vector<8x1xf32>
    %185 = vector.broadcast %89 : vector<1x8xf32> to vector<8x8xf32>
    %186 = vector.broadcast %184 : vector<8x1xf32> to vector<8x8xf32>
    %187 = arith.mulf %185, %186 : vector<8x8xf32>
    %188 = arith.subf %175, %187 : vector<8x8xf32>
    %189 = math.exp %188 : vector<8x8xf32>
    %190 = arith.mulf %96, %189 : vector<8x8xf32>
    %191 = arith.addf %190, %182 : vector<8x8xf32>
    %c2 = arith.constant 2 : index
    %c0_148 = arith.constant 0 : index
    %c0_149 = arith.constant 0 : index
    %192 = vector.load %arg30[%c2, %c0_148, %c0_149] : memref<6x8x128xf32, #tpu.memory_space<vmem>>, vector<1x8x128xf32>
    %193 = vector.shape_cast %192 : vector<1x8x128xf32> to vector<8x128xf32>
    %cst_150 = arith.constant dense<0.000000e+00> : vector<8x128xf32>
    %194 = tpu.matmul %191, %193, %cst_150 {dimension_numbers = #tpu.dot_dimension_numbers<[1], [0], [0], [1], [0, 0, 1, 1], [], []>} : vector<8x8xf32>, vector<8x128xf32>, vector<8x128xf32> -> vector<8x128xf32>
    %c2_151 = arith.constant 2 : index
    %c0_152 = arith.constant 0 : index
    %c0_153 = arith.constant 0 : index
    %195 = vector.load %arg31[%c2_151, %c0_152, %c0_153] : memref<6x1x128xf32, #tpu.memory_space<vmem>>, vector<1x1x128xf32>
    %196 = vector.shape_cast %195 : vector<1x1x128xf32> to vector<1x128xf32>
    %197 = vector.broadcast %196 : vector<1x128xf32> to vector<8x128xf32>
    %198 = arith.addf %194, %197 : vector<8x128xf32>
    %cst_154 = arith.constant 0.000000e+00 : f32
    %199 = vector.broadcast %cst_154 : f32 to vector<8x128xf32>
    %200 = arith.maximumf %198, %199 : vector<8x128xf32>
    %c2_155 = arith.constant 2 : index
    %c0_156 = arith.constant 0 : index
    %c0_157 = arith.constant 0 : index
    %201 = vector.load %arg32[%c2_155, %c0_156, %c0_157] : memref<6x128x128xf32, #tpu.memory_space<vmem>>, vector<1x128x128xf32>
    %202 = vector.shape_cast %201 : vector<1x128x128xf32> to vector<128x128xf32>
    %cst_158 = arith.constant dense<0.000000e+00> : vector<8x128xf32>
    %203 = tpu.matmul %200, %202, %cst_158 {dimension_numbers = #tpu.dot_dimension_numbers<[1], [0], [0], [1], [0, 0, 1, 1], [], []>} : vector<8x128xf32>, vector<128x128xf32>, vector<8x128xf32> -> vector<8x128xf32>
    %c2_159 = arith.constant 2 : index
    %c0_160 = arith.constant 0 : index
    %c0_161 = arith.constant 0 : index
    %204 = vector.load %arg33[%c2_159, %c0_160, %c0_161] : memref<6x1x128xf32, #tpu.memory_space<vmem>>, vector<1x1x128xf32>
    %205 = vector.shape_cast %204 : vector<1x1x128xf32> to vector<1x128xf32>
    %206 = vector.broadcast %205 : vector<1x128xf32> to vector<8x128xf32>
    %207 = arith.addf %203, %206 : vector<8x128xf32>
    %cst_162 = arith.constant 0.000000e+00 : f32
    %208 = vector.broadcast %cst_162 : f32 to vector<8x128xf32>
    %209 = arith.maximumf %207, %208 : vector<8x128xf32>
    %c2_163 = arith.constant 2 : index
    %c0_164 = arith.constant 0 : index
    %c0_165 = arith.constant 0 : index
    %210 = vector.load %arg35[%c2_163, %c0_164, %c0_165] : memref<6x128x8xf32, #tpu.memory_space<vmem>>, vector<1x128x8xf32>
    %211 = vector.shape_cast %210 : vector<1x128x8xf32> to vector<128x8xf32>
    %cst_166 = arith.constant dense<0.000000e+00> : vector<8x8xf32>
    %212 = tpu.matmul %209, %211, %cst_166 {dimension_numbers = #tpu.dot_dimension_numbers<[1], [0], [0], [1], [0, 0, 1, 1], [], []>} : vector<8x128xf32>, vector<128x8xf32>, vector<8x8xf32> -> vector<8x8xf32>
    %c2_167 = arith.constant 2 : index
    %c0_168 = arith.constant 0 : index
    %c0_169 = arith.constant 0 : index
    %213 = vector.load %arg36[%c2_167, %c0_168, %c0_169] : memref<6x1x8xf32, #tpu.memory_space<vmem>>, vector<1x1x8xf32>
    %214 = vector.shape_cast %213 : vector<1x1x8xf32> to vector<1x8xf32>
    %215 = vector.broadcast %214 : vector<1x8xf32> to vector<8x8xf32>
    %216 = arith.addf %212, %215 : vector<8x8xf32>
    %217 = math.tanh %216 : vector<8x8xf32>
    %cst_170 = arith.constant 1.000000e-01 : f32
    %218 = vector.broadcast %cst_170 : f32 to vector<8x8xf32>
    %219 = arith.mulf %218, %217 : vector<8x8xf32>
    %c2_171 = arith.constant 2 : index
    %c0_172 = arith.constant 0 : index
    %c0_173 = arith.constant 0 : index
    %220 = vector.load %arg37[%c2_171, %c0_172, %c0_173] : memref<6x128x8xf32, #tpu.memory_space<vmem>>, vector<1x128x8xf32>
    %221 = vector.shape_cast %220 : vector<1x128x8xf32> to vector<128x8xf32>
    %cst_174 = arith.constant dense<0.000000e+00> : vector<8x8xf32>
    %222 = tpu.matmul %209, %221, %cst_174 {dimension_numbers = #tpu.dot_dimension_numbers<[1], [0], [0], [1], [0, 0, 1, 1], [], []>} : vector<8x128xf32>, vector<128x8xf32>, vector<8x8xf32> -> vector<8x8xf32>
    %c2_175 = arith.constant 2 : index
    %c0_176 = arith.constant 0 : index
    %c0_177 = arith.constant 0 : index
    %223 = vector.load %arg38[%c2_175, %c0_176, %c0_177] : memref<6x1x8xf32, #tpu.memory_space<vmem>>, vector<1x1x8xf32>
    %224 = vector.shape_cast %223 : vector<1x1x8xf32> to vector<1x8xf32>
    %225 = vector.broadcast %224 : vector<1x8xf32> to vector<8x8xf32>
    %226 = arith.addf %222, %225 : vector<8x8xf32>
    %cst_178 = arith.constant dense<0.000000e+00> : vector<8xf32>
    %227 = vector.multi_reduction <add>, %219, %cst_178 [1] : vector<8x8xf32> to vector<8xf32>
    %228 = vector.shape_cast %227 : vector<8xf32> to vector<8x1xf32>
    %229 = vector.broadcast %89 : vector<1x8xf32> to vector<8x8xf32>
    %230 = vector.broadcast %228 : vector<8x1xf32> to vector<8x8xf32>
    %231 = arith.mulf %229, %230 : vector<8x8xf32>
    %232 = arith.subf %219, %231 : vector<8x8xf32>
    %233 = math.exp %232 : vector<8x8xf32>
    %234 = arith.mulf %147, %233 : vector<8x8xf32>
    %235 = arith.addf %234, %226 : vector<8x8xf32>
    %c1_179 = arith.constant 1 : index
    %c0_180 = arith.constant 0 : index
    %c0_181 = arith.constant 0 : index
    %236 = vector.load %arg26[%c1_179, %c0_180, %c0_181] : memref<2x8x8xf32, #tpu.memory_space<vmem>>, vector<1x8x8xf32>
    %237 = vector.shape_cast %236 : vector<1x8x8xf32> to vector<8x8xf32>
    %cst_182 = arith.constant dense<0.000000e+00> : vector<8x8xf32>
    %238 = tpu.matmul %235, %237, %cst_182 {dimension_numbers = #tpu.dot_dimension_numbers<[1], [0], [0], [1], [0, 0, 1, 1], [], []>} : vector<8x8xf32>, vector<8x8xf32>, vector<8x8xf32> -> vector<8x8xf32>
    %c1_183 = arith.constant 1 : index
    %c0_184 = arith.constant 0 : index
    %c0_185 = arith.constant 0 : index
    %239 = vector.load %arg28[%c1_183, %c0_184, %c0_185] : memref<2x8x8xf32, #tpu.memory_space<vmem>>, vector<1x8x8xf32>
    %240 = vector.shape_cast %239 : vector<1x8x8xf32> to vector<8x8xf32>
    %cst_186 = arith.constant dense<0.000000e+00> : vector<8x8xf32>
    %241 = tpu.matmul %191, %240, %cst_186 {dimension_numbers = #tpu.dot_dimension_numbers<[1], [0], [0], [1], [0, 0, 1, 1], [], []>} : vector<8x8xf32>, vector<8x8xf32>, vector<8x8xf32> -> vector<8x8xf32>
    %242 = arith.addf %238, %241 : vector<8x8xf32>
    %c1_187 = arith.constant 1 : index
    %c0_188 = arith.constant 0 : index
    %c0_189 = arith.constant 0 : index
    %243 = vector.load %arg27[%c1_187, %c0_188, %c0_189] : memref<2x8x8xf32, #tpu.memory_space<vmem>>, vector<1x8x8xf32>
    %244 = vector.shape_cast %243 : vector<1x8x8xf32> to vector<8x8xf32>
    %cst_190 = arith.constant dense<0.000000e+00> : vector<8x8xf32>
    %245 = tpu.matmul %235, %244, %cst_190 {dimension_numbers = #tpu.dot_dimension_numbers<[1], [0], [0], [1], [0, 0, 1, 1], [], []>} : vector<8x8xf32>, vector<8x8xf32>, vector<8x8xf32> -> vector<8x8xf32>
    %c1_191 = arith.constant 1 : index
    %c0_192 = arith.constant 0 : index
    %c0_193 = arith.constant 0 : index
    %246 = vector.load %arg29[%c1_191, %c0_192, %c0_193] : memref<2x8x8xf32, #tpu.memory_space<vmem>>, vector<1x8x8xf32>
    %247 = vector.shape_cast %246 : vector<1x8x8xf32> to vector<8x8xf32>
    %cst_194 = arith.constant dense<0.000000e+00> : vector<8x8xf32>
    %248 = tpu.matmul %191, %247, %cst_194 {dimension_numbers = #tpu.dot_dimension_numbers<[1], [0], [0], [1], [0, 0, 1, 1], [], []>} : vector<8x8xf32>, vector<8x8xf32>, vector<8x8xf32> -> vector<8x8xf32>
    %249 = arith.addf %245, %248 : vector<8x8xf32>
    %c3 = arith.constant 3 : index
    %c0_195 = arith.constant 0 : index
    %c0_196 = arith.constant 0 : index
    %250 = vector.load %arg30[%c3, %c0_195, %c0_196] : memref<6x8x128xf32, #tpu.memory_space<vmem>>, vector<1x8x128xf32>
    %251 = vector.shape_cast %250 : vector<1x8x128xf32> to vector<8x128xf32>
    %cst_197 = arith.constant dense<0.000000e+00> : vector<8x128xf32>
    %252 = tpu.matmul %242, %251, %cst_197 {dimension_numbers = #tpu.dot_dimension_numbers<[1], [0], [0], [1], [0, 0, 1, 1], [], []>} : vector<8x8xf32>, vector<8x128xf32>, vector<8x128xf32> -> vector<8x128xf32>
    %c3_198 = arith.constant 3 : index
    %c0_199 = arith.constant 0 : index
    %c0_200 = arith.constant 0 : index
    %253 = vector.load %arg31[%c3_198, %c0_199, %c0_200] : memref<6x1x128xf32, #tpu.memory_space<vmem>>, vector<1x1x128xf32>
    %254 = vector.shape_cast %253 : vector<1x1x128xf32> to vector<1x128xf32>
    %255 = vector.broadcast %254 : vector<1x128xf32> to vector<8x128xf32>
    %256 = arith.addf %252, %255 : vector<8x128xf32>
    %cst_201 = arith.constant 0.000000e+00 : f32
    %257 = vector.broadcast %cst_201 : f32 to vector<8x128xf32>
    %258 = arith.maximumf %256, %257 : vector<8x128xf32>
    %c3_202 = arith.constant 3 : index
    %c0_203 = arith.constant 0 : index
    %c0_204 = arith.constant 0 : index
    %259 = vector.load %arg32[%c3_202, %c0_203, %c0_204] : memref<6x128x128xf32, #tpu.memory_space<vmem>>, vector<1x128x128xf32>
    %260 = vector.shape_cast %259 : vector<1x128x128xf32> to vector<128x128xf32>
    %cst_205 = arith.constant dense<0.000000e+00> : vector<8x128xf32>
    %261 = tpu.matmul %258, %260, %cst_205 {dimension_numbers = #tpu.dot_dimension_numbers<[1], [0], [0], [1], [0, 0, 1, 1], [], []>} : vector<8x128xf32>, vector<128x128xf32>, vector<8x128xf32> -> vector<8x128xf32>
    %c3_206 = arith.constant 3 : index
    %c0_207 = arith.constant 0 : index
    %c0_208 = arith.constant 0 : index
    %262 = vector.load %arg33[%c3_206, %c0_207, %c0_208] : memref<6x1x128xf32, #tpu.memory_space<vmem>>, vector<1x1x128xf32>
    %263 = vector.shape_cast %262 : vector<1x1x128xf32> to vector<1x128xf32>
    %264 = vector.broadcast %263 : vector<1x128xf32> to vector<8x128xf32>
    %265 = arith.addf %261, %264 : vector<8x128xf32>
    %cst_209 = arith.constant 0.000000e+00 : f32
    %266 = vector.broadcast %cst_209 : f32 to vector<8x128xf32>
    %267 = arith.maximumf %265, %266 : vector<8x128xf32>
    %c3_210 = arith.constant 3 : index
    %c0_211 = arith.constant 0 : index
    %c0_212 = arith.constant 0 : index
    %268 = vector.load %arg35[%c3_210, %c0_211, %c0_212] : memref<6x128x8xf32, #tpu.memory_space<vmem>>, vector<1x128x8xf32>
    %269 = vector.shape_cast %268 : vector<1x128x8xf32> to vector<128x8xf32>
    %cst_213 = arith.constant dense<0.000000e+00> : vector<8x8xf32>
    %270 = tpu.matmul %267, %269, %cst_213 {dimension_numbers = #tpu.dot_dimension_numbers<[1], [0], [0], [1], [0, 0, 1, 1], [], []>} : vector<8x128xf32>, vector<128x8xf32>, vector<8x8xf32> -> vector<8x8xf32>
    %c3_214 = arith.constant 3 : index
    %c0_215 = arith.constant 0 : index
    %c0_216 = arith.constant 0 : index
    %271 = vector.load %arg36[%c3_214, %c0_215, %c0_216] : memref<6x1x8xf32, #tpu.memory_space<vmem>>, vector<1x1x8xf32>
    %272 = vector.shape_cast %271 : vector<1x1x8xf32> to vector<1x8xf32>
    %273 = vector.broadcast %272 : vector<1x8xf32> to vector<8x8xf32>
    %274 = arith.addf %270, %273 : vector<8x8xf32>
    %275 = math.tanh %274 : vector<8x8xf32>
    %cst_217 = arith.constant 1.000000e-01 : f32
    %276 = vector.broadcast %cst_217 : f32 to vector<8x8xf32>
    %277 = arith.mulf %276, %275 : vector<8x8xf32>
    %c3_218 = arith.constant 3 : index
    %c0_219 = arith.constant 0 : index
    %c0_220 = arith.constant 0 : index
    %278 = vector.load %arg37[%c3_218, %c0_219, %c0_220] : memref<6x128x8xf32, #tpu.memory_space<vmem>>, vector<1x128x8xf32>
    %279 = vector.shape_cast %278 : vector<1x128x8xf32> to vector<128x8xf32>
    %cst_221 = arith.constant dense<0.000000e+00> : vector<8x8xf32>
    %280 = tpu.matmul %267, %279, %cst_221 {dimension_numbers = #tpu.dot_dimension_numbers<[1], [0], [0], [1], [0, 0, 1, 1], [], []>} : vector<8x128xf32>, vector<128x8xf32>, vector<8x8xf32> -> vector<8x8xf32>
    %c3_222 = arith.constant 3 : index
    %c0_223 = arith.constant 0 : index
    %c0_224 = arith.constant 0 : index
    %281 = vector.load %arg38[%c3_222, %c0_223, %c0_224] : memref<6x1x8xf32, #tpu.memory_space<vmem>>, vector<1x1x8xf32>
    %282 = vector.shape_cast %281 : vector<1x1x8xf32> to vector<1x8xf32>
    %283 = vector.broadcast %282 : vector<1x8xf32> to vector<8x8xf32>
    %284 = arith.addf %280, %283 : vector<8x8xf32>
    %cst_225 = arith.constant dense<0.000000e+00> : vector<8xf32>
    %285 = vector.multi_reduction <add>, %277, %cst_225 [1] : vector<8x8xf32> to vector<8xf32>
    %286 = vector.shape_cast %285 : vector<8xf32> to vector<8x1xf32>
    %287 = vector.broadcast %89 : vector<1x8xf32> to vector<8x8xf32>
    %288 = vector.broadcast %286 : vector<8x1xf32> to vector<8x8xf32>
    %289 = arith.mulf %287, %288 : vector<8x8xf32>
    %290 = arith.subf %277, %289 : vector<8x8xf32>
    %291 = math.exp %290 : vector<8x8xf32>
    %292 = arith.mulf %249, %291 : vector<8x8xf32>
    %293 = arith.addf %292, %284 : vector<8x8xf32>
    %c4 = arith.constant 4 : index
    %c0_226 = arith.constant 0 : index
    %c0_227 = arith.constant 0 : index
    %294 = vector.load %arg30[%c4, %c0_226, %c0_227] : memref<6x8x128xf32, #tpu.memory_space<vmem>>, vector<1x8x128xf32>
    %295 = vector.shape_cast %294 : vector<1x8x128xf32> to vector<8x128xf32>
    %cst_228 = arith.constant dense<0.000000e+00> : vector<8x128xf32>
    %296 = tpu.matmul %293, %295, %cst_228 {dimension_numbers = #tpu.dot_dimension_numbers<[1], [0], [0], [1], [0, 0, 1, 1], [], []>} : vector<8x8xf32>, vector<8x128xf32>, vector<8x128xf32> -> vector<8x128xf32>
    %c4_229 = arith.constant 4 : index
    %c0_230 = arith.constant 0 : index
    %c0_231 = arith.constant 0 : index
    %297 = vector.load %arg31[%c4_229, %c0_230, %c0_231] : memref<6x1x128xf32, #tpu.memory_space<vmem>>, vector<1x1x128xf32>
    %298 = vector.shape_cast %297 : vector<1x1x128xf32> to vector<1x128xf32>
    %299 = vector.broadcast %298 : vector<1x128xf32> to vector<8x128xf32>
    %300 = arith.addf %296, %299 : vector<8x128xf32>
    %cst_232 = arith.constant 0.000000e+00 : f32
    %301 = vector.broadcast %cst_232 : f32 to vector<8x128xf32>
    %302 = arith.maximumf %300, %301 : vector<8x128xf32>
    %c4_233 = arith.constant 4 : index
    %c0_234 = arith.constant 0 : index
    %c0_235 = arith.constant 0 : index
    %303 = vector.load %arg32[%c4_233, %c0_234, %c0_235] : memref<6x128x128xf32, #tpu.memory_space<vmem>>, vector<1x128x128xf32>
    %304 = vector.shape_cast %303 : vector<1x128x128xf32> to vector<128x128xf32>
    %cst_236 = arith.constant dense<0.000000e+00> : vector<8x128xf32>
    %305 = tpu.matmul %302, %304, %cst_236 {dimension_numbers = #tpu.dot_dimension_numbers<[1], [0], [0], [1], [0, 0, 1, 1], [], []>} : vector<8x128xf32>, vector<128x128xf32>, vector<8x128xf32> -> vector<8x128xf32>
    %c4_237 = arith.constant 4 : index
    %c0_238 = arith.constant 0 : index
    %c0_239 = arith.constant 0 : index
    %306 = vector.load %arg33[%c4_237, %c0_238, %c0_239] : memref<6x1x128xf32, #tpu.memory_space<vmem>>, vector<1x1x128xf32>
    %307 = vector.shape_cast %306 : vector<1x1x128xf32> to vector<1x128xf32>
    %308 = vector.broadcast %307 : vector<1x128xf32> to vector<8x128xf32>
    %309 = arith.addf %305, %308 : vector<8x128xf32>
    %cst_240 = arith.constant 0.000000e+00 : f32
    %310 = vector.broadcast %cst_240 : f32 to vector<8x128xf32>
    %311 = arith.maximumf %309, %310 : vector<8x128xf32>
    %c4_241 = arith.constant 4 : index
    %c0_242 = arith.constant 0 : index
    %c0_243 = arith.constant 0 : index
    %312 = vector.load %arg35[%c4_241, %c0_242, %c0_243] : memref<6x128x8xf32, #tpu.memory_space<vmem>>, vector<1x128x8xf32>
    %313 = vector.shape_cast %312 : vector<1x128x8xf32> to vector<128x8xf32>
    %cst_244 = arith.constant dense<0.000000e+00> : vector<8x8xf32>
    %314 = tpu.matmul %311, %313, %cst_244 {dimension_numbers = #tpu.dot_dimension_numbers<[1], [0], [0], [1], [0, 0, 1, 1], [], []>} : vector<8x128xf32>, vector<128x8xf32>, vector<8x8xf32> -> vector<8x8xf32>
    %c4_245 = arith.constant 4 : index
    %c0_246 = arith.constant 0 : index
    %c0_247 = arith.constant 0 : index
    %315 = vector.load %arg36[%c4_245, %c0_246, %c0_247] : memref<6x1x8xf32, #tpu.memory_space<vmem>>, vector<1x1x8xf32>
    %316 = vector.shape_cast %315 : vector<1x1x8xf32> to vector<1x8xf32>
    %317 = vector.broadcast %316 : vector<1x8xf32> to vector<8x8xf32>
    %318 = arith.addf %314, %317 : vector<8x8xf32>
    %319 = math.tanh %318 : vector<8x8xf32>
    %cst_248 = arith.constant 1.000000e-01 : f32
    %320 = vector.broadcast %cst_248 : f32 to vector<8x8xf32>
    %321 = arith.mulf %320, %319 : vector<8x8xf32>
    %c4_249 = arith.constant 4 : index
    %c0_250 = arith.constant 0 : index
    %c0_251 = arith.constant 0 : index
    %322 = vector.load %arg37[%c4_249, %c0_250, %c0_251] : memref<6x128x8xf32, #tpu.memory_space<vmem>>, vector<1x128x8xf32>
    %323 = vector.shape_cast %322 : vector<1x128x8xf32> to vector<128x8xf32>
    %cst_252 = arith.constant dense<0.000000e+00> : vector<8x8xf32>
    %324 = tpu.matmul %311, %323, %cst_252 {dimension_numbers = #tpu.dot_dimension_numbers<[1], [0], [0], [1], [0, 0, 1, 1], [], []>} : vector<8x128xf32>, vector<128x8xf32>, vector<8x8xf32> -> vector<8x8xf32>
    %c4_253 = arith.constant 4 : index
    %c0_254 = arith.constant 0 : index
    %c0_255 = arith.constant 0 : index
    %325 = vector.load %arg38[%c4_253, %c0_254, %c0_255] : memref<6x1x8xf32, #tpu.memory_space<vmem>>, vector<1x1x8xf32>
    %326 = vector.shape_cast %325 : vector<1x1x8xf32> to vector<1x8xf32>
    %327 = vector.broadcast %326 : vector<1x8xf32> to vector<8x8xf32>
    %328 = arith.addf %324, %327 : vector<8x8xf32>
    %cst_256 = arith.constant dense<0.000000e+00> : vector<8xf32>
    %329 = vector.multi_reduction <add>, %321, %cst_256 [1] : vector<8x8xf32> to vector<8xf32>
    %330 = vector.shape_cast %329 : vector<8xf32> to vector<8x1xf32>
    %331 = vector.broadcast %89 : vector<1x8xf32> to vector<8x8xf32>
    %332 = vector.broadcast %330 : vector<8x1xf32> to vector<8x8xf32>
    %333 = arith.mulf %331, %332 : vector<8x8xf32>
    %334 = arith.subf %321, %333 : vector<8x8xf32>
    %335 = math.exp %334 : vector<8x8xf32>
    %336 = arith.mulf %242, %335 : vector<8x8xf32>
    %337 = arith.addf %336, %328 : vector<8x8xf32>
    %c5 = arith.constant 5 : index
    %c0_257 = arith.constant 0 : index
    %c0_258 = arith.constant 0 : index
    %338 = vector.load %arg30[%c5, %c0_257, %c0_258] : memref<6x8x128xf32, #tpu.memory_space<vmem>>, vector<1x8x128xf32>
    %339 = vector.shape_cast %338 : vector<1x8x128xf32> to vector<8x128xf32>
    %cst_259 = arith.constant dense<0.000000e+00> : vector<8x128xf32>
    %340 = tpu.matmul %337, %339, %cst_259 {dimension_numbers = #tpu.dot_dimension_numbers<[1], [0], [0], [1], [0, 0, 1, 1], [], []>} : vector<8x8xf32>, vector<8x128xf32>, vector<8x128xf32> -> vector<8x128xf32>
    %c5_260 = arith.constant 5 : index
    %c0_261 = arith.constant 0 : index
    %c0_262 = arith.constant 0 : index
    %341 = vector.load %arg31[%c5_260, %c0_261, %c0_262] : memref<6x1x128xf32, #tpu.memory_space<vmem>>, vector<1x1x128xf32>
    %342 = vector.shape_cast %341 : vector<1x1x128xf32> to vector<1x128xf32>
    %343 = vector.broadcast %342 : vector<1x128xf32> to vector<8x128xf32>
    %344 = arith.addf %340, %343 : vector<8x128xf32>
    %cst_263 = arith.constant 0.000000e+00 : f32
    %345 = vector.broadcast %cst_263 : f32 to vector<8x128xf32>
    %346 = arith.maximumf %344, %345 : vector<8x128xf32>
    %c5_264 = arith.constant 5 : index
    %c0_265 = arith.constant 0 : index
    %c0_266 = arith.constant 0 : index
    %347 = vector.load %arg32[%c5_264, %c0_265, %c0_266] : memref<6x128x128xf32, #tpu.memory_space<vmem>>, vector<1x128x128xf32>
    %348 = vector.shape_cast %347 : vector<1x128x128xf32> to vector<128x128xf32>
    %cst_267 = arith.constant dense<0.000000e+00> : vector<8x128xf32>
    %349 = tpu.matmul %346, %348, %cst_267 {dimension_numbers = #tpu.dot_dimension_numbers<[1], [0], [0], [1], [0, 0, 1, 1], [], []>} : vector<8x128xf32>, vector<128x128xf32>, vector<8x128xf32> -> vector<8x128xf32>
    %c5_268 = arith.constant 5 : index
    %c0_269 = arith.constant 0 : index
    %c0_270 = arith.constant 0 : index
    %350 = vector.load %arg33[%c5_268, %c0_269, %c0_270] : memref<6x1x128xf32, #tpu.memory_space<vmem>>, vector<1x1x128xf32>
    %351 = vector.shape_cast %350 : vector<1x1x128xf32> to vector<1x128xf32>
    %352 = vector.broadcast %351 : vector<1x128xf32> to vector<8x128xf32>
    %353 = arith.addf %349, %352 : vector<8x128xf32>
    %cst_271 = arith.constant 0.000000e+00 : f32
    %354 = vector.broadcast %cst_271 : f32 to vector<8x128xf32>
    %355 = arith.maximumf %353, %354 : vector<8x128xf32>
    %c5_272 = arith.constant 5 : index
    %c0_273 = arith.constant 0 : index
    %c0_274 = arith.constant 0 : index
    %356 = vector.load %arg35[%c5_272, %c0_273, %c0_274] : memref<6x128x8xf32, #tpu.memory_space<vmem>>, vector<1x128x8xf32>
    %357 = vector.shape_cast %356 : vector<1x128x8xf32> to vector<128x8xf32>
    %cst_275 = arith.constant dense<0.000000e+00> : vector<8x8xf32>
    %358 = tpu.matmul %355, %357, %cst_275 {dimension_numbers = #tpu.dot_dimension_numbers<[1], [0], [0], [1], [0, 0, 1, 1], [], []>} : vector<8x128xf32>, vector<128x8xf32>, vector<8x8xf32> -> vector<8x8xf32>
    %c5_276 = arith.constant 5 : index
    %c0_277 = arith.constant 0 : index
    %c0_278 = arith.constant 0 : index
    %359 = vector.load %arg36[%c5_276, %c0_277, %c0_278] : memref<6x1x8xf32, #tpu.memory_space<vmem>>, vector<1x1x8xf32>
    %360 = vector.shape_cast %359 : vector<1x1x8xf32> to vector<1x8xf32>
    %361 = vector.broadcast %360 : vector<1x8xf32> to vector<8x8xf32>
    %362 = arith.addf %358, %361 : vector<8x8xf32>
    %363 = math.tanh %362 : vector<8x8xf32>
    %cst_279 = arith.constant 1.000000e-01 : f32
    %364 = vector.broadcast %cst_279 : f32 to vector<8x8xf32>
    %365 = arith.mulf %364, %363 : vector<8x8xf32>
    %c5_280 = arith.constant 5 : index
    %c0_281 = arith.constant 0 : index
    %c0_282 = arith.constant 0 : index
    %366 = vector.load %arg37[%c5_280, %c0_281, %c0_282] : memref<6x128x8xf32, #tpu.memory_space<vmem>>, vector<1x128x8xf32>
    %367 = vector.shape_cast %366 : vector<1x128x8xf32> to vector<128x8xf32>
    %cst_283 = arith.constant dense<0.000000e+00> : vector<8x8xf32>
    %368 = tpu.matmul %355, %367, %cst_283 {dimension_numbers = #tpu.dot_dimension_numbers<[1], [0], [0], [1], [0, 0, 1, 1], [], []>} : vector<8x128xf32>, vector<128x8xf32>, vector<8x8xf32> -> vector<8x8xf32>
    %c5_284 = arith.constant 5 : index
    %c0_285 = arith.constant 0 : index
    %c0_286 = arith.constant 0 : index
    %369 = vector.load %arg38[%c5_284, %c0_285, %c0_286] : memref<6x1x8xf32, #tpu.memory_space<vmem>>, vector<1x1x8xf32>
    %370 = vector.shape_cast %369 : vector<1x1x8xf32> to vector<1x8xf32>
    %371 = vector.broadcast %370 : vector<1x8xf32> to vector<8x8xf32>
    %372 = arith.addf %368, %371 : vector<8x8xf32>
    %cst_287 = arith.constant dense<0.000000e+00> : vector<8xf32>
    %373 = vector.multi_reduction <add>, %365, %cst_287 [1] : vector<8x8xf32> to vector<8xf32>
    %374 = vector.shape_cast %373 : vector<8xf32> to vector<8x1xf32>
    %375 = vector.broadcast %89 : vector<1x8xf32> to vector<8x8xf32>
    %376 = vector.broadcast %374 : vector<8x1xf32> to vector<8x8xf32>
    %377 = arith.mulf %375, %376 : vector<8x8xf32>
    %378 = arith.subf %365, %377 : vector<8x8xf32>
    %379 = math.exp %378 : vector<8x8xf32>
    %380 = arith.mulf %293, %379 : vector<8x8xf32>
    %381 = arith.addf %380, %372 : vector<8x8xf32>
    %cst_288 = arith.constant 0.000000e+00 : f32
    %382 = vector.broadcast %cst_288 : f32 to vector<8x8xf32>
    %383 = arith.maximumf %381, %382 : vector<8x8xf32>
    %384 = math.absf %381 : vector<8x8xf32>
    %cst_289 = arith.constant 0.000000e+00 : f32
    %385 = vector.broadcast %cst_289 : f32 to vector<8x8xf32>
    %386 = arith.subf %385, %384 : vector<8x8xf32>
    %387 = math.exp %386 : vector<8x8xf32>
    %388 = math.log1p %387 : vector<8x8xf32>
    %389 = arith.addf %383, %388 : vector<8x8xf32>
    %cst_290 = arith.constant 1.000000e-07 : f32
    %cst_291 = arith.constant 1.000000e+07 : f32
    %390 = vector.broadcast %cst_290 : f32 to vector<8x8xf32>
    %391 = arith.maximumf %390, %389 : vector<8x8xf32>
    %392 = vector.broadcast %cst_291 : f32 to vector<8x8xf32>
    %393 = arith.minimumf %392, %391 : vector<8x8xf32>
    %cst_292 = arith.constant 0.000000e+00 : f32
    %394 = vector.broadcast %cst_292 : f32 to vector<8x8xf32>
    %395 = arith.maximumf %337, %394 : vector<8x8xf32>
    %396 = math.absf %337 : vector<8x8xf32>
    %cst_293 = arith.constant 0.000000e+00 : f32
    %397 = vector.broadcast %cst_293 : f32 to vector<8x8xf32>
    %398 = arith.subf %397, %396 : vector<8x8xf32>
    %399 = math.exp %398 : vector<8x8xf32>
    %400 = math.log1p %399 : vector<8x8xf32>
    %401 = arith.addf %395, %400 : vector<8x8xf32>
    %cst_294 = arith.constant 1.000000e-07 : f32
    %cst_295 = arith.constant 1.000000e+07 : f32
    %402 = vector.broadcast %cst_294 : f32 to vector<8x8xf32>
    %403 = arith.maximumf %402, %401 : vector<8x8xf32>
    %404 = vector.broadcast %cst_295 : f32 to vector<8x8xf32>
    %405 = arith.minimumf %404, %403 : vector<8x8xf32>
    %406 = math.log %393 : vector<8x8xf32>
    %407 = arith.mulf %0, %406 : vector<8x8xf32>
    %408 = arith.subf %393, %407 : vector<8x8xf32>
    %cst_296 = arith.constant dense<0.000000e+00> : vector<8xf32>
    %409 = vector.multi_reduction <add>, %408, %cst_296 [1] : vector<8x8xf32> to vector<8xf32>
    %410 = vector.shape_cast %409 : vector<8xf32> to vector<8x1xf32>
    %411 = math.log %405 : vector<8x8xf32>
    %412 = arith.mulf %1, %411 : vector<8x8xf32>
    %413 = arith.subf %405, %412 : vector<8x8xf32>
    %cst_297 = arith.constant dense<0.000000e+00> : vector<8xf32>
    %414 = vector.multi_reduction <add>, %413, %cst_297 [1] : vector<8x8xf32> to vector<8xf32>
    %415 = vector.shape_cast %414 : vector<8xf32> to vector<8x1xf32>
    %416 = arith.addf %410, %415 : vector<8x1xf32>
    %417 = arith.subf %52, %33 : vector<8x2xf32>
    %418 = arith.mulf %417, %417 : vector<8x2xf32>
    %cst_298 = arith.constant 1.000000e+00 : f32
    %419 = vector.broadcast %cst_298 : f32 to vector<8x2xf32>
    %420 = arith.addf %419, %55 : vector<8x2xf32>
    %421 = arith.subf %420, %34 : vector<8x2xf32>
    %cst_299 = arith.constant 0.000000e+00 : f32
    %422 = vector.broadcast %cst_299 : f32 to vector<8x2xf32>
    %423 = arith.subf %422, %34 : vector<8x2xf32>
    %424 = math.exp %423 : vector<8x2xf32>
    %425 = arith.mulf %418, %424 : vector<8x2xf32>
    %426 = arith.subf %421, %425 : vector<8x2xf32>
    %427 = arith.subf %55, %34 : vector<8x2xf32>
    %428 = math.exp %427 : vector<8x2xf32>
    %429 = arith.subf %426, %428 : vector<8x2xf32>
    %cst_300 = arith.constant dense<0.000000e+00> : vector<8xf32>
    %430 = vector.multi_reduction <add>, %429, %cst_300 [1] : vector<8x2xf32> to vector<8xf32>
    %431 = vector.shape_cast %430 : vector<8xf32> to vector<8x1xf32>
    %cst_301 = arith.constant 5.000000e-01 : f32
    %432 = vector.broadcast %cst_301 : f32 to vector<8x1xf32>
    %433 = arith.mulf %432, %431 : vector<8x1xf32>
    %434 = arith.subf %416, %433 : vector<8x1xf32>
    %435 = vector.shape_cast %434 : vector<8x1xf32> to vector<1x8x1xf32>
    %cst_302 = arith.constant dense<0.000000e+00> : vector<1xf32>
    %436 = vector.multi_reduction <add>, %435, %cst_302 [1, 2] : vector<1x8x1xf32> to vector<1xf32>
    %437 = vector.shape_cast %436 : vector<1xf32> to vector<1x1x1xf32>
    %438 = vector.extract %437[0, 0, 0] : f32 from vector<1x1x1xf32>
    %c0_i32 = arith.constant 0 : i32
    %439 = arith.cmpi eq, %arg0, %c0_i32 : i32
    %440 = arith.extui %439 : i1 to i32
    %c0_i32_303 = arith.constant 0 : i32
    %441 = arith.cmpi ne, %440, %c0_i32_303 : i32
    scf.if %441 {
      %cst_308 = arith.constant 0.000000e+00 : f32
      %c0_309 = arith.constant 0 : index
      %448 = memref.load %arg40[%c0_309] : memref<1xf32, #tpu.memory_space<smem>>
      memref.store %cst_308, %arg40[%c0_309] : memref<1xf32, #tpu.memory_space<smem>>
    } else {
    }
    %c0_304 = arith.constant 0 : index
    %442 = memref.load %arg40[%c0_304] : memref<1xf32, #tpu.memory_space<smem>>
    %443 = arith.addf %442, %438 : f32
    %c0_305 = arith.constant 0 : index
    %444 = memref.load %arg40[%c0_305] : memref<1xf32, #tpu.memory_space<smem>>
    memref.store %443, %arg40[%c0_305] : memref<1xf32, #tpu.memory_space<smem>>
    %c0_i32_306 = arith.constant 0 : i32
    %445 = arith.cmpi eq, %arg0, %c0_i32_306 : i32
    %446 = arith.extui %445 : i1 to i32
    %c0_i32_307 = arith.constant 0 : i32
    %447 = arith.cmpi ne, %446, %c0_i32_307 : i32
    scf.if %447 {
      %c0_308 = arith.constant 0 : index
      %448 = memref.load %arg40[%c0_308] : memref<1xf32, #tpu.memory_space<smem>>
      %cst_309 = arith.constant 1.250000e-01 : f32
      %449 = arith.mulf %448, %cst_309 : f32
      %c0_310 = arith.constant 0 : index
      %c0_311 = arith.constant 0 : index
      %450 = memref.load %arg39[%c0_310, %c0_311] : memref<1x1xf32, #tpu.memory_space<smem>>
      memref.store %449, %arg39[%c0_310, %c0_311] : memref<1x1xf32, #tpu.memory_space<smem>>
    } else {
    }
    return
  }
  func.func @transform_0(%arg0: i32) -> (i32, i32) {
    %c0_i32 = arith.constant 0 : i32
    %c0_i32_0 = arith.constant 0 : i32
    return %arg0, %c0_i32 : i32, i32
  }
  func.func @transform_1(%arg0: i32) -> (i32, i32) {
    %c0_i32 = arith.constant 0 : i32
    %c0_i32_0 = arith.constant 0 : i32
    return %arg0, %c0_i32 : i32, i32
  }
  func.func @transform_2(%arg0: i32) -> (i32, i32) {
    %c0_i32 = arith.constant 0 : i32
    %c0_i32_0 = arith.constant 0 : i32
    return %arg0, %c0_i32 : i32, i32
  }
  func.func @transform_3(%arg0: i32) -> (i32, i32) {
    %c0_i32 = arith.constant 0 : i32
    %c0_i32_0 = arith.constant 0 : i32
    return %arg0, %c0_i32 : i32, i32
  }
  func.func @transform_4(%arg0: i32) -> (i32, i32) {
    %c0_i32 = arith.constant 0 : i32
    %c0_i32_0 = arith.constant 0 : i32
    return %arg0, %c0_i32 : i32, i32
  }
  func.func @transform_5(%arg0: i32) -> (i32, i32) {
    %c0_i32 = arith.constant 0 : i32
    %c0_i32_0 = arith.constant 0 : i32
    %c0_i32_1 = arith.constant 0 : i32
    return %c0_i32, %c0_i32_0 : i32, i32
  }
  func.func @transform_6(%arg0: i32) -> (i32, i32) {
    %c0_i32 = arith.constant 0 : i32
    %c0_i32_0 = arith.constant 0 : i32
    %c0_i32_1 = arith.constant 0 : i32
    return %c0_i32, %c0_i32_0 : i32, i32
  }
  func.func @transform_7(%arg0: i32) -> (i32, i32) {
    %c0_i32 = arith.constant 0 : i32
    %c0_i32_0 = arith.constant 0 : i32
    %c0_i32_1 = arith.constant 0 : i32
    return %c0_i32, %c0_i32_0 : i32, i32
  }
  func.func @transform_8(%arg0: i32) -> (i32, i32) {
    %c0_i32 = arith.constant 0 : i32
    %c0_i32_0 = arith.constant 0 : i32
    %c0_i32_1 = arith.constant 0 : i32
    return %c0_i32, %c0_i32_0 : i32, i32
  }
  func.func @transform_9(%arg0: i32) -> (i32, i32) {
    %c0_i32 = arith.constant 0 : i32
    %c0_i32_0 = arith.constant 0 : i32
    %c0_i32_1 = arith.constant 0 : i32
    return %c0_i32, %c0_i32_0 : i32, i32
  }
  func.func @transform_10(%arg0: i32) -> (i32, i32) {
    %c0_i32 = arith.constant 0 : i32
    %c0_i32_0 = arith.constant 0 : i32
    %c0_i32_1 = arith.constant 0 : i32
    return %c0_i32, %c0_i32_0 : i32, i32
  }
  func.func @transform_11(%arg0: i32) -> (i32, i32) {
    %c0_i32 = arith.constant 0 : i32
    %c0_i32_0 = arith.constant 0 : i32
    %c0_i32_1 = arith.constant 0 : i32
    return %c0_i32, %c0_i32_0 : i32, i32
  }
  func.func @transform_12(%arg0: i32) -> (i32, i32) {
    %c0_i32 = arith.constant 0 : i32
    %c0_i32_0 = arith.constant 0 : i32
    %c0_i32_1 = arith.constant 0 : i32
    return %c0_i32, %c0_i32_0 : i32, i32
  }
  func.func @transform_13(%arg0: i32) -> (i32, i32) {
    %c0_i32 = arith.constant 0 : i32
    %c0_i32_0 = arith.constant 0 : i32
    %c0_i32_1 = arith.constant 0 : i32
    return %c0_i32, %c0_i32_0 : i32, i32
  }
  func.func @transform_14(%arg0: i32) -> (i32, i32) {
    %c0_i32 = arith.constant 0 : i32
    %c0_i32_0 = arith.constant 0 : i32
    %c0_i32_1 = arith.constant 0 : i32
    return %c0_i32, %c0_i32_0 : i32, i32
  }
  func.func @transform_15(%arg0: i32) -> (i32, i32) {
    %c0_i32 = arith.constant 0 : i32
    %c0_i32_0 = arith.constant 0 : i32
    %c0_i32_1 = arith.constant 0 : i32
    return %c0_i32, %c0_i32_0 : i32, i32
  }
  func.func @transform_16(%arg0: i32) -> (i32, i32) {
    %c0_i32 = arith.constant 0 : i32
    %c0_i32_0 = arith.constant 0 : i32
    %c0_i32_1 = arith.constant 0 : i32
    return %c0_i32, %c0_i32_0 : i32, i32
  }
  func.func @transform_17(%arg0: i32) -> (i32, i32) {
    %c0_i32 = arith.constant 0 : i32
    %c0_i32_0 = arith.constant 0 : i32
    %c0_i32_1 = arith.constant 0 : i32
    return %c0_i32, %c0_i32_0 : i32, i32
  }
  func.func @transform_18(%arg0: i32) -> (i32, i32) {
    %c0_i32 = arith.constant 0 : i32
    %c0_i32_0 = arith.constant 0 : i32
    %c0_i32_1 = arith.constant 0 : i32
    return %c0_i32, %c0_i32_0 : i32, i32
  }
  func.func @transform_19(%arg0: i32) -> (i32, i32) {
    %c0_i32 = arith.constant 0 : i32
    %c0_i32_0 = arith.constant 0 : i32
    %c0_i32_1 = arith.constant 0 : i32
    return %c0_i32, %c0_i32_0 : i32, i32
  }
  func.func @transform_20(%arg0: i32) -> (i32, i32) {
    %c0_i32 = arith.constant 0 : i32
    %c0_i32_0 = arith.constant 0 : i32
    %c0_i32_1 = arith.constant 0 : i32
    return %c0_i32, %c0_i32_0 : i32, i32
  }
  func.func @transform_21(%arg0: i32) -> (i32, i32) {
    %c0_i32 = arith.constant 0 : i32
    %c0_i32_0 = arith.constant 0 : i32
    %c0_i32_1 = arith.constant 0 : i32
    return %c0_i32, %c0_i32_0 : i32, i32
  }
  func.func @transform_22(%arg0: i32) -> (i32, i32) {
    %c0_i32 = arith.constant 0 : i32
    %c0_i32_0 = arith.constant 0 : i32
    %c0_i32_1 = arith.constant 0 : i32
    return %c0_i32, %c0_i32_0 : i32, i32
  }
  func.func @transform_23(%arg0: i32) -> (i32, i32) {
    %c0_i32 = arith.constant 0 : i32
    %c0_i32_0 = arith.constant 0 : i32
    %c0_i32_1 = arith.constant 0 : i32
    return %c0_i32, %c0_i32_0 : i32, i32
  }
  func.func @transform_24(%arg0: i32) -> (i32, i32) {
    %c0_i32 = arith.constant 0 : i32
    %c0_i32_0 = arith.constant 0 : i32
    %c0_i32_1 = arith.constant 0 : i32
    return %c0_i32, %c0_i32_0 : i32, i32
  }
  func.func @transform_25(%arg0: i32) -> (i32, i32, i32) {
    %c0_i32 = arith.constant 0 : i32
    %c0_i32_0 = arith.constant 0 : i32
    %c0_i32_1 = arith.constant 0 : i32
    %c0_i32_2 = arith.constant 0 : i32
    return %c0_i32, %c0_i32_0, %c0_i32_1 : i32, i32, i32
  }
  func.func @transform_26(%arg0: i32) -> (i32, i32, i32) {
    %c0_i32 = arith.constant 0 : i32
    %c0_i32_0 = arith.constant 0 : i32
    %c0_i32_1 = arith.constant 0 : i32
    %c0_i32_2 = arith.constant 0 : i32
    return %c0_i32, %c0_i32_0, %c0_i32_1 : i32, i32, i32
  }
  func.func @transform_27(%arg0: i32) -> (i32, i32, i32) {
    %c0_i32 = arith.constant 0 : i32
    %c0_i32_0 = arith.constant 0 : i32
    %c0_i32_1 = arith.constant 0 : i32
    %c0_i32_2 = arith.constant 0 : i32
    return %c0_i32, %c0_i32_0, %c0_i32_1 : i32, i32, i32
  }
  func.func @transform_28(%arg0: i32) -> (i32, i32, i32) {
    %c0_i32 = arith.constant 0 : i32
    %c0_i32_0 = arith.constant 0 : i32
    %c0_i32_1 = arith.constant 0 : i32
    %c0_i32_2 = arith.constant 0 : i32
    return %c0_i32, %c0_i32_0, %c0_i32_1 : i32, i32, i32
  }
  func.func @transform_29(%arg0: i32) -> (i32, i32, i32) {
    %c0_i32 = arith.constant 0 : i32
    %c0_i32_0 = arith.constant 0 : i32
    %c0_i32_1 = arith.constant 0 : i32
    %c0_i32_2 = arith.constant 0 : i32
    return %c0_i32, %c0_i32_0, %c0_i32_1 : i32, i32, i32
  }
  func.func @transform_30(%arg0: i32) -> (i32, i32, i32) {
    %c0_i32 = arith.constant 0 : i32
    %c0_i32_0 = arith.constant 0 : i32
    %c0_i32_1 = arith.constant 0 : i32
    %c0_i32_2 = arith.constant 0 : i32
    return %c0_i32, %c0_i32_0, %c0_i32_1 : i32, i32, i32
  }
  func.func @transform_31(%arg0: i32) -> (i32, i32, i32) {
    %c0_i32 = arith.constant 0 : i32
    %c0_i32_0 = arith.constant 0 : i32
    %c0_i32_1 = arith.constant 0 : i32
    %c0_i32_2 = arith.constant 0 : i32
    return %c0_i32, %c0_i32_0, %c0_i32_1 : i32, i32, i32
  }
  func.func @transform_32(%arg0: i32) -> (i32, i32, i32) {
    %c0_i32 = arith.constant 0 : i32
    %c0_i32_0 = arith.constant 0 : i32
    %c0_i32_1 = arith.constant 0 : i32
    %c0_i32_2 = arith.constant 0 : i32
    return %c0_i32, %c0_i32_0, %c0_i32_1 : i32, i32, i32
  }
  func.func @transform_33(%arg0: i32) -> (i32, i32) {
    %c0_i32 = arith.constant 0 : i32
    %c0_i32_0 = arith.constant 0 : i32
    %c0_i32_1 = arith.constant 0 : i32
    return %c0_i32, %c0_i32_0 : i32, i32
  }
  func.func @transform_34(%arg0: i32) -> (i32, i32, i32) {
    %c0_i32 = arith.constant 0 : i32
    %c0_i32_0 = arith.constant 0 : i32
    %c0_i32_1 = arith.constant 0 : i32
    %c0_i32_2 = arith.constant 0 : i32
    return %c0_i32, %c0_i32_0, %c0_i32_1 : i32, i32, i32
  }
  func.func @transform_35(%arg0: i32) -> (i32, i32, i32) {
    %c0_i32 = arith.constant 0 : i32
    %c0_i32_0 = arith.constant 0 : i32
    %c0_i32_1 = arith.constant 0 : i32
    %c0_i32_2 = arith.constant 0 : i32
    return %c0_i32, %c0_i32_0, %c0_i32_1 : i32, i32, i32
  }
  func.func @transform_36(%arg0: i32) -> (i32, i32, i32) {
    %c0_i32 = arith.constant 0 : i32
    %c0_i32_0 = arith.constant 0 : i32
    %c0_i32_1 = arith.constant 0 : i32
    %c0_i32_2 = arith.constant 0 : i32
    return %c0_i32, %c0_i32_0, %c0_i32_1 : i32, i32, i32
  }
  func.func @transform_37(%arg0: i32) -> (i32, i32, i32) {
    %c0_i32 = arith.constant 0 : i32
    %c0_i32_0 = arith.constant 0 : i32
    %c0_i32_1 = arith.constant 0 : i32
    %c0_i32_2 = arith.constant 0 : i32
    return %c0_i32, %c0_i32_0, %c0_i32_1 : i32, i32, i32
  }
  func.func @transform_38(%arg0: i32) -> (i32, i32) {
    %c0_i32 = arith.constant 0 : i32
    %c0_i32_0 = arith.constant 0 : i32
    %c0_i32_1 = arith.constant 0 : i32
    return %c0_i32, %c0_i32_0 : i32, i32
  }
}

</mosaic_0001>

<bundles_post_ra>
// kernel: _lambda_.1
= control target key start
LH: loop header
LB: loop body
LE: loop exit
PB: predicated region body
PF: predicated region fallthrough
CT: control target
= control target key end

     0   :  { %s6650_s6 = smov 1   ;;  %s6651_s10 = smov 2   ;;  %s7744_s0 = inlined_call_operand.smem [shape: u32[39], index: -1, kind: input, shape index: {}] }
   0x1   :  { %s6700_s5 = sld [smem:[%s7744_s0]]   ;;  %s6652_s14 = smov 3  }
   0x2   :  { %s6705_s9 = sld [smem:[%s7744_s0 + %s6650_s6]]   ;;  %s6653_s18 = smov 4  }
   0x3   :  { %s6710_s13 = sld [smem:[%s7744_s0 + %s6651_s10]]   ;;  %s6654_s22 = smov 5  }
   0x4   :  { %s6715_s17 = sld [smem:[%s7744_s0 + %s6652_s14]]   ;;  %s6655_s26 = smov 6  }
   0x5   :  { %s6720_s21 = sld [smem:[%s7744_s0 + %s6653_s18]]   ;;  %s6656_s30 = smov 7  }
   0x6   :  { %s6725_s25 = sld [smem:[%s7744_s0 + %s6654_s22]]   ;;  %s6657_s4 = smov 8  }
   0x7   :  { %s6730_s29 = sld [smem:[%s7744_s0 + %s6655_s26]]   ;;  %s6658_s10 = smov 9  }
   0x8   :  { %s6735_s3 = sld [smem:[%s7744_s0 + %s6656_s30]]   ;;  %s6659_s15 = smov 10  }
   0x9   :  { %7758 = sst [smem:[#allocation6_spill]] %s6710_s13  ;;  %s6660_s20 = smov 11  }
   0xa   :  { %s6740_s8 = sld [smem:[%s7744_s0 + %s6657_s4]]   ;;  %s6661_s26 = smov 12  }
   0xb   :  { %7759 = sst [smem:[#allocation7_spill]] %s6720_s21  ;;  %s6662_s1 = smov 13  }
   0xc   :  { %s6745_s14 = sld [smem:[%s7744_s0 + %s6658_s10]]   ;;  %s6663_s7 = smov 14  }
   0xd   :  { %s6750_s19 = sld [smem:[%s7744_s0 + %s6659_s15]]   ;;  %s6664_s15 = smov 15  }
   0xe   :  { %s6755_s24 = sld [smem:[%s7744_s0 + %s6660_s20]]   ;;  %s6665_s22 = smov 16  }
   0xf   :  { %s6760_s30 = sld [smem:[%s7744_s0 + %s6661_s26]]   ;;  %s6666_s28 = smov 17  }
  0x10   :  { %s6765_s6 = sld [smem:[%s7744_s0 + %s6662_s1]]  }
  0x11   :  { %s6770_s12 = sld [smem:[%s7744_s0 + %s6663_s7]]   ;;  %s6667_s7 = smov 18  }
  0x12   :  { %s6775_s20 = sld [smem:[%s7744_s0 + %s6664_s15]]   ;;  %s6668_s15 = smov 19  }
  0x13   :  { %s6780_s27 = sld [smem:[%s7744_s0 + %s6665_s22]]   ;;  %s6669_s22 = smov 20  }
  0x14   :  { %s6785_s4 = sld [smem:[%s7744_s0 + %s6666_s28]]   ;;  %s6670_s28 = smov 21  }
  0x15   :  { %s6790_s21 = sld [smem:[%s7744_s0 + %s6667_s7]]   ;;  %s6671_s7 = smov 22  }
  0x16   :  { %7760 = sst [smem:[#allocation8_spill]] %s6765_s6 }
  0x17   :  { %s6795_s13 = sld [smem:[%s7744_s0 + %s6668_s15]]   ;;  %s6672_s15 = smov 23  }
  0x18   :  { %s6800_s6 = sld [smem:[%s7744_s0 + %s6669_s22]]   ;;  %s6673_s22 = smov 24  }
  0x1a   :  { %7761 = sst [smem:[#allocation9_spill]] %s6785_s4 }
  0x1b   :  { %7762 = sst [smem:[#allocation10_spill]] %s6790_s21 }
  0x1c   :  { %s6805_s4 = sld [smem:[%s7744_s0 + %s6670_s28]]   ;;  %s6674_s28 = smov 25  }
  0x1d   :  { %7763 = sst [smem:[#allocation11_spill]] %s6795_s13 }
  0x1e   :  { %7764 = sst [smem:[#allocation12_spill]] %s6800_s6 }
  0x1f   :  { %s6810_s21 = sld [smem:[%s7744_s0 + %s6671_s7]]   ;;  %s6675_s7 = smov 26  }
  0x20   :  { %s6815_s13 = sld [smem:[%s7744_s0 + %s6672_s15]]   ;;  %s6676_s15 = smov 27  }
  0x21   :  { %s6820_s6 = sld [smem:[%s7744_s0 + %s6673_s22]]   ;;  %s6677_s22 = smov 28  }
  0x22   :  { %7765 = sst [smem:[#allocation13_spill]] %s6805_s4 }
  0x23   :  { %s6825_s4 = sld [smem:[%s7744_s0 + %s6674_s28]]   ;;  %s6678_s28 = smov 29  }
  0x25   :  { %7766 = sst [smem:[#allocation14_spill]] %s6810_s21 }
  0x26   :  { %7767 = sst [smem:[#allocation15_spill]] %s6815_s13 }
  0x27   :  { %7768 = sst [smem:[#allocation16_spill]] %s6820_s6 }
  0x28   :  { %s6830_s21 = sld [smem:[%s7744_s0 + %s6675_s7]]   ;;  %s6679_s7 = smov 30  }
  0x29   :  { %7769 = sst [smem:[#allocation17_spill]] %s6825_s4 }
  0x2a   :  { %s6835_s13 = sld [smem:[%s7744_s0 + %s6676_s15]]   ;;  %s6680_s15 = smov 31  }
  0x2b   :  { %s6840_s6 = sld [smem:[%s7744_s0 + %s6677_s22]]   ;;  %s6681_s22 = smov 32  }
  0x2c   :  { %s6845_s4 = sld [smem:[%s7744_s0 + %s6678_s28]]   ;;  %s6682_s28 = smov 33  }
  0x2e   :  { %7770 = sst [smem:[#allocation18_spill]] %s6830_s21 }
  0x2f   :  { %s6850_s21 = sld [smem:[%s7744_s0 + %s6679_s7]]   ;;  %s6683_s7 = smov 34  }
  0x30   :  { %7771 = sst [smem:[#allocation19_spill]] %s6835_s13 }
  0x31   :  { %7772 = sst [smem:[#allocation20_spill]] %s6840_s6 }
  0x32   :  { %7773 = sst [smem:[#allocation21_spill]] %s6845_s4 }
  0x33   :  { %s6855_s13 = sld [smem:[%s7744_s0 + %s6680_s15]]   ;;  %s6684_s15 = smov 35  }
  0x34   :  { %s6860_s6 = sld [smem:[%s7744_s0 + %s6681_s22]]   ;;  %s6685_s22 = smov 36  }
  0x35   :  { %7774 = sst [smem:[#allocation22_spill]] %s6850_s21 }
  0x36   :  { %s6865_s4 = sld [smem:[%s7744_s0 + %s6682_s28]]   ;;  %s6686_s28 = smov 37  }
  0x37   :  { %s6870_s21 = sld [smem:[%s7744_s0 + %s6683_s7]]   ;;  %s6687_s7 = smov 38  }
  0x39   :  { %7775 = sst [smem:[#allocation23_spill]] %s6855_s13 }
  0x3a   :  { %7776 = sst [smem:[#allocation24_spill]] %s6860_s6 }
  0x3b   :  { %s6875_s13 = sld [smem:[%s7744_s0 + %s6684_s15]]  }
  0x3c   :  { %7777 = sst [smem:[#allocation25_spill]] %s6865_s4 }
  0x3d   :  { %7778 = sst [smem:[#allocation26_spill]] %s6870_s21 }
  0x3e   :  { %s6880_s6 = sld [smem:[%s7744_s0 + %s6685_s22]]  }
  0x3f   :  { %s6885_s4 = sld [smem:[%s7744_s0 + %s6686_s28]]  }
  0x40   :  { %s6890_s21 = sld [smem:[%s7744_s0 + %s6687_s7]]  }
  0x41   :  { %v162_v0 = vld [vmem:[%s6730_s29] sm:$0xff]  ;;  %v6688_v3 = vmov 0.0   ;;  %vm163_vm0 = vcmask 64512   ;;  %v320_v6 = vld [vmem:[%s6740_s8 + $0x8] sm:$0xff]  ;;  %vm6689_vm1 = vmmov 0   ;;  %v321_v8 = vld [vmem:[%s6740_s8 + $0x10] sm:$0xff] }
  0x42   :  { %v161_v1 = vld [vmem:[%s6725_s25] sm:$0xff]  ;;  %4964 = vmatprep.subr.mxu0 %v6688_v3  ;;  %4969 = vmatprep.subr.mxu1 %v6688_v3  ;;  %v322_v9 = vld [vmem:[%s6740_s8 + $0x18] sm:$0xff] }
  0x43   :  { %v160_v2 = vld [vmem:[%s6705_s9] sm:$0xff]  ;;  %4965 = vmatpush3.msra.mxu0 %v162_v0  ;;  %4966 = vmatprep.mubr.msk.f32.mxu0 %vm6689_vm1, %v6688_v3 }
  0x44   :  { %v159_v4 = vld [vmem:[%s6700_s5] sm:$0xff]  ;;  %4970 = vmatpush3.msra.mxu1 %v161_v1  ;;  %4971 = vmatprep.mubr.msk.f32.mxu1 %vm6689_vm1, %v6688_v3 }
  0x45   :  { %v319_v5 = vld [vmem:[%s6740_s8] sm:$0xff]  ;;  %4967 = vmatmul.mubr.msk.f32.vlgmr.msra.gmra.mrb[0].mxu0 %vm163_vm0, %v160_v2  ;;  %4972 = vmatmul.mubr.msk.f32.vlgmr.msra.gmra.mrb[0].mxu1 %vm163_vm0, %v159_v4 }
  0x46   :  { %v5930_v7 = vpack.c.bf16 %v320_v6, %v319_v5 }
  0x47   :  { %82 = vsyncpa [#allocation4], 0  ;;  %v6690_v10 = vmov 0.0|0.0   ;;  %5006 = vmatprep.mubr.msk.f32.mxu0 %vm6689_vm1, %v6688_v3  ;;  %v5933_v11 = vpack.c.bf16 %v322_v9, %v321_v8  ;;  %v323_v12 = vld [vmem:[%s6740_s8 + $0x20] sm:$0xff]  ;;  %v324_v13 = vld [vmem:[%s6740_s8 + $0x28] sm:$0xff]  ;;  %5041 = vmatprep.mubr.msk.f32.mxu1 %vm6689_vm1, %v6688_v3  ;;  %vm738_vm2 = vcmask 1041408  }
  0x48   :  { %5929 = vmatprep.subr.bf16.mxu0 %v6690_v10  ;;  %5953 = vmatprep.subr.bf16.mxu1 %v6690_v10  ;;  %v5936_v14 = vpack.c.bf16 %v324_v13, %v323_v12  ;;  %v325_v15 = vld [vmem:[%s6740_s8 + $0x30] sm:$0xff]  ;;  %v326_v16 = vld [vmem:[%s6740_s8 + $0x38] sm:$0xff]  ;;  %v327_v18 = vld [vmem:[%s6740_s8 + $0x40] sm:$0xff]  ;;  %s7779_s0 = sld [smem:[#allocation8_spill]]  ;;  %s7780_s25 = sld [smem:[#allocation6_spill]]  ;;  %vm734_vm5 = vcmask 15360  }
  0x49   :  { %5931 = vmatpush3.bf16.msra.mxu0 %v5930_v7  ;;  %v5939_v17 = vpack.c.bf16 %v326_v16, %v325_v15  ;;  %v328_v19 = vld [vmem:[%s6740_s8 + $0x48] sm:$0xff]  ;;  %v329_v21 = vld [vmem:[%s6740_s8 + $0x50] sm:$0xff]  ;;  %v330_v22 = vld [vmem:[%s6740_s8 + $0x58] sm:$0xff]  ;;  %s7782_s29 = sld [smem:[#allocation10_spill]]  ;;  %s7792_s15 = sld [smem:[#allocation20_spill]]  ;;  %vm4101_vm8 = vcmask 7168  }
  0x4a   :  { %5932 = vmatprep.subr.bf16.mxu0 %v6690_v10  ;;  %v5942_v20 = vpack.c.bf16 %v328_v19, %v327_v18  ;;  %v5945_v23 = vpack.c.bf16 %v330_v22, %v329_v21  ;;  %v331_v24 = vld [vmem:[%s6740_s8 + $0x60] sm:$0xff]  ;;  %v332_v25 = vld [vmem:[%s6740_s8 + $0x68] sm:$0xff]  ;;  %v333_v27 = vld [vmem:[%s6740_s8 + $0x70] sm:$0xff]  ;;  %s7793_s16 = sld [smem:[#allocation18_spill]]  ;;  %s7794_s18 = sld [smem:[#allocation21_spill]] }
  0x4b   :  { %v5948_v26 = vpack.c.bf16 %v332_v25, %v331_v24  ;;  %v334_v28 = vld [vmem:[%s6740_s8 + $0x78] sm:$0xff]  ;;  %v413_v30 = vld [vmem:[%s6750_s19] sm:$0xff]  ;;  %v414_v31 = vld [vmem:[%s6750_s19 + $0x8] sm:$0xff]  ;;  %s7784_s8 = sld [smem:[#allocation9_spill]]  ;;  %s7795_s22 = sld [smem:[#allocation23_spill]] }
  0x4c   :  { %v5951_v29 = vpack.c.bf16 %v334_v28, %v333_v27  ;;  %v415_v32 = vld [vmem:[%s6750_s19 + $0x10] sm:$0xff]  ;;  %v5954_v33 = vpack.c.bf16 %v414_v31, %v413_v30  ;;  %v416_v34 = vld [vmem:[%s6750_s19 + $0x18] sm:$0xff]  ;;  %v417_v36 = vld [vmem:[%s6750_s19 + $0x20] sm:$0xff]  ;;  %s7796_s23 = sld [smem:[#allocation26_spill]]  ;;  %s7797_s26 = sld [smem:[#allocation22_spill]] }
  0x4d   :  { %5934 = vmatpush3.bf16.msra.mxu0 %v5933_v11  ;;  %v5957_v35 = vpack.c.bf16 %v416_v34, %v415_v32  ;;  %v418_v37 = vld [vmem:[%s6750_s19 + $0x28] sm:$0xff]  ;;  %v419_v39 = vld [vmem:[%s6750_s19 + $0x30] sm:$0xff]  ;;  %v420_v40 = vld [vmem:[%s6750_s19 + $0x38] sm:$0xff]  ;;  %s7798_s28 = sld [smem:[#allocation24_spill]]  ;;  %s7799_s1 = sld [smem:[#allocation25_spill]] }
  0x4e   :  { %5935 = vmatprep.subr.bf16.mxu0 %v6690_v10  ;;  %5955 = vmatpush3.bf16.msra.mxu1 %v5954_v33  ;;  %v5960_v38 = vpack.c.bf16 %v418_v37, %v417_v36  ;;  %v5963_v41 = vpack.c.bf16 %v420_v40, %v419_v39  ;;  %v421_v42 = vld [vmem:[%s6750_s19 + $0x40] sm:$0xff]  ;;  %v422_v43 = vld [vmem:[%s6750_s19 + $0x48] sm:$0xff]  ;;  %v423_v53 = vld [vmem:[%s6750_s19 + $0x50] sm:$0xff] }
  0x4f   :  { %5956 = vmatprep.subr.bf16.mxu1 %v6690_v10  ;;  %v5966_v44 = vpack.c.bf16 %v422_v43, %v421_v42  ;;  %v4182_v47 = vld [vmem:[%s6735_s3] ss:$0 sm:$0xff]  ;;  %v424_v54 = vld [vmem:[%s6750_s19 + $0x58] sm:$0xff]  ;;  %v426_v57 = vld [vmem:[%s6750_s19 + $0x68] sm:$0xff]  ;;  %s7783_s3 = sld [smem:[#allocation13_spill]] }
  0x50   :  { %v5969_v55 = vpack.c.bf16 %v424_v54, %v423_v53  ;;  %v425_v56 = vld [vmem:[%s6750_s19 + $0x60] sm:$0xff]  ;;  %v427_v59 = vld [vmem:[%s6750_s19 + $0x70] sm:$0xff]  ;;  %v428_v60 = vld [vmem:[%s6750_s19 + $0x78] sm:$0xff]  ;;  %s7786_s19 = sld [smem:[#allocation11_spill]] }
  0x51   :  { %5937 = vmatpush3.bf16.msra.mxu0 %v5936_v14  ;;  %v5972_v58 = vpack.c.bf16 %v426_v57, %v425_v56  ;;  %v5975_v61 = vpack.c.bf16 %v428_v60, %v427_v59  ;;  %v507_v62 = vld [vmem:[%s6760_s30] sm:$0xff]  ;;  %v508_v63 = vld [vmem:[%s6760_s30 + $0x8] sm:$0xff]  ;;  %v509_v1 = vld [vmem:[%s6760_s30 + $0x10] sm:$0xff] }
  0x52   :  { %5938 = vmatprep.subr.bf16.mxu0 %v6690_v10  ;;  %5958 = vmatpush3.bf16.msra.mxu1 %v5957_v35  ;;  %v5978_v0 = vpack.c.bf16 %v508_v63, %v507_v62  ;;  %v510_v2 = vld [vmem:[%s6760_s30 + $0x18] sm:$0xff]  ;;  %v511_v5 = vld [vmem:[%s6760_s30 + $0x20] sm:$0xff]  ;;  %v512_v6 = vld [vmem:[%s6760_s30 + $0x28] sm:$0xff] }
  0x53   :  { %5959 = vmatprep.subr.bf16.mxu1 %v6690_v10  ;;  %v5981_v4 = vpack.c.bf16 %v510_v2, %v509_v1  ;;  %v5984_v7 = vpack.c.bf16 %v512_v6, %v511_v5  ;;  %v513_v8 = vld [vmem:[%s6760_s30 + $0x30] sm:$0xff]  ;;  %v514_v9 = vld [vmem:[%s6760_s30 + $0x38] sm:$0xff]  ;;  %v515_v12 = vld [vmem:[%s6760_s30 + $0x40] sm:$0xff] }
  0x54   :  { %v5987_v11 = vpack.c.bf16 %v514_v9, %v513_v8  ;;  %v516_v13 = vld [vmem:[%s6760_s30 + $0x48] sm:$0xff]  ;;  %v4183_v15 = vld [vmem:[%s6745_s14] ss:$0 sm:$0xff]  ;;  %v602_v22 = vld [vmem:[%s6770_s12 + $0x10] sm:$0xff]  ;;  %s7785_s14 = sld [smem:[#allocation12_spill]] }
  0x55   :  { %5940 = vmatpush3.bf16.msra.mxu0 %v5939_v17  ;;  %v5990_v14 = vpack.c.bf16 %v516_v13, %v515_v12  ;;  %v600_v19 = vld [vmem:[%s6770_s12] sm:$0xff]  ;;  %v605_v27 = vld [vmem:[%s6770_s12 + $0x28] sm:$0xff]  ;;  %v607_v30 = vld [vmem:[%s6770_s12 + $0x38] sm:$0xff] }
  0x56   :  { %5941 = vmatprep.subr.bf16.mxu0 %v6690_v10  ;;  %5961 = vmatpush3.bf16.msra.mxu1 %v5960_v38  ;;  %v608_v32 = vld [vmem:[%s6770_s12 + $0x40] sm:$0xff]  ;;  %v609_v33 = vld [vmem:[%s6770_s12 + $0x48] sm:$0xff]  ;;  %v517_v35 = vld [vmem:[%s6760_s30 + $0x50] sm:$0xff] }
  0x57   :  { %5962 = vmatprep.subr.bf16.mxu1 %v6690_v10  ;;  %v6014_v34 = vpack.c.bf16 %v609_v33, %v608_v32  ;;  %v518_v36 = vld [vmem:[%s6760_s30 + $0x58] sm:$0xff]  ;;  %v610_v37 = vld [vmem:[%s6770_s12 + $0x50] sm:$0xff]  ;;  %v520_v42 = vld [vmem:[%s6760_s30 + $0x68] sm:$0xff] }
  0x58   :  { %v5993_v38 = vpack.c.bf16 %v518_v36, %v517_v35  ;;  %v611_v39 = vld [vmem:[%s6770_s12 + $0x58] sm:$0xff]  ;;  %v612_v43 = vld [vmem:[%s6770_s12 + $0x60] sm:$0xff] }
  0x59   :  { %5943 = vmatpush3.bf16.msra.mxu0 %v5942_v20  ;;  %v601_v20 = vld [vmem:[%s6770_s12 + $0x8] sm:$0xff]  ;;  %v6017_v40 = vpack.c.bf16 %v611_v39, %v610_v37  ;;  %v4184_v53 = vld [vmem:[%s6755_s24] ss:$0 sm:$0xff]  ;;  %s7787_s24 = sld [smem:[#allocation15_spill]] }
  0x5a   :  { %5944 = vmatprep.subr.bf16.mxu0 %v6690_v10  ;;  %5964 = vmatpush3.bf16.msra.mxu1 %v5963_v41  ;;  %v6002_v21 = vpack.c.bf16 %v601_v20, %v600_v19  ;;  %v519_v41 = vld [vmem:[%s6760_s30 + $0x60] sm:$0xff] }
  0x5b   :  { %5965 = vmatprep.subr.bf16.mxu1 %v6690_v10  ;;  %v4186_v59 = vld [vmem:[%s6775_s20] ss:$0 sm:$0xff]  ;;  %s7790_s20 = sld [smem:[#allocation17_spill]] }
  0x5c   :  { %v694_v62 = vld [vmem:[%s6715_s17] sm:$0xff]  ;;  %s7781_s17 = sld [smem:[#allocation7_spill]] }
  0x5d   :  { %5946 = vmatpush3.bf16.msra.mxu0 %v5945_v23  ;;  %v603_v23 = vld [vmem:[%s6770_s12 + $0x18] sm:$0xff]  ;;  %v4087_v9 = vsub.f32 0.0, %v694_v62 }
  0x5e   :  { %5947 = vmatprep.subr.bf16.mxu0 %v6690_v10  ;;  %5967 = vmatpush3.bf16.msra.mxu1 %v5966_v44  ;;  %v6005_v25 = vpack.c.bf16 %v603_v23, %v602_v22  ;;  %v5996_v44 = vpack.c.bf16 %v520_v42, %v519_v41 }
  0x5f   :  { %5968 = vmatprep.subr.bf16.mxu1 %v6690_v10  ;;  %v4088_v12 = vmul.f32 1.442695, %v4087_v9  ;;  %v908_v9 = vld [vmem:[%s7783_s3] sm:$0xff] }
  0x61   :  { %5949 = vmatpush3.bf16.msra.mxu0 %v5948_v26  ;;  %v604_v26 = vld [vmem:[%s6770_s12 + $0x20] sm:$0xff] }
  0x62   :  { %5950 = vmatprep.subr.bf16.mxu0 %v6690_v10  ;;  %5970 = vmatpush3.bf16.msra.mxu1 %v5969_v55  ;;  %v6008_v28 = vpack.c.bf16 %v605_v27, %v604_v26  ;;  %v723_v42 = vld [vmem:[%s7781_s17] sm:$0xff] }
  0x63   :  { %5971 = vmatprep.subr.bf16.mxu1 %v6690_v10 }
  0x65   :  { %5952 = vmatpush3.bf16.msra.mxu0 %v5951_v29  ;;  %v606_v29 = vld [vmem:[%s6770_s12 + $0x30] sm:$0xff] }
  0x66   :  { %5977 = vmatprep.subr.bf16.mxu0 %v6690_v10  ;;  %5973 = vmatpush3.bf16.msra.mxu1 %v5972_v58  ;;  %v6011_v31 = vpack.c.bf16 %v607_v30, %v606_v29  ;;  %v726_v58 = vld [vmem:[%s6780_s27] sm:$0x3]  ;;  %s7791_s27 = sld [smem:[#allocation14_spill]] }
  0x67   :  { %5974 = vmatprep.subr.bf16.mxu1 %v6690_v10 }
  0x6a   :  { %5976 = vmatpush3.bf16.msra.mxu1 %v5975_v61 }
  0x6b   :  { %6001 = vmatprep.subr.bf16.mxu1 %v6690_v10 }
 0x118   :  { %v233_v45 = vpop.f32.mrb[0].mxu0  ;;  %v306_v46 = vpop.f32.mrb[0].mxu1 }
 0x119   :  { %v307_v48 = vadd.f32 %v306_v46, %v233_v45  ;;  %v4968_v49 = vpop.f32.mrb[1].mxu0  ;;  %v4973_v50 = vpop.f32.mrb[1].mxu1  ;;  %v613_v45 = vld [vmem:[%s6770_s12 + $0x68] sm:$0xff]  ;;  %v521_v46 = vld [vmem:[%s6760_s30 + $0x70] sm:$0xff] }
 0x11a   :  { %v614_v49 = vld [vmem:[%s6770_s12 + $0x70] sm:$0xff]  ;;  %v615_v50 = vld [vmem:[%s6770_s12 + $0x78] sm:$0xff]  ;;  %s7789_s12 = sld [smem:[#allocation16_spill]] }
 0x11b   :  { %v317_v51 = vadd.f32 %v4182_v47, %v307_v48  ;;  %v522_v47 = vld [vmem:[%s6760_s30 + $0x78] sm:$0xff]  ;;  %v6020_v48 = vpack.c.bf16 %v613_v45, %v612_v43  ;;  %v813_v43 = vld [vmem:[%s7782_s29] sm:$0xff]  ;;  %s7788_s30 = sld [smem:[#allocation19_spill]] }
 0x11d   :  { %6581 = vtanh.f32 %v317_v51  ;;  %v5999_v51 = vpack.c.bf16 %v522_v47, %v521_v46 }
 0x127   :  { %v6582_v52 = vpop.eup %6581 }
 0x128   :  { %5007 = vmatmul.mubr.f32.vlgmr.msra.gmra.mrb[2].mxu0 %v6582_v52  ;;  %v6023_v52 = vpack.c.bf16 %v615_v50, %v614_v49 }
 0x129   :  { %5076 = vmatprep.mubr.msk.f32.mxu0 %vm6689_vm1, %v6688_v3  ;;  %5979 = vmatpush3.bf16.msra.mxu0 %v5978_v0 }
 0x12a   :  { %5980 = vmatprep.subr.bf16.mxu0 %v6690_v10 }
 0x12d   :  { %5982 = vmatpush3.bf16.msra.mxu0 %v5981_v4 }
 0x12e   :  { %5983 = vmatprep.subr.bf16.mxu0 %v6690_v10 }
 0x131   :  { %5985 = vmatpush3.bf16.msra.mxu0 %v5984_v7 }
 0x132   :  { %5986 = vmatprep.subr.bf16.mxu0 %v6690_v10 }
 0x135   :  { %5988 = vmatpush3.bf16.msra.mxu0 %v5987_v11 }
 0x136   :  { %5989 = vmatprep.subr.bf16.mxu0 %v6690_v10 }
 0x139   :  { %5991 = vmatpush3.bf16.msra.mxu0 %v5990_v14 }
 0x13a   :  { %5992 = vmatprep.subr.bf16.mxu0 %v6690_v10 }
 0x13d   :  { %5994 = vmatpush3.bf16.msra.mxu0 %v5993_v38 }
 0x13e   :  { %5995 = vmatprep.subr.bf16.mxu0 %v6690_v10 }
 0x141   :  { %5997 = vmatpush3.bf16.msra.mxu0 %v5996_v44  ;;  %v814_v44 = vld [vmem:[%s7782_s29 + $0x8] sm:$0xff] }
 0x142   :  { %5998 = vmatprep.subr.bf16.mxu0 %v6690_v10 }
 0x145   :  { %6000 = vmatpush3.bf16.msra.mxu0 %v5999_v51  ;;  %v815_v51 = vld [vmem:[%s7782_s29 + $0x10] sm:$0xff] }
 0x146   :  { %6049 = vmatprep.subr.bf16.mxu0 %v6690_v10 }
 0x1fb   :  { %v408_v16 = vpop.f32.mrb[2].mxu0 }
 0x1fc   :  { %v409_v17 = vadd.f32 %v4183_v15, %v408_v16  ;;  %v5008_v18 = vpop.f32.mrb[3].mxu0 }
 0x1fe   :  { %6583 = vtanh.f32 %v409_v17  ;;  %v4185_v17 = vld [vmem:[%s7779_s0] ss:$0 sm:$0xff] }
 0x208   :  { %v6584_v24 = vpop.eup %6583 }
 0x209   :  { %5042 = vmatmul.mubr.f32.vlgmr.msra.gmra.mrb[2].mxu1 %v6584_v24 }
 0x20a   :  { %6003 = vmatpush3.bf16.msra.mxu1 %v6002_v21  ;;  %5111 = vmatprep.mubr.msk.f32.mxu1 %vm6689_vm1, %v6688_v3  ;;  %v693_v21 = vld [vmem:[%s7780_s25] sm:$0xff] }
 0x20b   :  { %6004 = vmatprep.subr.bf16.mxu1 %v6690_v10 }
 0x20e   :  { %6006 = vmatpush3.bf16.msra.mxu1 %v6005_v25 }
 0x20f   :  { %6007 = vmatprep.subr.bf16.mxu1 %v6690_v10 }
 0x212   :  { %6009 = vmatpush3.bf16.msra.mxu1 %v6008_v28 }
 0x213   :  { %6010 = vmatprep.subr.bf16.mxu1 %v6690_v10 }
 0x216   :  { %6012 = vmatpush3.bf16.msra.mxu1 %v6011_v31 }
 0x217   :  { %6013 = vmatprep.subr.bf16.mxu1 %v6690_v10 }
 0x21a   :  { %6015 = vmatpush3.bf16.msra.mxu1 %v6014_v34 }
 0x21b   :  { %6016 = vmatprep.subr.bf16.mxu1 %v6690_v10 }
 0x21e   :  { %6018 = vmatpush3.bf16.msra.mxu1 %v6017_v40 }
 0x21f   :  { %6019 = vmatprep.subr.bf16.mxu1 %v6690_v10 }
 0x222   :  { %6021 = vmatpush3.bf16.msra.mxu1 %v6020_v48  ;;  %v6026_v48 = vpack.c.bf16 %v814_v44, %v813_v43  ;;  %v1076_v43 = vld [vmem:[%s7787_s24 + $0x8] sm:$0xff] }
 0x223   :  { %6022 = vmatprep.subr.bf16.mxu1 %v6690_v10 }
 0x226   :  { %6024 = vmatpush3.bf16.msra.mxu1 %v6023_v52  ;;  %v816_v52 = vld [vmem:[%s7782_s29 + $0x18] sm:$0xff] }
 0x227   :  { %5114 = vmatprep.subr.mxu1 %v6688_v3 }
 0x2dc   :  { %v502_v54 = vpop.f32.mrb[2].mxu1 }
 0x2dd   :  { %v503_v55 = vadd.f32 %v4184_v53, %v502_v54  ;;  %v5043_v56 = vpop.f32.mrb[3].mxu1  ;;  %v6029_v53 = vpack.c.bf16 %v816_v52, %v815_v51  ;;  %v817_v54 = vld [vmem:[%s7782_s29 + $0x20] sm:$0xff]  ;;  %v1077_v51 = vld [vmem:[%s7787_s24 + $0x10] sm:$0xff]  ;;  %v1078_v52 = vld [vmem:[%s7787_s24 + $0x18] sm:$0xff] }
 0x2df   :  { %6585 = vtanh.f32 %v503_v55  ;;  %v818_v55 = vld [vmem:[%s7782_s29 + $0x28] sm:$0xff] }
 0x2e0   :  { %v6032_v56 = vpack.c.bf16 %v818_v55, %v817_v54  ;;  %v6077_v55 = vpack.c.bf16 %v1078_v52, %v1077_v51  ;;  %v1553_v51 = vld [vmem:[%s7795_s22 + $0x60] sm:$0xff]  ;;  %v1554_v52 = vld [vmem:[%s7795_s22 + $0x68] sm:$0xff] }
 0x2e9   :  { %v6586_v57 = vpop.eup %6585 }
 0x2ea   :  { %5077 = vmatmul.mubr.f32.vlgmr.msra.gmra.mrb[4].mxu0 %v6586_v57  ;;  %5112 = vmatmul.mubr.f32.vlgmr.msra.gmra.mrb[4].mxu1 %v6586_v57  ;;  %v819_v57 = vld [vmem:[%s7782_s29 + $0x30] sm:$0xff] }
 0x2eb   :  { %5116 = vmatprep.mubr.msk.f32.mxu1 %vm6689_vm1, %v6688_v3  ;;  %5186 = vmatprep.mubr.msk.f32.mxu0 %vm6689_vm1, %v6688_v3 }
 0x2ec   :  { %5115 = vmatpush3.msk.msra.mxu1 %vm738_vm2, %v726_v58  ;;  %v820_v58 = vld [vmem:[%s7782_s29 + $0x38] sm:$0xff] }
 0x2ed   :  { %6025 = vmatprep.subr.bf16.mxu1 %v6690_v10 }
 0x3bd   :  { %v596_v60 = vpop.f32.mrb[4].mxu0  ;;  %v689_v61 = vpop.f32.mrb[4].mxu1 }
 0x3be   :  { %v690_v63 = vadd.f32 %v4186_v59, %v689_v61  ;;  %v5078_v0 = vpop.f32.mrb[5].mxu0  ;;  %v5113_v1 = vpop.f32.mrb[5].mxu1  ;;  %v597_v24 = vadd.f32 %v4185_v17, %v596_v60  ;;  %v6035_v59 = vpack.c.bf16 %v820_v58, %v819_v57  ;;  %v821_v60 = vld [vmem:[%s7782_s29 + $0x40] sm:$0xff]  ;;  %v822_v61 = vld [vmem:[%s7782_s29 + $0x48] sm:$0xff] }
 0x3bf   :  { %v824_v0 = vld [vmem:[%s7782_s29 + $0x58] sm:$0xff]  ;;  %v913_v17 = vld [vmem:[%s7783_s3 + $0x28] sm:$0xff] }
 0x3c0   :  { %v695_v2 = vsub.f32 %v690_v63, %v694_v62  ;;  %v709_v23 = vmin.f32 %v690_v63, %v694_v62  ;;  %v823_v63 = vld [vmem:[%s7782_s29 + $0x50] sm:$0xff]  ;;  %v1080_v57 = vld [vmem:[%s7787_s24 + $0x28] sm:$0xff] }
 0x3c1   :  { %v6041_v1 = vpack.c.bf16 %v824_v0, %v823_v63  ;;  %v1084_v63 = vld [vmem:[%s7787_s24 + $0x48] sm:$0xff] }
 0x3c2   :  { %v696_v4 = vand.u32 2147483647, %v695_v2  ;;  %vm702_vm3 = vcmp.ge.f32.partialorder %v695_v2, 0.0  ;;  %v825_v2 = vld [vmem:[%s7782_s29 + $0x60] sm:$0xff] }
 0x3c4   :  { %v697_v5 = vsub.f32 0.0, %v696_v4  ;;  %v826_v4 = vld [vmem:[%s7782_s29 + $0x68] sm:$0xff] }
 0x3c6   :  { %v698_v6 = vmul.f32 1.442695, %v697_v5  ;;  %v6044_v5 = vpack.c.bf16 %v826_v4, %v825_v2  ;;  %v1086_v2 = vld [vmem:[%s7787_s24 + $0x58] sm:$0xff] }
 0x3c8   :  { %6587 = vpow2.f32 %v698_v6  ;;  %v827_v6 = vld [vmem:[%s7782_s29 + $0x70] sm:$0xff] }
 0x3d2   :  { %v6588_v7 = vpop.eup %6587 }
 0x3d3   :  { %v700_v8 = vadd.f32 1.0, %v6588_v7  ;;  %v713_v11 = vmul.f32 -0.5, %v6588_v7  ;;  %v716_v14 = vand.u32 2147483647, %v6588_v7 }
 0x3d5   :  { %6589 = vrcp.f32 %v700_v8  ;;  %v714_v13 = vadd.f32 1.0, %v713_v11  ;;  %vm717_vm4 = vcmp.lt.f32.partialorder %v716_v14, 0.0004427343  ;;  %v909_v11 = vld [vmem:[%s7783_s3 + $0x8] sm:$0xff]  ;;  %v911_v14 = vld [vmem:[%s7783_s3 + $0x18] sm:$0xff] }
 0x3d6   :  { %6591 = vlog2.f32 %v700_v8 }
 0x3d7   :  { %6593 = vpow2.f32 %v4088_v12  ;;  %v715_v20 = vmul.f32 %v6588_v7, %v714_v13  ;;  %v828_v7 = vld [vmem:[%s7782_s29 + $0x78] sm:$0xff]  ;;  %v910_v12 = vld [vmem:[%s7783_s3 + $0x10] sm:$0xff]  ;;  %v6050_v13 = vpack.c.bf16 %v909_v11, %v908_v9 }
 0x3d8   :  { %v6047_v8 = vpack.c.bf16 %v828_v7, %v827_v6  ;;  %v1088_v6 = vld [vmem:[%s7787_s24 + $0x68] sm:$0xff]  ;;  %v1090_v9 = vld [vmem:[%s7787_s24 + $0x78] sm:$0xff] }
 0x3d9   :  { %6051 = vmatpush3.bf16.msra.mxu0 %v6050_v13 }
 0x3da   :  { %6052 = vmatprep.subr.bf16.mxu0 %v6690_v10 }
 0x3df   :  { %v6590_v15 = vpop.eup %6589 }
 0x3e0   :  { %v6592_v16 = vpop.eup %6591  ;;  %v703_v18 = vsub.f32 1.0, %v6590_v15 }
 0x3e1   :  { %v712_v19 = vmul.f32 0.6931472, %v6592_v16  ;;  %v6594_v37 = vpop.eup %6593  ;;  %v912_v16 = vld [vmem:[%s7783_s3 + $0x20] sm:$0xff] }
 0x3e2   :  { %v704_v22 = vsel %vm702_vm3, %v6590_v15, %v703_v18  ;;  %v6053_v15 = vpack.c.bf16 %v911_v14, %v910_v12  ;;  %v6056_v18 = vpack.c.bf16 %v913_v17, %v912_v16  ;;  %v1170_v12 = vld [vmem:[%s7788_s30] sm:$0xff] }
 0x3e3   :  { %v705_v25 = vsub.f32 1.0, %v704_v22  ;;  %v718_v26 = vsel %vm717_vm4, %v715_v20, %v712_v19  ;;  %v707_v29 = vmul.f32 %v704_v22, %v693_v21  ;;  %v914_v19 = vld [vmem:[%s7783_s3 + $0x30] sm:$0xff]  ;;  %v915_v20 = vld [vmem:[%s7783_s3 + $0x38] sm:$0xff]  ;;  %v916_v22 = vld [vmem:[%s7783_s3 + $0x40] sm:$0xff] }
 0x3e4   :  { %v719_v27 = vsub.f32 %v709_v23, %v718_v26  ;;  %6054 = vmatpush3.bf16.msra.mxu0 %v6053_v15  ;;  %v917_v23 = vld [vmem:[%s7783_s3 + $0x48] sm:$0xff]  ;;  %v919_v26 = vld [vmem:[%s7783_s3 + $0x58] sm:$0xff]  ;;  %v4194_v16 = vld [vmem:[%s7789_s12] ss:$0 sm:$0xff] }
 0x3e5   :  { %v706_v28 = vmul.f32 %v705_v25, %v597_v24  ;;  %6055 = vmatprep.subr.bf16.mxu0 %v6690_v10  ;;  %v6062_v24 = vpack.c.bf16 %v917_v23, %v916_v22  ;;  %v918_v25 = vld [vmem:[%s7783_s3 + $0x50] sm:$0xff]  ;;  %v1318_v23 = vld [vmem:[%s7792_s15] sm:$0xff] }
 0x3e6   :  { %v720_v30 = vmul.f32 0.5, %v719_v27  ;;  %v4092_v31 = vsub.f32 %v719_v27, %v694_v62  ;;  %v4085_v36 = vadd.f32 1.0, %v719_v27  ;;  %v6065_v27 = vpack.c.bf16 %v919_v26, %v918_v25  ;;  %v1459_v25 = vld [vmem:[%s7794_s18] sm:$0xff] }
 0x3e7   :  { %v708_v32 = vadd.f32 %v707_v29, %v706_v28  ;;  %v920_v28 = vld [vmem:[%s7783_s3 + $0x60] sm:$0xff]  ;;  %v921_v29 = vld [vmem:[%s7783_s3 + $0x68] sm:$0xff] }
 0x3e8   :  { %v721_v33 = vmul.f32 1.442695, %v720_v30  ;;  %v4093_v34 = vmul.f32 1.442695, %v4092_v31  ;;  %v4086_v39 = vsub.f32 %v4085_v36, %v694_v62  ;;  %v6038_v62 = vpack.c.bf16 %v822_v61, %v821_v60  ;;  %6057 = vmatpush3.bf16.msra.mxu0 %v6056_v18  ;;  %v4187_v31 = vld [vmem:[%s7784_s8] ss:$0 sm:$0xff] }
 0x3e9   :  { %v4083_v35 = vsub.f32 %v708_v32, %v693_v21  ;;  %v6059_v21 = vpack.c.bf16 %v915_v20, %v914_v19  ;;  %6058 = vmatprep.subr.bf16.mxu0 %v6690_v10  ;;  %v6068_v30 = vpack.c.bf16 %v921_v29, %v920_v28  ;;  %v907_v36 = vld [vmem:[%s7785_s14] sm:$0x3]  ;;  %v1082_v60 = vld [vmem:[%s7787_s24 + $0x38] sm:$0xff]  ;;  %v1543_v29 = vld [vmem:[%s7795_s22 + $0x10] sm:$0xff] }
 0x3ea   :  { %6595 = vpow2.f32 %v721_v33  ;;  %v1169_v20 = vld [vmem:[%s7790_s20] sm:$0xff] }
 0x3eb   :  { %6597 = vpow2.f32 %v4093_v34  ;;  %v4084_v38 = vmul.f32 %v4083_v35, %v4083_v35  ;;  %v1541_v26 = vld [vmem:[%s7795_s22] sm:$0xff] }
 0x3ec   :  { %6060 = vmatpush3.bf16.msra.mxu0 %v6059_v21  ;;  %v4193_v21 = vld [vmem:[%s7791_s27] ss:$0 sm:$0xff] }
 0x3ed   :  { %v4090_v40 = vmul.f32 %v6594_v37, %v4084_v38  ;;  %6061 = vmatprep.subr.bf16.mxu0 %v6690_v10  ;;  %v922_v37 = vld [vmem:[%s7783_s3 + $0x70] sm:$0xff]  ;;  %v923_v38 = vld [vmem:[%s7783_s3 + $0x78] sm:$0xff] }
 0x3ef   :  { %v7024_v41 = vsub.f32 %v4086_v39, %v4090_v40  ;;  %v6071_v39 = vpack.c.bf16 %v923_v38, %v922_v37  ;;  %v4190_v40 = vld [vmem:[%s7786_s19] ss:$0 sm:$0xff]  ;;  %v1547_v37 = vld [vmem:[%s7795_s22 + $0x30] sm:$0xff]  ;;  %v1548_v38 = vld [vmem:[%s7795_s22 + $0x38] sm:$0xff] }
 0x3f0   :  { %6063 = vmatpush3.bf16.msra.mxu0 %v6062_v24  ;;  %v1317_v24 = vld [vmem:[%s7793_s16] sm:$0xff] }
 0x3f1   :  { %6064 = vmatprep.subr.bf16.mxu0 %v6690_v10 }
 0x3f4   :  { %v6596_v45 = vpop.eup %6595  ;;  %6066 = vmatpush3.bf16.msra.mxu0 %v6065_v27  ;;  %v1542_v27 = vld [vmem:[%s7795_s22 + $0x8] sm:$0xff] }
 0x3f5   :  { %v7029_v46 = vpop.eup %6597  ;;  %v724_v47 = vmul.f32 %v6596_v45, %v723_v42  ;;  %6067 = vmatprep.subr.bf16.mxu0 %v6690_v10  ;;  %v1075_v42 = vld [vmem:[%s7787_s24] sm:$0xff]  ;;  %v6098_v28 = vpack.c.bf16 %v1542_v27, %v1541_v26 }
 0x3f6   :  { %v4095_v49 = vsub.f32 %v7024_v41, %v7029_v46  ;;  %v1734_v27 = vld [vmem:[%s6880_s6 + $0x20] sm:$0xff] }
 0x3f7   :  { %v7033_v50 = vadd.f32 %v724_v47, %v708_v32 }
 0x3f8   :  { %6069 = vmatpush3.bf16.msra.mxu0 %v6068_v30  ;;  %v1544_v30 = vld [vmem:[%s7795_s22 + $0x18] sm:$0xff] }
 0x3f9   :  { %5117 = vmatmul.mubr.msk.f32.vlgmr.msra.gmra.mrb[6].mxu1 %vm734_vm5, %v7033_v50  ;;  %6070 = vmatprep.subr.bf16.mxu0 %v6690_v10 }
 0x3fa   :  { %6027 = vmatpush3.bf16.msra.mxu1 %v6026_v48  ;;  %5151 = vmatprep.mubr.msk.f32.mxu1 %vm6689_vm1, %v6688_v3  ;;  %v6074_v48 = vpack.c.bf16 %v1076_v43, %v1075_v42  ;;  %v1550_v42 = vld [vmem:[%s7795_s22 + $0x48] sm:$0xff] }
 0x3fb   :  { %6028 = vmatprep.subr.bf16.mxu1 %v6690_v10 }
 0x3fc   :  { %6072 = vmatpush3.bf16.msra.mxu0 %v6071_v39  ;;  %v6107_v39 = vpack.c.bf16 %v1548_v38, %v1547_v37  ;;  %v1740_v37 = vld [vmem:[%s6880_s6 + $0x50] sm:$0xff]  ;;  %v1741_v38 = vld [vmem:[%s6880_s6 + $0x58] sm:$0xff] }
 0x3fd   :  { %6073 = vmatprep.subr.bf16.mxu0 %v6690_v10 }
 0x3fe   :  { %6030 = vmatpush3.bf16.msra.mxu1 %v6029_v53 }
 0x3ff   :  { %6031 = vmatprep.subr.bf16.mxu1 %v6690_v10 }
 0x402   :  { %6033 = vmatpush3.bf16.msra.mxu1 %v6032_v56  ;;  %v1079_v56 = vld [vmem:[%s7787_s24 + $0x20] sm:$0xff] }
 0x403   :  { %6034 = vmatprep.subr.bf16.mxu1 %v6690_v10  ;;  %v6080_v58 = vpack.c.bf16 %v1080_v57, %v1079_v56  ;;  %v1635_v57 = vld [vmem:[%s7796_s23] sm:$0xff] }
 0x406   :  { %6036 = vmatpush3.bf16.msra.mxu1 %v6035_v59  ;;  %v1081_v59 = vld [vmem:[%s7787_s24 + $0x30] sm:$0xff] }
 0x407   :  { %6037 = vmatprep.subr.bf16.mxu1 %v6690_v10  ;;  %v6083_v61 = vpack.c.bf16 %v1082_v60, %v1081_v59  ;;  %v1637_v60 = vld [vmem:[%s7796_s23 + $0x10] sm:$0xff] }
 0x40a   :  { %6039 = vmatpush3.bf16.msra.mxu1 %v6038_v62  ;;  %v1083_v62 = vld [vmem:[%s7787_s24 + $0x40] sm:$0xff] }
 0x40b   :  { %6040 = vmatprep.subr.bf16.mxu1 %v6690_v10  ;;  %v6086_v0 = vpack.c.bf16 %v1084_v63, %v1083_v62  ;;  %v1639_v63 = vld [vmem:[%s7796_s23 + $0x20] sm:$0xff] }
 0x40e   :  { %6042 = vmatpush3.bf16.msra.mxu1 %v6041_v1  ;;  %v1085_v1 = vld [vmem:[%s7787_s24 + $0x50] sm:$0xff] }
 0x40f   :  { %6043 = vmatprep.subr.bf16.mxu1 %v6690_v10  ;;  %v6089_v4 = vpack.c.bf16 %v1086_v2, %v1085_v1  ;;  %v1641_v2 = vld [vmem:[%s7796_s23 + $0x30] sm:$0xff] }
 0x412   :  { %6045 = vmatpush3.bf16.msra.mxu1 %v6044_v5  ;;  %v1087_v5 = vld [vmem:[%s7787_s24 + $0x60] sm:$0xff] }
 0x413   :  { %6046 = vmatprep.subr.bf16.mxu1 %v6690_v10  ;;  %v6092_v7 = vpack.c.bf16 %v1088_v6, %v1087_v5  ;;  %v1643_v6 = vld [vmem:[%s7796_s23 + $0x40] sm:$0xff] }
 0x416   :  { %6048 = vmatpush3.bf16.msra.mxu1 %v6047_v8  ;;  %v1089_v8 = vld [vmem:[%s7787_s24 + $0x70] sm:$0xff] }
 0x417   :  { %5189 = vmatprep.subr.mxu1 %v6688_v3  ;;  %v6095_v11 = vpack.c.bf16 %v1090_v9, %v1089_v8  ;;  %v1645_v9 = vld [vmem:[%s7796_s23 + $0x50] sm:$0xff] }
 0x4cc   :  { %v808_v32 = vpop.f32.mrb[6].mxu1 }
 0x4cd   :  { %v809_v33 = vadd.f32 %v4187_v31, %v808_v32  ;;  %v5118_v34 = vpop.f32.mrb[7].mxu1 }
 0x4ce   :  { %v1545_v34 = vld [vmem:[%s7795_s22 + $0x20] sm:$0xff] }
 0x4cf   :  { %v812_v35 = vmax.f32 %v809_v33, 0.0  ;;  %v6101_v33 = vpack.c.bf16 %v1544_v30, %v1543_v29  ;;  %v1736_v30 = vld [vmem:[%s6880_s6 + $0x30] sm:$0xff] }
 0x4d1   :  { %5152 = vmatmul.mubr.f32.vlgmr.msra.gmra.mrb[8].mxu1 %v812_v35  ;;  %v1546_v35 = vld [vmem:[%s7795_s22 + $0x28] sm:$0xff] }
 0x4d2   :  { %5190 = vmatpush3.msk.msra.mxu1 %vm738_vm2, %v907_v36  ;;  %5191 = vmatprep.mubr.msk.f32.mxu1 %vm6689_vm1, %v6688_v3  ;;  %v6104_v36 = vpack.c.bf16 %v1546_v35, %v1545_v34  ;;  %v1738_v34 = vld [vmem:[%s6880_s6 + $0x40] sm:$0xff]  ;;  %v1739_v35 = vld [vmem:[%s6880_s6 + $0x48] sm:$0xff] }
 0x4d3   :  { %5229 = vmatprep.subr.mxu1 %v6688_v3 }
 0x4d5   :  { %5192 = vmatmul.mubr.msk.f32.vlgmr.msra.gmra.mrb[10].mxu1 %vm734_vm5, %v7033_v50 }
 0x4d6   :  { %5231 = vmatprep.mubr.msk.f32.mxu1 %vm6689_vm1, %v6688_v3  ;;  %5230 = vmatpush3.msra.mxu1 %v1170_v12 }
 0x4d7   :  { %5234 = vmatprep.subr.mxu1 %v6688_v3 }
 0x5a4   :  { %v902_v44 = vpop.f32.mrb[8].mxu1 }
 0x5a5   :  { %v903_v45 = vadd.f32 %v4190_v40, %v902_v44  ;;  %v5153_v47 = vpop.f32.mrb[9].mxu1  ;;  %v1549_v40 = vld [vmem:[%s7795_s22 + $0x40] sm:$0xff] }
 0x5a6   :  { %v1551_v47 = vld [vmem:[%s7795_s22 + $0x50] sm:$0xff] }
 0x5a7   :  { %v906_v50 = vmax.f32 %v903_v45, 0.0  ;;  %v6110_v45 = vpack.c.bf16 %v1550_v42, %v1549_v40  ;;  %v1742_v40 = vld [vmem:[%s6880_s6 + $0x60] sm:$0xff]  ;;  %v1743_v42 = vld [vmem:[%s6880_s6 + $0x68] sm:$0xff] }
 0x5a8   :  { %v1063_v53 = vpop.f32.mrb[10].mxu1 }
 0x5a9   :  { %5187 = vmatmul.mubr.f32.vlgmr.msra.gmra.mrb[6].mxu0 %v906_v50  ;;  %v5193_v54 = vpop.f32.mrb[11].mxu1 }
 0x5aa   :  { %6075 = vmatpush3.bf16.msra.mxu0 %v6074_v48  ;;  %5226 = vmatprep.mubr.msk.f32.mxu0 %vm6689_vm1, %v6688_v3  ;;  %v1552_v48 = vld [vmem:[%s7795_s22 + $0x58] sm:$0xff]  ;;  %v1555_v54 = vld [vmem:[%s7795_s22 + $0x70] sm:$0xff] }
 0x5ab   :  { %6076 = vmatprep.subr.bf16.mxu0 %v6690_v10 }
 0x5ae   :  { %6078 = vmatpush3.bf16.msra.mxu0 %v6077_v55  ;;  %v1556_v55 = vld [vmem:[%s7795_s22 + $0x78] sm:$0xff] }
 0x5af   :  { %6079 = vmatprep.subr.bf16.mxu0 %v6690_v10  ;;  %v6119_v56 = vpack.c.bf16 %v1556_v55, %v1555_v54 }
 0x5b2   :  { %6081 = vmatpush3.bf16.msra.mxu0 %v6080_v58  ;;  %v1636_v58 = vld [vmem:[%s7796_s23 + $0x8] sm:$0xff] }
 0x5b3   :  { %6082 = vmatprep.subr.bf16.mxu0 %v6690_v10  ;;  %v6122_v59 = vpack.c.bf16 %v1636_v58, %v1635_v57  ;;  %v4202_v58 = vld [vmem:[%s6875_s13] ss:$0 sm:$0xff] }
 0x5b6   :  { %6084 = vmatpush3.bf16.msra.mxu0 %v6083_v61  ;;  %v1638_v61 = vld [vmem:[%s7796_s23 + $0x18] sm:$0xff] }
 0x5b7   :  { %6085 = vmatprep.subr.bf16.mxu0 %v6690_v10  ;;  %v6125_v62 = vpack.c.bf16 %v1638_v61, %v1637_v60 }
 0x5ba   :  { %6087 = vmatpush3.bf16.msra.mxu0 %v6086_v0  ;;  %v1640_v0 = vld [vmem:[%s7796_s23 + $0x28] sm:$0xff] }
 0x5bb   :  { %6088 = vmatprep.subr.bf16.mxu0 %v6690_v10  ;;  %v6128_v1 = vpack.c.bf16 %v1640_v0, %v1639_v63 }
 0x5be   :  { %6090 = vmatpush3.bf16.msra.mxu0 %v6089_v4  ;;  %v1642_v4 = vld [vmem:[%s7796_s23 + $0x38] sm:$0xff] }
 0x5bf   :  { %6091 = vmatprep.subr.bf16.mxu0 %v6690_v10  ;;  %v6131_v5 = vpack.c.bf16 %v1642_v4, %v1641_v2  ;;  %v4205_v4 = vld [vmem:[%s7794_s18 + $0x8] sm:$0xff] }
 0x5c2   :  { %6093 = vmatpush3.bf16.msra.mxu0 %v6092_v7  ;;  %v1644_v7 = vld [vmem:[%s7796_s23 + $0x48] sm:$0xff] }
 0x5c3   :  { %6094 = vmatprep.subr.bf16.mxu0 %v6690_v10  ;;  %v6134_v8 = vpack.c.bf16 %v1644_v7, %v1643_v6  ;;  %v4210_v6 = vld [vmem:[%s7795_s22 + $0x88] sm:$0xff]  ;;  %v4211_v7 = vld [vmem:[%s7795_s22 + $0x90] sm:$0xff] }
 0x5c6   :  { %6096 = vmatpush3.bf16.msra.mxu0 %v6095_v11  ;;  %v1646_v11 = vld [vmem:[%s7796_s23 + $0x58] sm:$0xff] }
 0x5c7   :  { %6121 = vmatprep.subr.bf16.mxu0 %v6690_v10  ;;  %v6137_v12 = vpack.c.bf16 %v1646_v11, %v1645_v9  ;;  %v4212_v9 = vld [vmem:[%s7795_s22 + $0x98] sm:$0xff] }
 0x5c8   :  { %v6173_v11 = vpack.c.bf16 %v4212_v9, %v4211_v7 }
 0x5c9   :  { %5227 = vmatmul.mubr.f32.vlgmr.msra.gmra.mrb[8].mxu0 %v906_v50  ;;  %v6113_v50 = vpack.c.bf16 %v1552_v48, %v1551_v47  ;;  %v1650_v47 = vld [vmem:[%s7796_s23 + $0x78] sm:$0xff]  ;;  %v1744_v48 = vld [vmem:[%s6880_s6 + $0x70] sm:$0xff] }
 0x5ca   :  { %5321 = vmatprep.mubr.msk.f32.mxu0 %vm6689_vm1, %v6688_v3  ;;  %6123 = vmatpush3.bf16.msra.mxu0 %v6122_v59 }
 0x5cb   :  { %6124 = vmatprep.subr.bf16.mxu0 %v6690_v10 }
 0x5ce   :  { %6126 = vmatpush3.bf16.msra.mxu0 %v6125_v62 }
 0x5cf   :  { %6127 = vmatprep.subr.bf16.mxu0 %v6690_v10 }
 0x5d2   :  { %6129 = vmatpush3.bf16.msra.mxu0 %v6128_v1 }
 0x5d3   :  { %6130 = vmatprep.subr.bf16.mxu0 %v6690_v10 }
 0x5d6   :  { %6132 = vmatpush3.bf16.msra.mxu0 %v6131_v5  ;;  %v4209_v5 = vld [vmem:[%s7795_s22 + $0x80] sm:$0xff] }
 0x5d7   :  { %6133 = vmatprep.subr.bf16.mxu0 %v6690_v10 }
 0x5da   :  { %6135 = vmatpush3.bf16.msra.mxu0 %v6134_v8  ;;  %v6170_v8 = vpack.c.bf16 %v4210_v6, %v4209_v5 }
 0x5db   :  { %6136 = vmatprep.subr.bf16.mxu0 %v6690_v10 }
 0x5de   :  { %6138 = vmatpush3.bf16.msra.mxu0 %v6137_v12  ;;  %v4213_v12 = vld [vmem:[%s7795_s22 + $0xa0] sm:$0xff] }
 0x5df   :  { %6139 = vmatprep.subr.bf16.mxu0 %v6690_v10 }
 0x67c   :  { %v990_v13 = vpop.f32.mrb[6].mxu0 }
 0x67d   :  { %v1064_v14 = vadd.f32 %v1063_v53, %v990_v13  ;;  %v5188_v15 = vpop.f32.mrb[7].mxu0  ;;  %v6116_v53 = vpack.c.bf16 %v1554_v52, %v1553_v51  ;;  %v1647_v13 = vld [vmem:[%s7796_s23 + $0x60] sm:$0xff]  ;;  %v1745_v51 = vld [vmem:[%s6880_s6 + $0x78] sm:$0xff] }
 0x67e   :  { %v6167_v52 = vpack.c.bf16 %v1745_v51, %v1744_v48  ;;  %v4232_v51 = vld [vmem:[%s7796_s23 + $0xa8] sm:$0xff] }
 0x67f   :  { %v1074_v22 = vadd.f32 %v4193_v21, %v1064_v14  ;;  %v1648_v14 = vld [vmem:[%s7796_s23 + $0x68] sm:$0xff] }
 0x680   :  { %v6140_v15 = vpack.c.bf16 %v1648_v14, %v1647_v13  ;;  %v4214_v13 = vld [vmem:[%s7795_s22 + $0xa8] sm:$0xff] }
 0x681   :  { %v6176_v14 = vpack.c.bf16 %v4214_v13, %v4213_v12  ;;  %v4248_v12 = vld [vmem:[%s6880_s6 + $0x98] sm:$0xff] }
 0x682   :  { %6141 = vmatpush3.bf16.msra.mxu0 %v6140_v15  ;;  %v4215_v15 = vld [vmem:[%s7795_s22 + $0xb0] sm:$0xff] }
 0x683   :  { %6142 = vmatprep.subr.bf16.mxu0 %v6690_v10 }
 0x69c   :  { %v1164_v17 = vpop.f32.mrb[8].mxu0 }
 0x69d   :  { %v1165_v18 = vadd.f32 %v4194_v16, %v1164_v17  ;;  %v5228_v19 = vpop.f32.mrb[9].mxu0  ;;  %v4199_v16 = vld [vmem:[%s7797_s26] ss:$0 sm:$0xff] }
 0x69e   :  { %v1730_v17 = vld [vmem:[%s6880_s6] sm:$0xff] }
 0x69f   :  { %5232 = vmatmul.mubr.msk.f32.vlgmr.msra.gmra.mrb[12].mxu1 %vm163_vm0, %v1165_v18 }
 0x6a0   :  { %5235 = vmatpush3.msra.mxu1 %v1169_v20  ;;  %5236 = vmatprep.mubr.msk.f32.mxu1 %vm6689_vm1, %v6688_v3 }
 0x6a1   :  { %5239 = vmatprep.subr.mxu1 %v6688_v3 }
 0x6a7   :  { %5237 = vmatmul.mubr.msk.f32.vlgmr.msra.gmra.mrb[12].mxu1 %vm163_vm0, %v1074_v22 }
 0x6a8   :  { %5240 = vmatpush3.msra.mxu1 %v1318_v23  ;;  %5241 = vmatprep.mubr.msk.f32.mxu1 %vm6689_vm1, %v6688_v3 }
 0x6a9   :  { %5244 = vmatprep.subr.mxu1 %v6688_v3 }
 0x6ab   :  { %5242 = vmatmul.mubr.msk.f32.vlgmr.msra.gmra.mrb[14].mxu1 %vm163_vm0, %v1165_v18  ;;  %v1731_v18 = vld [vmem:[%s6880_s6 + $0x8] sm:$0xff] }
 0x6ac   :  { %5245 = vmatpush3.msra.mxu1 %v1317_v24  ;;  %5246 = vmatprep.mubr.msk.f32.mxu1 %vm6689_vm1, %v6688_v3  ;;  %v1732_v24 = vld [vmem:[%s6880_s6 + $0x10] sm:$0xff] }
 0x6ad   :  { %5249 = vmatprep.subr.mxu1 %v6688_v3 }
 0x6b3   :  { %5247 = vmatmul.mubr.msk.f32.vlgmr.msra.gmra.mrb[14].mxu1 %vm163_vm0, %v1074_v22  ;;  %v6146_v22 = vpack.c.bf16 %v1731_v18, %v1730_v17  ;;  %v4217_v18 = vld [vmem:[%s7795_s22 + $0xc0] sm:$0xff] }
 0x6b4   :  { %5250 = vmatpush3.msra.mxu1 %v1459_v25  ;;  %5251 = vmatprep.mubr.msk.f32.mxu1 %vm6689_vm1, %v6688_v3  ;;  %v1733_v25 = vld [vmem:[%s6880_s6 + $0x18] sm:$0xff] }
 0x6b5   :  { %6097 = vmatprep.subr.bf16.mxu1 %v6690_v10  ;;  %v6149_v26 = vpack.c.bf16 %v1733_v25, %v1732_v24  ;;  %v4221_v24 = vld [vmem:[%s7795_s22 + $0xe0] sm:$0xff]  ;;  %v4222_v25 = vld [vmem:[%s7795_s22 + $0xe8] sm:$0xff] }
 0x77a   :  { %v7152_v31 = vpop.f32.mrb[12].mxu1 }
 0x77b   :  { %v5238_v32 = vpop.f32.mrb[13].mxu1  ;;  %5252 = vmatmul.mubr.msk.f32.vlgmr.msra.gmra.mrb[16].mxu1 %vm163_vm0, %v7152_v31 }
 0x77c   :  { %6099 = vmatpush3.bf16.msra.mxu1 %v6098_v28  ;;  %5286 = vmatprep.mubr.msk.f32.mxu1 %vm6689_vm1, %v6688_v3  ;;  %v1735_v28 = vld [vmem:[%s6880_s6 + $0x28] sm:$0xff]  ;;  %v1737_v32 = vld [vmem:[%s6880_s6 + $0x38] sm:$0xff] }
 0x77d   :  { %6100 = vmatprep.subr.bf16.mxu1 %v6690_v10  ;;  %v6152_v29 = vpack.c.bf16 %v1735_v28, %v1734_v27  ;;  %v7262_v27 = vld [vmem:[%s7799_s1] ss:$0 sm:$0xff] }
 0x780   :  { %6102 = vmatpush3.bf16.msra.mxu1 %v6101_v33  ;;  %v6155_v33 = vpack.c.bf16 %v1737_v32, %v1736_v30 }
 0x781   :  { %6103 = vmatprep.subr.bf16.mxu1 %v6690_v10 }
 0x784   :  { %6105 = vmatpush3.bf16.msra.mxu1 %v6104_v36  ;;  %v6158_v36 = vpack.c.bf16 %v1739_v35, %v1738_v34 }
 0x785   :  { %6106 = vmatprep.subr.bf16.mxu1 %v6690_v10 }
 0x786   :  { %v7167_v43 = vpop.f32.mrb[14].mxu1 }
 0x787   :  { %v5248_v44 = vpop.f32.mrb[15].mxu1 }
 0x788   :  { %6108 = vmatpush3.bf16.msra.mxu1 %v6107_v39  ;;  %v6161_v39 = vpack.c.bf16 %v1741_v38, %v1740_v37  ;;  %v6164_v44 = vpack.c.bf16 %v1743_v42, %v1742_v40  ;;  %v4223_v38 = vld [vmem:[%s7795_s22 + $0xf0] sm:$0xff]  ;;  %v4227_v42 = vld [vmem:[%s7796_s23 + $0x80] sm:$0xff] }
 0x789   :  { %6109 = vmatprep.subr.bf16.mxu1 %v6690_v10 }
 0x78c   :  { %6111 = vmatpush3.bf16.msra.mxu1 %v6110_v45  ;;  %v1649_v45 = vld [vmem:[%s7796_s23 + $0x70] sm:$0xff] }
 0x78d   :  { %6112 = vmatprep.subr.bf16.mxu1 %v6690_v10 }
 0x790   :  { %6114 = vmatpush3.bf16.msra.mxu1 %v6113_v50  ;;  %v6143_v50 = vpack.c.bf16 %v1650_v47, %v1649_v45  ;;  %v4229_v45 = vld [vmem:[%s7796_s23 + $0x90] sm:$0xff]  ;;  %v4230_v47 = vld [vmem:[%s7796_s23 + $0x98] sm:$0xff] }
 0x791   :  { %6115 = vmatprep.subr.bf16.mxu1 %v6690_v10  ;;  %v6197_v48 = vpack.c.bf16 %v4230_v47, %v4229_v45 }
 0x792   :  { %6144 = vmatpush3.bf16.msra.mxu0 %v6143_v50  ;;  %v4231_v50 = vld [vmem:[%s7796_s23 + $0xa0] sm:$0xff] }
 0x793   :  { %6169 = vmatprep.subr.bf16.mxu0 %v6690_v10 }
 0x794   :  { %6117 = vmatpush3.bf16.msra.mxu1 %v6116_v53  ;;  %v4201_v53 = vld [vmem:[%s7798_s28] ss:$0 sm:$0xff] }
 0x795   :  { %6118 = vmatprep.subr.bf16.mxu1 %v6690_v10 }
 0x798   :  { %6120 = vmatpush3.bf16.msra.mxu1 %v6119_v56 }
 0x799   :  { %6145 = vmatprep.subr.bf16.mxu1 %v6690_v10 }
 0x84e   :  { %v1536_v19 = vpop.f32.mrb[16].mxu1 }
 0x84f   :  { %v1537_v20 = vadd.f32 %v4199_v16, %v1536_v19  ;;  %v5253_v21 = vpop.f32.mrb[17].mxu1  ;;  %v4216_v16 = vld [vmem:[%s7795_s22 + $0xb8] sm:$0xff]  ;;  %v4218_v19 = vld [vmem:[%s7795_s22 + $0xc8] sm:$0xff] }
 0x850   :  { %v6179_v17 = vpack.c.bf16 %v4216_v16, %v4215_v15  ;;  %v4219_v21 = vld [vmem:[%s7795_s22 + $0xd0] sm:$0xff]  ;;  %v4250_v15 = vld [vmem:[%s6880_s6 + $0xa8] sm:$0xff] }
 0x851   :  { %v1540_v23 = vmax.f32 %v1537_v20, 0.0  ;;  %v6182_v20 = vpack.c.bf16 %v4218_v19, %v4217_v18  ;;  %v4252_v18 = vld [vmem:[%s6880_s6 + $0xb8] sm:$0xff] }
 0x853   :  { %5287 = vmatmul.mubr.f32.vlgmr.msra.gmra.mrb[18].mxu1 %v1540_v23 }
 0x854   :  { %6147 = vmatpush3.bf16.msra.mxu1 %v6146_v22  ;;  %5356 = vmatprep.mubr.msk.f32.mxu1 %vm6689_vm1, %v6688_v3  ;;  %v4220_v22 = vld [vmem:[%s7795_s22 + $0xd8] sm:$0xff] }
 0x855   :  { %6148 = vmatprep.subr.bf16.mxu1 %v6690_v10  ;;  %v6185_v23 = vpack.c.bf16 %v4220_v22, %v4219_v21  ;;  %v4254_v21 = vld [vmem:[%s6880_s6 + $0xc8] sm:$0xff] }
 0x858   :  { %6150 = vmatpush3.bf16.msra.mxu1 %v6149_v26  ;;  %v6188_v26 = vpack.c.bf16 %v4222_v25, %v4221_v24  ;;  %v4256_v24 = vld [vmem:[%s6880_s6 + $0xd8] sm:$0xff] }
 0x859   :  { %6151 = vmatprep.subr.bf16.mxu1 %v6690_v10 }
 0x85c   :  { %6153 = vmatpush3.bf16.msra.mxu1 %v6152_v29 }
 0x85d   :  { %6154 = vmatprep.subr.bf16.mxu1 %v6690_v10 }
 0x860   :  { %6156 = vmatpush3.bf16.msra.mxu1 %v6155_v33  ;;  %v4203_v33 = vld [vmem:[%s6885_s4] ss:$0 sm:$0xff] }
 0x861   :  { %6157 = vmatprep.subr.bf16.mxu1 %v6690_v10 }
 0x864   :  { %6159 = vmatpush3.bf16.msra.mxu1 %v6158_v36 }
 0x865   :  { %6160 = vmatprep.subr.bf16.mxu1 %v6690_v10 }
 0x868   :  { %6162 = vmatpush3.bf16.msra.mxu1 %v6161_v39  ;;  %v4224_v39 = vld [vmem:[%s7795_s22 + $0xf8] sm:$0xff] }
 0x869   :  { %6163 = vmatprep.subr.bf16.mxu1 %v6690_v10  ;;  %v6191_v40 = vpack.c.bf16 %v4224_v39, %v4223_v38  ;;  %v4226_v38 = vld [vmem:[%s7798_s28 + $0x1] ss:$0 sm:$0xff] }
 0x86c   :  { %6165 = vmatpush3.bf16.msra.mxu1 %v6164_v44 }
 0x86d   :  { %6166 = vmatprep.subr.bf16.mxu1 %v6690_v10 }
 0x870   :  { %6168 = vmatpush3.bf16.msra.mxu1 %v6167_v52  ;;  %v6200_v52 = vpack.c.bf16 %v4232_v51, %v4231_v50 }
 0x871   :  { %5359 = vmatprep.subr.mxu1 %v6688_v3 }
 0x926   :  { %v1630_v54 = vpop.f32.mrb[18].mxu1 }
 0x927   :  { %v1631_v55 = vadd.f32 %v4201_v53, %v1630_v54  ;;  %v5288_v56 = vpop.f32.mrb[19].mxu1  ;;  %v4233_v53 = vld [vmem:[%s7796_s23 + $0xb0] sm:$0xff]  ;;  %v4234_v54 = vld [vmem:[%s7796_s23 + $0xb8] sm:$0xff] }
 0x928   :  { %v4235_v56 = vld [vmem:[%s7796_s23 + $0xc0] sm:$0xff] }
 0x929   :  { %v1634_v57 = vmax.f32 %v1631_v55, 0.0  ;;  %v6203_v55 = vpack.c.bf16 %v4234_v54, %v4233_v53 }
 0x92b   :  { %5322 = vmatmul.mubr.f32.vlgmr.msra.gmra.mrb[10].mxu0 %v1634_v57  ;;  %5357 = vmatmul.mubr.f32.vlgmr.msra.gmra.mrb[20].mxu1 %v1634_v57  ;;  %v4236_v57 = vld [vmem:[%s7796_s23 + $0xc8] sm:$0xff] }
 0x92c   :  { %5361 = vmatprep.mubr.msk.f32.mxu1 %vm6689_vm1, %v6688_v3  ;;  %5396 = vmatprep.mubr.msk.f32.mxu0 %vm6689_vm1, %v6688_v3 }
 0x92d   :  { %5360 = vmatpush3.msra.mxu1 %v4205_v4  ;;  %6171 = vmatpush3.bf16.msra.mxu0 %v6170_v8  ;;  %v4246_v4 = vld [vmem:[%s6880_s6 + $0x88] sm:$0xff] }
 0x92e   :  { %6193 = vmatprep.subr.bf16.mxu1 %v6690_v10  ;;  %6172 = vmatprep.subr.bf16.mxu0 %v6690_v10 }
 0x931   :  { %6174 = vmatpush3.bf16.msra.mxu0 %v6173_v11  ;;  %v4247_v11 = vld [vmem:[%s6880_s6 + $0x90] sm:$0xff] }
 0x932   :  { %6175 = vmatprep.subr.bf16.mxu0 %v6690_v10  ;;  %v6221_v13 = vpack.c.bf16 %v4248_v12, %v4247_v11  ;;  %v4273_v11 = vld [vmem:[%s7795_s22 + $0x130] sm:$0xff]  ;;  %v4274_v12 = vld [vmem:[%s7795_s22 + $0x138] sm:$0xff] }
 0x935   :  { %6177 = vmatpush3.bf16.msra.mxu0 %v6176_v14  ;;  %v4249_v14 = vld [vmem:[%s6880_s6 + $0xa0] sm:$0xff] }
 0x936   :  { %6178 = vmatprep.subr.bf16.mxu0 %v6690_v10  ;;  %v6224_v16 = vpack.c.bf16 %v4250_v15, %v4249_v14  ;;  %v4275_v14 = vld [vmem:[%s7795_s22 + $0x140] sm:$0xff]  ;;  %v4276_v15 = vld [vmem:[%s7795_s22 + $0x148] sm:$0xff] }
 0x939   :  { %6180 = vmatpush3.bf16.msra.mxu0 %v6179_v17  ;;  %v4251_v17 = vld [vmem:[%s6880_s6 + $0xb0] sm:$0xff] }
 0x93a   :  { %6181 = vmatprep.subr.bf16.mxu0 %v6690_v10  ;;  %v6227_v19 = vpack.c.bf16 %v4252_v18, %v4251_v17  ;;  %v4277_v17 = vld [vmem:[%s7795_s22 + $0x150] sm:$0xff]  ;;  %v4278_v18 = vld [vmem:[%s7795_s22 + $0x158] sm:$0xff] }
 0x93d   :  { %6183 = vmatpush3.bf16.msra.mxu0 %v6182_v20  ;;  %v4253_v20 = vld [vmem:[%s6880_s6 + $0xc0] sm:$0xff] }
 0x93e   :  { %6184 = vmatprep.subr.bf16.mxu0 %v6690_v10  ;;  %v6230_v22 = vpack.c.bf16 %v4254_v21, %v4253_v20  ;;  %v4279_v20 = vld [vmem:[%s7795_s22 + $0x160] sm:$0xff]  ;;  %v4280_v21 = vld [vmem:[%s7795_s22 + $0x168] sm:$0xff] }
 0x941   :  { %6186 = vmatpush3.bf16.msra.mxu0 %v6185_v23  ;;  %v4255_v23 = vld [vmem:[%s6880_s6 + $0xd0] sm:$0xff] }
 0x942   :  { %6187 = vmatprep.subr.bf16.mxu0 %v6690_v10  ;;  %v6233_v25 = vpack.c.bf16 %v4256_v24, %v4255_v23  ;;  %v4281_v23 = vld [vmem:[%s7795_s22 + $0x170] sm:$0xff]  ;;  %v4282_v24 = vld [vmem:[%s7795_s22 + $0x178] sm:$0xff] }
 0x945   :  { %6189 = vmatpush3.bf16.msra.mxu0 %v6188_v26  ;;  %v4257_v26 = vld [vmem:[%s6880_s6 + $0xe0] sm:$0xff] }
 0x946   :  { %6190 = vmatprep.subr.bf16.mxu0 %v6690_v10 }
 0x949   :  { %6192 = vmatpush3.bf16.msra.mxu0 %v6191_v40 }
 0x94a   :  { %6217 = vmatprep.subr.bf16.mxu0 %v6690_v10 }
 0x9fe   :  { %v1724_v59 = vpop.f32.mrb[10].mxu0  ;;  %v1819_v60 = vpop.f32.mrb[20].mxu1 }
 0x9ff   :  { %v1725_v61 = vadd.f32 %v4202_v58, %v1724_v59  ;;  %v5323_v62 = vpop.f32.mrb[11].mxu0  ;;  %v5358_v63 = vpop.f32.mrb[21].mxu1  ;;  %v1820_v35 = vadd.f32 %v4203_v33, %v1819_v60  ;;  %v6206_v58 = vpack.c.bf16 %v4236_v57, %v4235_v56  ;;  %v4237_v59 = vld [vmem:[%s7796_s23 + $0xd0] sm:$0xff]  ;;  %v4238_v60 = vld [vmem:[%s7796_s23 + $0xd8] sm:$0xff] }
 0xa00   :  { %v4239_v62 = vld [vmem:[%s7796_s23 + $0xe0] sm:$0xff]  ;;  %v4240_v63 = vld [vmem:[%s7796_s23 + $0xe8] sm:$0xff]  ;;  %v4259_v33 = vld [vmem:[%s6880_s6 + $0xf0] sm:$0xff] }
 0xa01   :  { %6599 = vtanh.f32 %v1725_v61  ;;  %v6209_v61 = vpack.c.bf16 %v4238_v60, %v4237_v59  ;;  %v4262_v60 = vld [vmem:[%s6885_s4 + $0x1] ss:$0 sm:$0xff] }
 0xa0b   :  { %v6600_v0 = vpop.eup %6599 }
 0xa0c   :  { %v1729_v1 = vmul.f32 0.1, %v6600_v0  ;;  %v6212_v0 = vpack.c.bf16 %v4240_v63, %v4239_v62  ;;  %v4268_v62 = vld [vmem:[%s7795_s22 + $0x108] sm:$0xff] }
 0xa0e   :  { %v1823_v2 = vsel %vm163_vm0, %v1729_v1, 0.0 }
 0xa0f   :  { %1824 = vadd.xlane.f32.xlu0 %v1823_v2  ;;  %v4245_v2 = vld [vmem:[%s6880_s6 + $0x80] sm:$0xff] }
 0xa10   :  { %v6218_v8 = vpack.c.bf16 %v4246_v4, %v4245_v2 }
 0xa9c   :  { %v1825_v28 = vpop.xlane.xlu0 %1824 }
 0xa9d   :  { %v1832_v29 = vmul.f32 %v7262_v27, %v1825_v28  ;;  %v4258_v28 = vld [vmem:[%s6880_s6 + $0xe8] sm:$0xff] }
 0xa9f   :  { %v1833_v30 = vsub.f32 %v1729_v1, %v1832_v29  ;;  %v4207_v1 = vld [vmem:[%s7797_s26 + $0x1] ss:$0 sm:$0xff]  ;;  %v6236_v29 = vpack.c.bf16 %v4258_v28, %v4257_v26  ;;  %v4286_v28 = vld [vmem:[%s7796_s23 + $0x108] sm:$0xff] }
 0xaa0   :  { %v4285_v26 = vld [vmem:[%s7796_s23 + $0x100] sm:$0xff] }
 0xaa1   :  { %v1834_v32 = vmul.f32 1.442695, %v1833_v30  ;;  %v4241_v30 = vld [vmem:[%s7796_s23 + $0xf0] sm:$0xff] }
 0xaa3   :  { %6601 = vpow2.f32 %v1834_v32  ;;  %v4242_v32 = vld [vmem:[%s7796_s23 + $0xf8] sm:$0xff] }
 0xaad   :  { %v6602_v34 = vpop.eup %6601 }
 0xaae   :  { %v1836_v36 = vmul.f32 %v6602_v34, %v7167_v43  ;;  %v4228_v43 = vld [vmem:[%s7796_s23 + $0x88] sm:$0xff]  ;;  %v6215_v34 = vpack.c.bf16 %v4242_v32, %v4241_v30  ;;  %v4287_v30 = vld [vmem:[%s7796_s23 + $0x110] sm:$0xff]  ;;  %v4288_v32 = vld [vmem:[%s7796_s23 + $0x118] sm:$0xff] }
 0xaaf   :  { %v6194_v44 = vpack.c.bf16 %v4228_v43, %v4227_v42 }
 0xab0   :  { %v7267_v37 = vadd.f32 %v1836_v36, %v1820_v35  ;;  %v4260_v35 = vld [vmem:[%s6880_s6 + $0xf8] sm:$0xff] }
 0xab1   :  { %v6239_v36 = vpack.c.bf16 %v4260_v35, %v4259_v33  ;;  %v6269_v33 = vpack.c.bf16 %v4288_v32, %v4287_v30  ;;  %v4290_v35 = vld [vmem:[%s7796_s23 + $0x128] sm:$0xff]  ;;  %v4302_v32 = vld [vmem:[%s6875_s13 + $0x2] ss:$0 sm:$0xff] }
 0xab2   :  { %5362 = vmatmul.mubr.msk.f32.vlgmr.msra.gmra.mrb[22].mxu1 %vm163_vm0, %v7267_v37  ;;  %v4326_v30 = vld [vmem:[%s7792_s15 + $0x8] sm:$0xff] }
 0xab3   :  { %5431 = vmatprep.mubr.msk.f32.mxu1 %vm6689_vm1, %v6688_v3  ;;  %6195 = vmatpush3.bf16.msra.mxu1 %v6194_v44  ;;  %v4244_v44 = vld [vmem:[%s6875_s13 + $0x1] ss:$0 sm:$0xff] }
 0xab4   :  { %6196 = vmatprep.subr.bf16.mxu1 %v6690_v10 }
 0xab7   :  { %6198 = vmatpush3.bf16.msra.mxu1 %v6197_v48 }
 0xab8   :  { %6199 = vmatprep.subr.bf16.mxu1 %v6690_v10 }
 0xabb   :  { %6201 = vmatpush3.bf16.msra.mxu1 %v6200_v52 }
 0xabc   :  { %6202 = vmatprep.subr.bf16.mxu1 %v6690_v10 }
 0xabf   :  { %6204 = vmatpush3.bf16.msra.mxu1 %v6203_v55  ;;  %v4263_v55 = vld [vmem:[%s7794_s18 + $0x10] sm:$0xff] }
 0xac0   :  { %6205 = vmatprep.subr.bf16.mxu1 %v6690_v10 }
 0xac3   :  { %6207 = vmatpush3.bf16.msra.mxu1 %v6206_v58 }
 0xac4   :  { %6208 = vmatprep.subr.bf16.mxu1 %v6690_v10 }
 0xac7   :  { %6210 = vmatpush3.bf16.msra.mxu1 %v6209_v61  ;;  %v4267_v61 = vld [vmem:[%s7795_s22 + $0x100] sm:$0xff] }
 0xac8   :  { %6211 = vmatprep.subr.bf16.mxu1 %v6690_v10  ;;  %v6242_v2 = vpack.c.bf16 %v4268_v62, %v4267_v61  ;;  %v4305_v61 = vld [vmem:[%s6880_s6 + $0x110] sm:$0xff]  ;;  %v4306_v62 = vld [vmem:[%s6880_s6 + $0x118] sm:$0xff] }
 0xacb   :  { %6213 = vmatpush3.bf16.msra.mxu1 %v6212_v0 }
 0xacc   :  { %6214 = vmatprep.subr.bf16.mxu1 %v6690_v10 }
 0xacf   :  { %6216 = vmatpush3.bf16.msra.mxu1 %v6215_v34  ;;  %v4289_v34 = vld [vmem:[%s7796_s23 + $0x120] sm:$0xff] }
 0xad0   :  { %5469 = vmatprep.subr.mxu1 %v6688_v3 }
 0xb85   :  { %v1917_v5 = vpop.f32.mrb[22].mxu1 }
 0xb86   :  { %v1918_v6 = vadd.f32 %v4207_v1, %v1917_v5  ;;  %v5363_v7 = vpop.f32.mrb[23].mxu1  ;;  %v4269_v5 = vld [vmem:[%s7795_s22 + $0x110] sm:$0xff] }
 0xb88   :  { %v1921_v9 = vmax.f32 %v1918_v6, 0.0  ;;  %v4270_v6 = vld [vmem:[%s7795_s22 + $0x118] sm:$0xff] }
 0xb89   :  { %v6245_v7 = vpack.c.bf16 %v4270_v6, %v4269_v5  ;;  %v4309_v5 = vld [vmem:[%s6880_s6 + $0x130] sm:$0xff]  ;;  %v4310_v6 = vld [vmem:[%s6880_s6 + $0x138] sm:$0xff] }
 0xb8a   :  { %5397 = vmatmul.mubr.f32.vlgmr.msra.gmra.mrb[12].mxu0 %v1921_v9 }
 0xb8b   :  { %6219 = vmatpush3.bf16.msra.mxu0 %v6218_v8  ;;  %5466 = vmatprep.mubr.msk.f32.mxu0 %vm6689_vm1, %v6688_v3  ;;  %v4272_v8 = vld [vmem:[%s7795_s22 + $0x128] sm:$0xff] }
 0xb8c   :  { %6220 = vmatprep.subr.bf16.mxu0 %v6690_v10 }
 0xb8f   :  { %6222 = vmatpush3.bf16.msra.mxu0 %v6221_v13  ;;  %v6251_v13 = vpack.c.bf16 %v4274_v12, %v4273_v11  ;;  %v4313_v11 = vld [vmem:[%s6880_s6 + $0x150] sm:$0xff]  ;;  %v4314_v12 = vld [vmem:[%s6880_s6 + $0x158] sm:$0xff] }
 0xb90   :  { %6223 = vmatprep.subr.bf16.mxu0 %v6690_v10 }
 0xb93   :  { %6225 = vmatpush3.bf16.msra.mxu0 %v6224_v16  ;;  %v6254_v16 = vpack.c.bf16 %v4276_v15, %v4275_v14  ;;  %v4315_v14 = vld [vmem:[%s6880_s6 + $0x160] sm:$0xff]  ;;  %v4316_v15 = vld [vmem:[%s6880_s6 + $0x168] sm:$0xff] }
 0xb94   :  { %6226 = vmatprep.subr.bf16.mxu0 %v6690_v10 }
 0xb97   :  { %6228 = vmatpush3.bf16.msra.mxu0 %v6227_v19  ;;  %v6257_v19 = vpack.c.bf16 %v4278_v18, %v4277_v17  ;;  %v4299_v17 = vld [vmem:[%s7796_s23 + $0x170] sm:$0xff]  ;;  %v4300_v18 = vld [vmem:[%s7796_s23 + $0x178] sm:$0xff] }
 0xb98   :  { %6229 = vmatprep.subr.bf16.mxu0 %v6690_v10 }
 0xb9b   :  { %6231 = vmatpush3.bf16.msra.mxu0 %v6230_v22  ;;  %v6260_v22 = vpack.c.bf16 %v4280_v21, %v4279_v20  ;;  %v6287_v20 = vpack.c.bf16 %v4300_v18, %v4299_v17  ;;  %v4318_v21 = vld [vmem:[%s6880_s6 + $0x178] sm:$0xff]  ;;  %v4347_v18 = vld [vmem:[%s7795_s22 + $0x1f0] sm:$0xff] }
 0xb9c   :  { %6232 = vmatprep.subr.bf16.mxu0 %v6690_v10 }
 0xb9f   :  { %6234 = vmatpush3.bf16.msra.mxu0 %v6233_v25  ;;  %v6263_v25 = vpack.c.bf16 %v4282_v24, %v4281_v23  ;;  %v4284_v23 = vld [vmem:[%s7798_s28 + $0x2] ss:$0 sm:$0xff] }
 0xba0   :  { %6235 = vmatprep.subr.bf16.mxu0 %v6690_v10 }
 0xba3   :  { %6237 = vmatpush3.bf16.msra.mxu0 %v6236_v29  ;;  %v6266_v29 = vpack.c.bf16 %v4286_v28, %v4285_v26 }
 0xba4   :  { %6238 = vmatprep.subr.bf16.mxu0 %v6690_v10 }
 0xba7   :  { %6240 = vmatpush3.bf16.msra.mxu0 %v6239_v36  ;;  %v6272_v36 = vpack.c.bf16 %v4290_v35, %v4289_v34 }
 0xba8   :  { %6265 = vmatprep.subr.bf16.mxu0 %v6690_v10 }
 0xc5d   :  { %v2013_v39 = vpop.f32.mrb[12].mxu0 }
 0xc5e   :  { %v2014_v40 = vadd.f32 %v4226_v38, %v2013_v39  ;;  %v5398_v42 = vpop.f32.mrb[13].mxu0  ;;  %v4291_v38 = vld [vmem:[%s7796_s23 + $0x130] sm:$0xff]  ;;  %v4292_v39 = vld [vmem:[%s7796_s23 + $0x138] sm:$0xff] }
 0xc5f   :  { %v4293_v42 = vld [vmem:[%s7796_s23 + $0x140] sm:$0xff] }
 0xc60   :  { %v2017_v43 = vmax.f32 %v2014_v40, 0.0  ;;  %v6275_v40 = vpack.c.bf16 %v4292_v39, %v4291_v38 }
 0xc62   :  { %5432 = vmatmul.mubr.f32.vlgmr.msra.gmra.mrb[24].mxu1 %v2017_v43  ;;  %5467 = vmatmul.mubr.f32.vlgmr.msra.gmra.mrb[14].mxu0 %v2017_v43  ;;  %v4294_v43 = vld [vmem:[%s7796_s23 + $0x148] sm:$0xff] }
 0xc63   :  { %5471 = vmatprep.mubr.msk.f32.mxu1 %vm6689_vm1, %v6688_v3  ;;  %5541 = vmatprep.mubr.msk.f32.mxu0 %vm6689_vm1, %v6688_v3 }
 0xc64   :  { %5470 = vmatpush3.msra.mxu1 %v4263_v55  ;;  %6267 = vmatpush3.bf16.msra.mxu0 %v6266_v29  ;;  %v4304_v55 = vld [vmem:[%s6880_s6 + $0x108] sm:$0xff] }
 0xc65   :  { %6241 = vmatprep.subr.bf16.mxu1 %v6690_v10  ;;  %6268 = vmatprep.subr.bf16.mxu0 %v6690_v10  ;;  %v4322_v29 = vld [vmem:[%s7788_s30 + $0x8] sm:$0xff] }
 0xc68   :  { %6270 = vmatpush3.bf16.msra.mxu0 %v6269_v33 }
 0xc69   :  { %6271 = vmatprep.subr.bf16.mxu0 %v6690_v10 }
 0xc6c   :  { %6273 = vmatpush3.bf16.msra.mxu0 %v6272_v36 }
 0xc6d   :  { %6274 = vmatprep.subr.bf16.mxu0 %v6690_v10 }
 0xc70   :  { %6276 = vmatpush3.bf16.msra.mxu0 %v6275_v40 }
 0xc71   :  { %6277 = vmatprep.subr.bf16.mxu0 %v6690_v10 }
 0xd35   :  { %v2109_v45 = vpop.f32.mrb[24].mxu1  ;;  %v2206_v47 = vpop.f32.mrb[14].mxu0 }
 0xd36   :  { %v2110_v48 = vadd.f32 %v4244_v44, %v2109_v45  ;;  %v5433_v50 = vpop.f32.mrb[25].mxu1  ;;  %v5468_v51 = vpop.f32.mrb[15].mxu0  ;;  %v2207_v0 = vadd.f32 %v4262_v60, %v2206_v47  ;;  %v6278_v44 = vpack.c.bf16 %v4294_v43, %v4293_v42  ;;  %v4295_v45 = vld [vmem:[%s7796_s23 + $0x150] sm:$0xff]  ;;  %v4296_v47 = vld [vmem:[%s7796_s23 + $0x158] sm:$0xff]  ;;  %v4325_v43 = vld [vmem:[%s7793_s16 + $0x8] sm:$0xff] }
 0xd37   :  { %v4297_v50 = vld [vmem:[%s7796_s23 + $0x160] sm:$0xff]  ;;  %v4298_v51 = vld [vmem:[%s7796_s23 + $0x168] sm:$0xff] }
 0xd38   :  { %6603 = vtanh.f32 %v2110_v48  ;;  %6279 = vmatpush3.bf16.msra.mxu0 %v6278_v44  ;;  %v6281_v48 = vpack.c.bf16 %v4296_v47, %v4295_v45 }
 0xd39   :  { %6280 = vmatprep.subr.bf16.mxu0 %v6690_v10 }
 0xd3c   :  { %6282 = vmatpush3.bf16.msra.mxu0 %v6281_v48 }
 0xd3d   :  { %6283 = vmatprep.subr.bf16.mxu0 %v6690_v10 }
 0xd42   :  { %v6604_v52 = vpop.eup %6603 }
 0xd43   :  { %v2114_v53 = vmul.f32 0.1, %v6604_v52  ;;  %v6284_v52 = vpack.c.bf16 %v4298_v51, %v4297_v50  ;;  %v4320_v50 = vld [vmem:[%s6885_s4 + $0x2] ss:$0 sm:$0xff] }
 0xd45   :  { %v2210_v54 = vsel %vm163_vm0, %v2114_v53, 0.0  ;;  %6285 = vmatpush3.bf16.msra.mxu0 %v6284_v52 }
 0xd46   :  { %2211 = vadd.xlane.f32.xlu0 %v2210_v54  ;;  %6286 = vmatprep.subr.bf16.mxu0 %v6690_v10  ;;  %v4303_v54 = vld [vmem:[%s6880_s6 + $0x100] sm:$0xff] }
 0xd49   :  { %6288 = vmatpush3.bf16.msra.mxu0 %v6287_v20 }
 0xd4a   :  { %5589 = vmatprep.subr.mxu0 %v6688_v3 }
 0xdd3   :  { %v2212_v56 = vpop.xlane.xlu0 %2211 }
 0xdd4   :  { %v2213_v57 = vmul.f32 %v7262_v27, %v2212_v56 }
 0xdd6   :  { %v2214_v58 = vsub.f32 %v2114_v53, %v2213_v57  ;;  %v4265_v53 = vld [vmem:[%s7797_s26 + $0x2] ss:$0 sm:$0xff] }
 0xdd8   :  { %v2215_v59 = vmul.f32 1.442695, %v2214_v58 }
 0xdda   :  { %6605 = vpow2.f32 %v2215_v59  ;;  %v6290_v59 = vpack.c.bf16 %v4304_v55, %v4303_v54  ;;  %v4329_v55 = vld [vmem:[%s7794_s18 + $0x18] sm:$0xff] }
 0xde4   :  { %v6606_v63 = vpop.eup %6605 }
 0xde5   :  { %v2217_v1 = vmul.f32 %v6606_v63, %v7152_v31  ;;  %v4271_v31 = vld [vmem:[%s7795_s22 + $0x120] sm:$0xff]  ;;  %v6293_v63 = vpack.c.bf16 %v4306_v62, %v4305_v61 }
 0xde6   :  { %v6248_v9 = vpack.c.bf16 %v4272_v8, %v4271_v31  ;;  %v4311_v31 = vld [vmem:[%s6880_s6 + $0x140] sm:$0xff]  ;;  %v4312_v8 = vld [vmem:[%s6880_s6 + $0x148] sm:$0xff] }
 0xde7   :  { %v7341_v4 = vadd.f32 %v2217_v1, %v2207_v0  ;;  %v4307_v0 = vld [vmem:[%s6880_s6 + $0x120] sm:$0xff]  ;;  %v4308_v1 = vld [vmem:[%s6880_s6 + $0x128] sm:$0xff] }
 0xde9   :  { %5472 = vmatmul.mubr.msk.f32.vlgmr.msra.gmra.mrb[26].mxu1 %vm163_vm0, %v7341_v4 }
 0xdea   :  { %6243 = vmatpush3.bf16.msra.mxu1 %v6242_v2  ;;  %5506 = vmatprep.mubr.msk.f32.mxu1 %vm6689_vm1, %v6688_v3  ;;  %v6296_v2 = vpack.c.bf16 %v4308_v1, %v4307_v0  ;;  %v4337_v1 = vld [vmem:[%s7795_s22 + $0x1a0] sm:$0xff] }
 0xdeb   :  { %6244 = vmatprep.subr.bf16.mxu1 %v6690_v10 }
 0xdee   :  { %6246 = vmatpush3.bf16.msra.mxu1 %v6245_v7  ;;  %v6299_v7 = vpack.c.bf16 %v4310_v6, %v4309_v5  ;;  %v4339_v6 = vld [vmem:[%s7795_s22 + $0x1b0] sm:$0xff] }
 0xdef   :  { %6247 = vmatprep.subr.bf16.mxu1 %v6690_v10 }
 0xdf2   :  { %6249 = vmatpush3.bf16.msra.mxu1 %v6248_v9  ;;  %v6302_v9 = vpack.c.bf16 %v4312_v8, %v4311_v31  ;;  %v4341_v8 = vld [vmem:[%s7795_s22 + $0x1c0] sm:$0xff] }
 0xdf3   :  { %6250 = vmatprep.subr.bf16.mxu1 %v6690_v10 }
 0xdf6   :  { %6252 = vmatpush3.bf16.msra.mxu1 %v6251_v13  ;;  %v6305_v13 = vpack.c.bf16 %v4314_v12, %v4313_v11  ;;  %v4343_v12 = vld [vmem:[%s7795_s22 + $0x1d0] sm:$0xff] }
 0xdf7   :  { %6253 = vmatprep.subr.bf16.mxu1 %v6690_v10 }
 0xdfa   :  { %6255 = vmatpush3.bf16.msra.mxu1 %v6254_v16  ;;  %v6308_v16 = vpack.c.bf16 %v4316_v15, %v4315_v14  ;;  %v4345_v15 = vld [vmem:[%s7795_s22 + $0x1e0] sm:$0xff] }
 0xdfb   :  { %6256 = vmatprep.subr.bf16.mxu1 %v6690_v10 }
 0xdfe   :  { %6258 = vmatpush3.bf16.msra.mxu1 %v6257_v19  ;;  %v4317_v19 = vld [vmem:[%s6880_s6 + $0x170] sm:$0xff] }
 0xdff   :  { %6259 = vmatprep.subr.bf16.mxu1 %v6690_v10 }
 0xe02   :  { %6261 = vmatpush3.bf16.msra.mxu1 %v6260_v22  ;;  %v6311_v22 = vpack.c.bf16 %v4318_v21, %v4317_v19  ;;  %v4348_v19 = vld [vmem:[%s7795_s22 + $0x1f8] sm:$0xff]  ;;  %v4351_v21 = vld [vmem:[%s7796_s23 + $0x180] sm:$0xff] }
 0xe03   :  { %6262 = vmatprep.subr.bf16.mxu1 %v6690_v10  ;;  %v6335_v20 = vpack.c.bf16 %v4348_v19, %v4347_v18  ;;  %v4350_v18 = vld [vmem:[%s7798_s28 + $0x3] ss:$0 sm:$0xff] }
 0xe06   :  { %6264 = vmatpush3.bf16.msra.mxu1 %v6263_v25 }
 0xe07   :  { %6289 = vmatprep.subr.bf16.mxu1 %v6690_v10 }
 0xebc   :  { %v2298_v56 = vpop.f32.mrb[26].mxu1 }
 0xebd   :  { %v2299_v57 = vadd.f32 %v4265_v53, %v2298_v56  ;;  %v5473_v58 = vpop.f32.mrb[27].mxu1  ;;  %v4333_v56 = vld [vmem:[%s7795_s22 + $0x180] sm:$0xff] }
 0xebe   :  { %v4335_v58 = vld [vmem:[%s7795_s22 + $0x190] sm:$0xff] }
 0xebf   :  { %v2302_v60 = vmax.f32 %v2299_v57, 0.0  ;;  %v4334_v57 = vld [vmem:[%s7795_s22 + $0x188] sm:$0xff] }
 0xec1   :  { %5507 = vmatmul.mubr.f32.vlgmr.msra.gmra.mrb[28].mxu1 %v2302_v60 }
 0xec2   :  { %6291 = vmatpush3.bf16.msra.mxu1 %v6290_v59  ;;  %5576 = vmatprep.mubr.msk.f32.mxu1 %vm6689_vm1, %v6688_v3  ;;  %v4336_v59 = vld [vmem:[%s7795_s22 + $0x198] sm:$0xff] }
 0xec3   :  { %6292 = vmatprep.subr.bf16.mxu1 %v6690_v10  ;;  %v6317_v0 = vpack.c.bf16 %v4336_v59, %v4335_v58  ;;  %v4374_v58 = vld [vmem:[%s6880_s6 + $0x1a8] sm:$0xff] }
 0xec6   :  { %6294 = vmatpush3.bf16.msra.mxu1 %v6293_v63 }
 0xec7   :  { %6295 = vmatprep.subr.bf16.mxu1 %v6690_v10 }
 0xeca   :  { %6297 = vmatpush3.bf16.msra.mxu1 %v6296_v2  ;;  %v4338_v2 = vld [vmem:[%s7795_s22 + $0x1a8] sm:$0xff] }
 0xecb   :  { %6298 = vmatprep.subr.bf16.mxu1 %v6690_v10  ;;  %v6320_v5 = vpack.c.bf16 %v4338_v2, %v4337_v1  ;;  %v4377_v1 = vld [vmem:[%s6880_s6 + $0x1c0] sm:$0xff]  ;;  %v4378_v2 = vld [vmem:[%s6880_s6 + $0x1c8] sm:$0xff] }
 0xece   :  { %6300 = vmatpush3.bf16.msra.mxu1 %v6299_v7  ;;  %v4340_v7 = vld [vmem:[%s7795_s22 + $0x1b8] sm:$0xff] }
 0xecf   :  { %6301 = vmatprep.subr.bf16.mxu1 %v6690_v10  ;;  %v6323_v31 = vpack.c.bf16 %v4340_v7, %v4339_v6  ;;  %v4379_v6 = vld [vmem:[%s6880_s6 + $0x1d0] sm:$0xff]  ;;  %v4380_v7 = vld [vmem:[%s6880_s6 + $0x1d8] sm:$0xff] }
 0xed2   :  { %6303 = vmatpush3.bf16.msra.mxu1 %v6302_v9  ;;  %v4342_v9 = vld [vmem:[%s7795_s22 + $0x1c8] sm:$0xff] }
 0xed3   :  { %6304 = vmatprep.subr.bf16.mxu1 %v6690_v10  ;;  %v6326_v11 = vpack.c.bf16 %v4342_v9, %v4341_v8  ;;  %v4381_v8 = vld [vmem:[%s6880_s6 + $0x1e0] sm:$0xff]  ;;  %v4382_v9 = vld [vmem:[%s6880_s6 + $0x1e8] sm:$0xff] }
 0xed6   :  { %6306 = vmatpush3.bf16.msra.mxu1 %v6305_v13  ;;  %v4344_v13 = vld [vmem:[%s7795_s22 + $0x1d8] sm:$0xff] }
 0xed7   :  { %6307 = vmatprep.subr.bf16.mxu1 %v6690_v10  ;;  %v6329_v14 = vpack.c.bf16 %v4344_v13, %v4343_v12  ;;  %v4365_v12 = vld [vmem:[%s7796_s23 + $0x1f0] sm:$0xff]  ;;  %v4366_v13 = vld [vmem:[%s7796_s23 + $0x1f8] sm:$0xff] }
 0xeda   :  { %6309 = vmatpush3.bf16.msra.mxu1 %v6308_v16  ;;  %v4346_v16 = vld [vmem:[%s7795_s22 + $0x1e8] sm:$0xff] }
 0xedb   :  { %6310 = vmatprep.subr.bf16.mxu1 %v6690_v10  ;;  %v6332_v17 = vpack.c.bf16 %v4346_v16, %v4345_v15  ;;  %v6359_v15 = vpack.c.bf16 %v4366_v13, %v4365_v12  ;;  %v4384_v16 = vld [vmem:[%s6880_s6 + $0x1f8] sm:$0xff] }
 0xedc   :  { %v4412_v12 = vld [vmem:[%s7796_s23 + $0x218] sm:$0xff] }
 0xede   :  { %6312 = vmatpush3.bf16.msra.mxu1 %v6311_v22  ;;  %v4352_v22 = vld [vmem:[%s7796_s23 + $0x188] sm:$0xff] }
 0xedf   :  { %5579 = vmatprep.subr.mxu1 %v6688_v3 }
 0xf94   :  { %v2394_v24 = vpop.f32.mrb[28].mxu1 }
 0xf95   :  { %v2395_v25 = vadd.f32 %v4284_v23, %v2394_v24  ;;  %v5508_v26 = vpop.f32.mrb[29].mxu1  ;;  %v6338_v23 = vpack.c.bf16 %v4352_v22, %v4351_v21  ;;  %v4353_v24 = vld [vmem:[%s7796_s23 + $0x190] sm:$0xff] }
 0xf97   :  { %v2398_v28 = vmax.f32 %v2395_v25, 0.0  ;;  %v4354_v25 = vld [vmem:[%s7796_s23 + $0x198] sm:$0xff] }
 0xf98   :  { %v6341_v26 = vpack.c.bf16 %v4354_v25, %v4353_v24 }
 0xf99   :  { %5542 = vmatmul.mubr.f32.vlgmr.msra.gmra.mrb[16].mxu0 %v2398_v28  ;;  %5577 = vmatmul.mubr.f32.vlgmr.msra.gmra.mrb[30].mxu1 %v2398_v28  ;;  %v4355_v28 = vld [vmem:[%s7796_s23 + $0x1a0] sm:$0xff] }
 0xf9a   :  { %5580 = vmatpush3.msra.mxu1 %v4322_v29  ;;  %5581 = vmatprep.mubr.msk.f32.mxu1 %vm6689_vm1, %v6688_v3  ;;  %v4356_v29 = vld [vmem:[%s7796_s23 + $0x1a8] sm:$0xff] }
 0xf9b   :  { %5590 = vmatpush3.msra.mxu0 %v4326_v30  ;;  %5591 = vmatprep.mubr.msk.f32.mxu0 %vm6689_vm1, %v6688_v3  ;;  %v6344_v30 = vpack.c.bf16 %v4356_v29, %v4355_v28 }
 0xf9c   :  { %5584 = vmatprep.subr.mxu1 %v6688_v3  ;;  %5594 = vmatprep.subr.mxu0 %v6688_v3 }
 0xf9d   :  { %5582 = vmatmul.mubr.msk.f32.vlgmr.msra.gmra.mrb[32].mxu1 %vm163_vm0, %v7341_v4  ;;  %5592 = vmatmul.mubr.msk.f32.vlgmr.msra.gmra.mrb[18].mxu0 %vm163_vm0, %v7341_v4  ;;  %v4321_v4 = vld [vmem:[%s7790_s20 + $0x8] sm:$0xff] }
 0xf9e   :  { %5586 = vmatprep.mubr.msk.f32.mxu1 %vm6689_vm1, %v6688_v3  ;;  %5596 = vmatprep.mubr.msk.f32.mxu0 %vm6689_vm1, %v6688_v3 }
 0xf9f   :  { %5585 = vmatpush3.msra.mxu1 %v4321_v4  ;;  %5595 = vmatpush3.msra.mxu0 %v4325_v43  ;;  %v4363_v4 = vld [vmem:[%s7796_s23 + $0x1e0] sm:$0xff]  ;;  %v4364_v43 = vld [vmem:[%s7796_s23 + $0x1e8] sm:$0xff] }
 0xfa0   :  { %5599 = vmatprep.subr.mxu0 %v6688_v3  ;;  %6337 = vmatprep.subr.bf16.mxu1 %v6690_v10 }
0x106c   :  { %v2490_v33 = vpop.f32.mrb[16].mxu0  ;;  %v2587_v34 = vpop.f32.mrb[30].mxu1 }
0x106d   :  { %v2491_v35 = vadd.f32 %v4302_v32, %v2490_v33  ;;  %v5543_v36 = vpop.f32.mrb[17].mxu0  ;;  %v5578_v38 = vpop.f32.mrb[31].mxu1  ;;  %v2588_v52 = vadd.f32 %v4320_v50, %v2587_v34  ;;  %v4357_v32 = vld [vmem:[%s7796_s23 + $0x1b0] sm:$0xff]  ;;  %v4358_v33 = vld [vmem:[%s7796_s23 + $0x1b8] sm:$0xff] }
0x106e   :  { %v6347_v34 = vpack.c.bf16 %v4358_v33, %v4357_v32  ;;  %v4360_v36 = vld [vmem:[%s7796_s23 + $0x1c8] sm:$0xff] }
0x106f   :  { %6607 = vtanh.f32 %v2491_v35  ;;  %v4359_v35 = vld [vmem:[%s7796_s23 + $0x1c0] sm:$0xff] }
0x1070   :  { %v6350_v38 = vpack.c.bf16 %v4360_v36, %v4359_v35 }
0x1079   :  { %v6608_v39 = vpop.eup %6607 }
0x107a   :  { %v2495_v40 = vmul.f32 0.1, %v6608_v39  ;;  %v4361_v39 = vld [vmem:[%s7796_s23 + $0x1d0] sm:$0xff] }
0x107c   :  { %v2591_v42 = vsel %vm163_vm0, %v2495_v40, 0.0 }
0x107d   :  { %2592 = vadd.xlane.f32.xlu1 %v2591_v42 }
0x110a   :  { %v2593_v44 = vpop.xlane.xlu1 %2592 }
0x110b   :  { %v2594_v45 = vmul.f32 %v7262_v27, %v2593_v44  ;;  %v6356_v44 = vpack.c.bf16 %v4364_v43, %v4363_v4  ;;  %v4392_v4 = vld [vmem:[%s7795_s22 + $0x208] sm:$0xff] }
0x110d   :  { %v2595_v47 = vsub.f32 %v2495_v40, %v2594_v45  ;;  %v4362_v40 = vld [vmem:[%s7796_s23 + $0x1d8] sm:$0xff]  ;;  %v4331_v45 = vld [vmem:[%s7797_s26 + $0x3] ss:$0 sm:$0xff] }
0x110e   :  { %v6353_v42 = vpack.c.bf16 %v4362_v40, %v4361_v39  ;;  %v4386_v40 = vld [vmem:[%s6885_s4 + $0x3] ss:$0 sm:$0xff] }
0x110f   :  { %v2596_v48 = vmul.f32 1.442695, %v2595_v47  ;;  %v4369_v47 = vld [vmem:[%s6880_s6 + $0x180] sm:$0xff] }
0x1111   :  { %6609 = vpow2.f32 %v2596_v48  ;;  %v4370_v48 = vld [vmem:[%s6880_s6 + $0x188] sm:$0xff] }
0x111b   :  { %v6610_v51 = vpop.eup %6609 }
0x111c   :  { %v2598_v53 = vmul.f32 %v6610_v51, %v7267_v37  ;;  %v6314_v37 = vpack.c.bf16 %v4334_v57, %v4333_v56  ;;  %v4372_v56 = vld [vmem:[%s6880_s6 + $0x198] sm:$0xff] }
0x111e   :  { %v2599_v54 = vadd.f32 %v2598_v53, %v2588_v52  ;;  %v6362_v53 = vpack.c.bf16 %v4370_v48, %v4369_v47 }
0x1120   :  { %5587 = vmatmul.mubr.msk.f32.vlgmr.msra.gmra.mrb[32].mxu1 %vm163_vm0, %v2599_v54  ;;  %5597 = vmatmul.mubr.msk.f32.vlgmr.msra.gmra.mrb[18].mxu0 %vm163_vm0, %v2599_v54 }
0x1121   :  { %5600 = vmatpush3.msra.mxu0 %v4329_v55  ;;  %5601 = vmatprep.mubr.msk.f32.mxu0 %vm6689_vm1, %v6688_v3  ;;  %v4371_v55 = vld [vmem:[%s6880_s6 + $0x190] sm:$0xff] }
0x1122   :  { %6313 = vmatprep.subr.bf16.mxu0 %v6690_v10  ;;  %5671 = vmatprep.mubr.msk.f32.mxu1 %vm6689_vm1, %v6688_v3  ;;  %v6365_v57 = vpack.c.bf16 %v4372_v56, %v4371_v55  ;;  %v4398_v55 = vld [vmem:[%s7795_s22 + $0x238] sm:$0xff] }
0x1123   :  { %6339 = vmatpush3.bf16.msra.mxu1 %v6338_v23  ;;  %v4368_v23 = vld [vmem:[%s6875_s13 + $0x3] ss:$0 sm:$0xff] }
0x1124   :  { %6340 = vmatprep.subr.bf16.mxu1 %v6690_v10 }
0x1127   :  { %6342 = vmatpush3.bf16.msra.mxu1 %v6341_v26 }
0x1128   :  { %6343 = vmatprep.subr.bf16.mxu1 %v6690_v10 }
0x112b   :  { %6345 = vmatpush3.bf16.msra.mxu1 %v6344_v30 }
0x112c   :  { %6346 = vmatprep.subr.bf16.mxu1 %v6690_v10 }
0x112f   :  { %6348 = vmatpush3.bf16.msra.mxu1 %v6347_v34  ;;  %v4387_v34 = vld [vmem:[%s7794_s18 + $0x20] sm:$0xff] }
0x1130   :  { %6349 = vmatprep.subr.bf16.mxu1 %v6690_v10 }
0x1133   :  { %6351 = vmatpush3.bf16.msra.mxu1 %v6350_v38 }
0x1134   :  { %6352 = vmatprep.subr.bf16.mxu1 %v6690_v10 }
0x1137   :  { %6354 = vmatpush3.bf16.msra.mxu1 %v6353_v42  ;;  %v4391_v42 = vld [vmem:[%s7795_s22 + $0x200] sm:$0xff] }
0x1138   :  { %6355 = vmatprep.subr.bf16.mxu1 %v6690_v10  ;;  %v6386_v47 = vpack.c.bf16 %v4392_v4, %v4391_v42  ;;  %v4430_v42 = vld [vmem:[%s6880_s6 + $0x218] sm:$0xff] }
0x113b   :  { %6357 = vmatpush3.bf16.msra.mxu1 %v6356_v44 }
0x113c   :  { %6358 = vmatprep.subr.bf16.mxu1 %v6690_v10 }
0x113f   :  { %6360 = vmatpush3.bf16.msra.mxu1 %v6359_v15  ;;  %v4414_v15 = vld [vmem:[%s7796_s23 + $0x228] sm:$0xff] }
0x1140   :  { %5709 = vmatprep.subr.mxu1 %v6688_v3 }
0x11f3   :  { %v7458_v60 = vpop.f32.mrb[32].mxu1  ;;  %v7460_v61 = vpop.f32.mrb[18].mxu0 }
0x11f4   :  { %v5588_v62 = vpop.f32.mrb[33].mxu1  ;;  %v5598_v63 = vpop.f32.mrb[19].mxu0  ;;  %5602 = vmatmul.mubr.msk.f32.vlgmr.msra.gmra.mrb[20].mxu0 %vm163_vm0, %v7458_v60 }
0x11f5   :  { %6315 = vmatpush3.bf16.msra.mxu0 %v6314_v37  ;;  %5636 = vmatprep.mubr.msk.f32.mxu0 %vm6689_vm1, %v6688_v3  ;;  %v4373_v37 = vld [vmem:[%s6880_s6 + $0x1a0] sm:$0xff]  ;;  %v4375_v62 = vld [vmem:[%s6880_s6 + $0x1b0] sm:$0xff]  ;;  %v4376_v63 = vld [vmem:[%s6880_s6 + $0x1b8] sm:$0xff] }
0x11f6   :  { %6316 = vmatprep.subr.bf16.mxu0 %v6690_v10  ;;  %v6368_v59 = vpack.c.bf16 %v4374_v58, %v4373_v37  ;;  %v4400_v37 = vld [vmem:[%s7795_s22 + $0x248] sm:$0xff] }
0x11f9   :  { %6318 = vmatpush3.bf16.msra.mxu0 %v6317_v0  ;;  %v6371_v0 = vpack.c.bf16 %v4376_v63, %v4375_v62  ;;  %v4402_v62 = vld [vmem:[%s7795_s22 + $0x258] sm:$0xff] }
0x11fa   :  { %6319 = vmatprep.subr.bf16.mxu0 %v6690_v10 }
0x11fd   :  { %6321 = vmatpush3.bf16.msra.mxu0 %v6320_v5  ;;  %v6374_v5 = vpack.c.bf16 %v4378_v2, %v4377_v1  ;;  %v4404_v1 = vld [vmem:[%s7795_s22 + $0x268] sm:$0xff] }
0x11fe   :  { %6322 = vmatprep.subr.bf16.mxu0 %v6690_v10 }
0x1201   :  { %6324 = vmatpush3.bf16.msra.mxu0 %v6323_v31  ;;  %v6377_v31 = vpack.c.bf16 %v4380_v7, %v4379_v6  ;;  %v4406_v6 = vld [vmem:[%s7795_s22 + $0x278] sm:$0xff] }
0x1202   :  { %6325 = vmatprep.subr.bf16.mxu0 %v6690_v10 }
0x1205   :  { %6327 = vmatpush3.bf16.msra.mxu0 %v6326_v11  ;;  %v6380_v11 = vpack.c.bf16 %v4382_v9, %v4381_v8  ;;  %v4410_v8 = vld [vmem:[%s7796_s23 + $0x208] sm:$0xff] }
0x1206   :  { %6328 = vmatprep.subr.bf16.mxu0 %v6690_v10 }
0x1209   :  { %6330 = vmatpush3.bf16.msra.mxu0 %v6329_v14  ;;  %v4383_v14 = vld [vmem:[%s6880_s6 + $0x1f0] sm:$0xff] }
0x120a   :  { %6331 = vmatprep.subr.bf16.mxu0 %v6690_v10 }
0x120d   :  { %6333 = vmatpush3.bf16.msra.mxu0 %v6332_v17  ;;  %v6383_v17 = vpack.c.bf16 %v4384_v16, %v4383_v14  ;;  %v4413_v14 = vld [vmem:[%s7796_s23 + $0x220] sm:$0xff] }
0x120e   :  { %6334 = vmatprep.subr.bf16.mxu0 %v6690_v10  ;;  %v6416_v16 = vpack.c.bf16 %v4414_v15, %v4413_v14 }
0x1211   :  { %6336 = vmatpush3.bf16.msra.mxu0 %v6335_v20 }
0x1212   :  { %6361 = vmatprep.subr.bf16.mxu0 %v6690_v10 }
0x12c7   :  { %v2970_v50 = vpop.f32.mrb[20].mxu0 }
0x12c8   :  { %v2971_v51 = vadd.f32 %v4331_v45, %v2970_v50  ;;  %v5603_v52 = vpop.f32.mrb[21].mxu0  ;;  %v4393_v50 = vld [vmem:[%s7795_s22 + $0x210] sm:$0xff] }
0x12c9   :  { %v4396_v52 = vld [vmem:[%s7795_s22 + $0x228] sm:$0xff] }
0x12ca   :  { %v2974_v54 = vmax.f32 %v2971_v51, 0.0  ;;  %v4394_v51 = vld [vmem:[%s7795_s22 + $0x218] sm:$0xff] }
0x12cc   :  { %5637 = vmatmul.mubr.f32.vlgmr.msra.gmra.mrb[22].mxu0 %v2974_v54  ;;  %v4397_v54 = vld [vmem:[%s7795_s22 + $0x230] sm:$0xff] }
0x12cd   :  { %6363 = vmatpush3.bf16.msra.mxu0 %v6362_v53  ;;  %5706 = vmatprep.mubr.msk.f32.mxu0 %vm6689_vm1, %v6688_v3  ;;  %v6395_v56 = vpack.c.bf16 %v4398_v55, %v4397_v54  ;;  %v4438_v54 = vld [vmem:[%s6880_s6 + $0x258] sm:$0xff] }
0x12ce   :  { %6364 = vmatprep.subr.bf16.mxu0 %v6690_v10 }
0x12d1   :  { %6366 = vmatpush3.bf16.msra.mxu0 %v6365_v57  ;;  %v4399_v57 = vld [vmem:[%s7795_s22 + $0x240] sm:$0xff] }
0x12d2   :  { %6367 = vmatprep.subr.bf16.mxu0 %v6690_v10  ;;  %v6398_v58 = vpack.c.bf16 %v4400_v37, %v4399_v57  ;;  %v4440_v57 = vld [vmem:[%s6880_s6 + $0x268] sm:$0xff] }
0x12d5   :  { %6369 = vmatpush3.bf16.msra.mxu0 %v6368_v59  ;;  %v4401_v59 = vld [vmem:[%s7795_s22 + $0x250] sm:$0xff] }
0x12d6   :  { %6370 = vmatprep.subr.bf16.mxu0 %v6690_v10  ;;  %v6401_v63 = vpack.c.bf16 %v4402_v62, %v4401_v59  ;;  %v4424_v59 = vld [vmem:[%s7796_s23 + $0x278] sm:$0xff]  ;;  %v4441_v62 = vld [vmem:[%s6880_s6 + $0x270] sm:$0xff] }
0x12d9   :  { %6372 = vmatpush3.bf16.msra.mxu0 %v6371_v0  ;;  %v4403_v0 = vld [vmem:[%s7795_s22 + $0x260] sm:$0xff] }
0x12da   :  { %6373 = vmatprep.subr.bf16.mxu0 %v6690_v10  ;;  %v6404_v2 = vpack.c.bf16 %v4404_v1, %v4403_v0  ;;  %v4442_v0 = vld [vmem:[%s6880_s6 + $0x278] sm:$0xff] }
0x12db   :  { %v6455_v1 = vpack.c.bf16 %v4442_v0, %v4441_v62  ;;  %v4472_v0 = vld [vmem:[%s7796_s23 + $0x2a8] sm:$0xff] }
0x12dd   :  { %6375 = vmatpush3.bf16.msra.mxu0 %v6374_v5  ;;  %v4405_v5 = vld [vmem:[%s7795_s22 + $0x270] sm:$0xff] }
0x12de   :  { %6376 = vmatprep.subr.bf16.mxu0 %v6690_v10  ;;  %v6407_v7 = vpack.c.bf16 %v4406_v6, %v4405_v5 }
0x12e1   :  { %6378 = vmatpush3.bf16.msra.mxu0 %v6377_v31  ;;  %v4409_v31 = vld [vmem:[%s7796_s23 + $0x200] sm:$0xff] }
0x12e2   :  { %6379 = vmatprep.subr.bf16.mxu0 %v6690_v10  ;;  %v6410_v9 = vpack.c.bf16 %v4410_v8, %v4409_v31  ;;  %v4426_v8 = vld [vmem:[%s6875_s13 + $0x4] ss:$0 sm:$0xff] }
0x12e5   :  { %6381 = vmatpush3.bf16.msra.mxu0 %v6380_v11  ;;  %v4411_v11 = vld [vmem:[%s7796_s23 + $0x210] sm:$0xff] }
0x12e6   :  { %6382 = vmatprep.subr.bf16.mxu0 %v6690_v10  ;;  %v6413_v13 = vpack.c.bf16 %v4412_v12, %v4411_v11 }
0x12e9   :  { %6384 = vmatpush3.bf16.msra.mxu0 %v6383_v17  ;;  %v4415_v17 = vld [vmem:[%s7796_s23 + $0x230] sm:$0xff] }
0x12ea   :  { %6409 = vmatprep.subr.bf16.mxu0 %v6690_v10 }
0x139f   :  { %v3066_v19 = vpop.f32.mrb[22].mxu0 }
0x13a0   :  { %v3067_v20 = vadd.f32 %v4350_v18, %v3066_v19  ;;  %v5638_v21 = vpop.f32.mrb[23].mxu0  ;;  %v4416_v18 = vld [vmem:[%s7796_s23 + $0x238] sm:$0xff] }
0x13a1   :  { %v6419_v19 = vpack.c.bf16 %v4416_v18, %v4415_v17  ;;  %v4418_v21 = vld [vmem:[%s7796_s23 + $0x248] sm:$0xff] }
0x13a2   :  { %v3070_v22 = vmax.f32 %v3067_v20, 0.0  ;;  %v4417_v20 = vld [vmem:[%s7796_s23 + $0x240] sm:$0xff]  ;;  %v4445_v18 = vld [vmem:[%s7794_s18 + $0x28] sm:$0xff] }
0x13a4   :  { %5672 = vmatmul.mubr.f32.vlgmr.msra.gmra.mrb[34].mxu1 %v3070_v22  ;;  %5707 = vmatmul.mubr.f32.vlgmr.msra.gmra.mrb[24].mxu0 %v3070_v22  ;;  %v6422_v22 = vpack.c.bf16 %v4418_v21, %v4417_v20  ;;  %v7640_v20 = vld [vmem:[%s7799_s1] ss:$0 sm:$0xff] }
0x13a5   :  { %5711 = vmatprep.mubr.msk.f32.mxu1 %vm6689_vm1, %v6688_v3  ;;  %5781 = vmatprep.mubr.msk.f32.mxu0 %vm6689_vm1, %v6688_v3 }
0x13a6   :  { %5710 = vmatpush3.msra.mxu1 %v4387_v34  ;;  %6411 = vmatpush3.bf16.msra.mxu0 %v6410_v9 }
0x13a7   :  { %6385 = vmatprep.subr.bf16.mxu1 %v6690_v10  ;;  %6412 = vmatprep.subr.bf16.mxu0 %v6690_v10 }
0x13aa   :  { %6414 = vmatpush3.bf16.msra.mxu0 %v6413_v13 }
0x13ab   :  { %6415 = vmatprep.subr.bf16.mxu0 %v6690_v10 }
0x13ae   :  { %6417 = vmatpush3.bf16.msra.mxu0 %v6416_v16 }
0x13af   :  { %6418 = vmatprep.subr.bf16.mxu0 %v6690_v10 }
0x13b2   :  { %6420 = vmatpush3.bf16.msra.mxu0 %v6419_v19 }
0x13b3   :  { %6421 = vmatprep.subr.bf16.mxu0 %v6690_v10 }
0x13b6   :  { %6423 = vmatpush3.bf16.msra.mxu0 %v6422_v22 }
0x13b7   :  { %6424 = vmatprep.subr.bf16.mxu0 %v6690_v10 }
0x1477   :  { %v3162_v24 = vpop.f32.mrb[34].mxu1  ;;  %v3259_v25 = vpop.f32.mrb[24].mxu0 }
0x1478   :  { %v3163_v26 = vadd.f32 %v4368_v23, %v3162_v24  ;;  %v5673_v28 = vpop.f32.mrb[35].mxu1  ;;  %v5708_v29 = vpop.f32.mrb[25].mxu0  ;;  %v3260_v44 = vadd.f32 %v4386_v40, %v3259_v25  ;;  %v4419_v23 = vld [vmem:[%s7796_s23 + $0x250] sm:$0xff]  ;;  %v4420_v24 = vld [vmem:[%s7796_s23 + $0x258] sm:$0xff] }
0x1479   :  { %v6425_v25 = vpack.c.bf16 %v4420_v24, %v4419_v23  ;;  %v4422_v28 = vld [vmem:[%s7796_s23 + $0x268] sm:$0xff]  ;;  %v4429_v40 = vld [vmem:[%s6880_s6 + $0x210] sm:$0xff]  ;;  %v4444_v24 = vld [vmem:[%s6885_s4 + $0x4] ss:$0 sm:$0xff] }
0x147a   :  { %6611 = vtanh.f32 %v3163_v26  ;;  %v4421_v26 = vld [vmem:[%s7796_s23 + $0x260] sm:$0xff]  ;;  %v6437_v4 = vpack.c.bf16 %v4430_v42, %v4429_v40  ;;  %v4455_v40 = vld [vmem:[%s7795_s22 + $0x2b0] sm:$0xff]  ;;  %v4456_v42 = vld [vmem:[%s7795_s22 + $0x2b8] sm:$0xff] }
0x147b   :  { %6426 = vmatpush3.bf16.msra.mxu0 %v6425_v25  ;;  %v6428_v29 = vpack.c.bf16 %v4422_v28, %v4421_v26  ;;  %v4449_v25 = vld [vmem:[%s7795_s22 + $0x280] sm:$0xff]  ;;  %v4450_v26 = vld [vmem:[%s7795_s22 + $0x288] sm:$0xff] }
0x147c   :  { %6427 = vmatprep.subr.bf16.mxu0 %v6690_v10 }
0x147f   :  { %6429 = vmatpush3.bf16.msra.mxu0 %v6428_v29 }
0x1480   :  { %6430 = vmatprep.subr.bf16.mxu0 %v6690_v10 }
0x1484   :  { %v6612_v30 = vpop.eup %6611 }
0x1485   :  { %v3167_v32 = vmul.f32 0.1, %v6612_v30  ;;  %v4389_v30 = vld [vmem:[%s7797_s26 + $0x4] ss:$0 sm:$0xff] }
0x1487   :  { %v3263_v33 = vsel %vm163_vm0, %v3167_v32, 0.0 }
0x1488   :  { %3264 = vadd.xlane.f32.xlu1 %v3263_v33  ;;  %v4428_v33 = vld [vmem:[%s6880_s6 + $0x208] sm:$0xff] }
0x1515   :  { %v3265_v35 = vpop.xlane.xlu1 %3264 }
0x1516   :  { %v3266_v36 = vmul.f32 %v7262_v27, %v3265_v35  ;;  %v6389_v27 = vpack.c.bf16 %v4394_v51, %v4393_v50  ;;  %v4434_v50 = vld [vmem:[%s6880_s6 + $0x238] sm:$0xff] }
0x1518   :  { %v3267_v38 = vsub.f32 %v3167_v32, %v3266_v36  ;;  %v4427_v32 = vld [vmem:[%s6880_s6 + $0x200] sm:$0xff] }
0x151a   :  { %v3268_v39 = vmul.f32 1.442695, %v3267_v38  ;;  %v6434_v38 = vpack.c.bf16 %v4428_v33, %v4427_v32  ;;  %v6458_v32 = vpack.c.bf16 %v4450_v26, %v4449_v25  ;;  %v4487_v25 = vld [vmem:[%s6880_s6 + $0x290] sm:$0xff]  ;;  %v4488_v26 = vld [vmem:[%s6880_s6 + $0x298] sm:$0xff] }
0x151c   :  { %6613 = vpow2.f32 %v3268_v39 }
0x1526   :  { %v6614_v43 = vpop.eup %6613 }
0x1527   :  { %v3270_v45 = vmul.f32 %v6614_v43, %v7460_v61  ;;  %v4395_v61 = vld [vmem:[%s7795_s22 + $0x220] sm:$0xff] }
0x1528   :  { %v6392_v53 = vpack.c.bf16 %v4396_v52, %v4395_v61  ;;  %v4431_v43 = vld [vmem:[%s6880_s6 + $0x220] sm:$0xff]  ;;  %v4436_v61 = vld [vmem:[%s6880_s6 + $0x248] sm:$0xff] }
0x1529   :  { %v7551_v48 = vadd.f32 %v3270_v45, %v3260_v44  ;;  %v4432_v44 = vld [vmem:[%s6880_s6 + $0x228] sm:$0xff] }
0x152a   :  { %v6440_v45 = vpack.c.bf16 %v4432_v44, %v4431_v43  ;;  %v4457_v43 = vld [vmem:[%s7795_s22 + $0x2c0] sm:$0xff]  ;;  %v4458_v44 = vld [vmem:[%s7795_s22 + $0x2c8] sm:$0xff] }
0x152b   :  { %5712 = vmatmul.mubr.msk.f32.vlgmr.msra.gmra.mrb[36].mxu1 %vm163_vm0, %v7551_v48 }
0x152c   :  { %6387 = vmatpush3.bf16.msra.mxu1 %v6386_v47  ;;  %5746 = vmatprep.mubr.msk.f32.mxu1 %vm6689_vm1, %v6688_v3  ;;  %v4433_v47 = vld [vmem:[%s6880_s6 + $0x230] sm:$0xff] }
0x152d   :  { %6388 = vmatprep.subr.bf16.mxu1 %v6690_v10  ;;  %v6443_v51 = vpack.c.bf16 %v4434_v50, %v4433_v47  ;;  %v4459_v47 = vld [vmem:[%s7795_s22 + $0x2d0] sm:$0xff]  ;;  %v4460_v50 = vld [vmem:[%s7795_s22 + $0x2d8] sm:$0xff] }
0x1530   :  { %6390 = vmatpush3.bf16.msra.mxu1 %v6389_v27  ;;  %v4435_v27 = vld [vmem:[%s6880_s6 + $0x240] sm:$0xff] }
0x1531   :  { %6391 = vmatprep.subr.bf16.mxu1 %v6690_v10  ;;  %v6446_v52 = vpack.c.bf16 %v4436_v61, %v4435_v27  ;;  %v4461_v27 = vld [vmem:[%s7795_s22 + $0x2e0] sm:$0xff]  ;;  %v4462_v61 = vld [vmem:[%s7795_s22 + $0x2e8] sm:$0xff] }
0x1534   :  { %6393 = vmatpush3.bf16.msra.mxu1 %v6392_v53  ;;  %v4437_v53 = vld [vmem:[%s6880_s6 + $0x250] sm:$0xff] }
0x1535   :  { %6394 = vmatprep.subr.bf16.mxu1 %v6690_v10  ;;  %v6449_v55 = vpack.c.bf16 %v4438_v54, %v4437_v53  ;;  %v4463_v53 = vld [vmem:[%s7795_s22 + $0x2f0] sm:$0xff]  ;;  %v4464_v54 = vld [vmem:[%s7795_s22 + $0x2f8] sm:$0xff] }
0x1538   :  { %6396 = vmatpush3.bf16.msra.mxu1 %v6395_v56  ;;  %v4439_v56 = vld [vmem:[%s6880_s6 + $0x260] sm:$0xff] }
0x1539   :  { %6397 = vmatprep.subr.bf16.mxu1 %v6690_v10  ;;  %v6452_v37 = vpack.c.bf16 %v4440_v57, %v4439_v56  ;;  %v4467_v56 = vld [vmem:[%s7796_s23 + $0x280] sm:$0xff]  ;;  %v4468_v57 = vld [vmem:[%s7796_s23 + $0x288] sm:$0xff] }
0x153c   :  { %6399 = vmatpush3.bf16.msra.mxu1 %v6398_v58  ;;  %v4423_v58 = vld [vmem:[%s7796_s23 + $0x270] sm:$0xff] }
0x153d   :  { %6400 = vmatprep.subr.bf16.mxu1 %v6690_v10 }
0x1540   :  { %6402 = vmatpush3.bf16.msra.mxu1 %v6401_v63  ;;  %v6431_v63 = vpack.c.bf16 %v4424_v59, %v4423_v58  ;;  %v4469_v58 = vld [vmem:[%s7796_s23 + $0x290] sm:$0xff]  ;;  %v4470_v59 = vld [vmem:[%s7796_s23 + $0x298] sm:$0xff] }
0x1541   :  { %6403 = vmatprep.subr.bf16.mxu1 %v6690_v10  ;;  %v6485_v62 = vpack.c.bf16 %v4470_v59, %v4469_v58 }
0x1542   :  { %6432 = vmatpush3.bf16.msra.mxu0 %v6431_v63  ;;  %v4471_v63 = vld [vmem:[%s7796_s23 + $0x2a0] sm:$0xff] }
0x1543   :  { %5819 = vmatprep.subr.mxu0 %v6688_v3 }
0x1544   :  { %6405 = vmatpush3.bf16.msra.mxu1 %v6404_v2  ;;  %v4408_v2 = vld [vmem:[%s7798_s28 + $0x4] ss:$0 sm:$0xff] }
0x1545   :  { %6406 = vmatprep.subr.bf16.mxu1 %v6690_v10 }
0x1548   :  { %6408 = vmatpush3.bf16.msra.mxu1 %v6407_v7 }
0x1549   :  { %6433 = vmatprep.subr.bf16.mxu1 %v6690_v10 }
0x15fe   :  { %v3351_v34 = vpop.f32.mrb[36].mxu1 }
0x15ff   :  { %v3352_v35 = vadd.f32 %v4389_v30, %v3351_v34  ;;  %v5713_v36 = vpop.f32.mrb[37].mxu1  ;;  %v4451_v34 = vld [vmem:[%s7795_s22 + $0x290] sm:$0xff] }
0x1601   :  { %v3355_v39 = vmax.f32 %v3352_v35, 0.0  ;;  %v4452_v35 = vld [vmem:[%s7795_s22 + $0x298] sm:$0xff] }
0x1602   :  { %v6461_v36 = vpack.c.bf16 %v4452_v35, %v4451_v34  ;;  %v4491_v34 = vld [vmem:[%s6880_s6 + $0x2b0] sm:$0xff]  ;;  %v4492_v35 = vld [vmem:[%s6880_s6 + $0x2b8] sm:$0xff] }
0x1603   :  { %5747 = vmatmul.mubr.f32.vlgmr.msra.gmra.mrb[38].mxu1 %v3355_v39 }
0x1604   :  { %6435 = vmatpush3.bf16.msra.mxu1 %v6434_v38  ;;  %5816 = vmatprep.mubr.msk.f32.mxu1 %vm6689_vm1, %v6688_v3  ;;  %v4454_v38 = vld [vmem:[%s7795_s22 + $0x2a8] sm:$0xff] }
0x1605   :  { %6436 = vmatprep.subr.bf16.mxu1 %v6690_v10 }
0x1608   :  { %6438 = vmatpush3.bf16.msra.mxu1 %v6437_v4  ;;  %v6467_v4 = vpack.c.bf16 %v4456_v42, %v4455_v40  ;;  %v4496_v40 = vld [vmem:[%s6880_s6 + $0x2d8] sm:$0xff] }
0x1609   :  { %6439 = vmatprep.subr.bf16.mxu1 %v6690_v10 }
0x160c   :  { %6441 = vmatpush3.bf16.msra.mxu1 %v6440_v45  ;;  %v6470_v45 = vpack.c.bf16 %v4458_v44, %v4457_v43  ;;  %v4498_v43 = vld [vmem:[%s6880_s6 + $0x2e8] sm:$0xff] }
0x160d   :  { %6442 = vmatprep.subr.bf16.mxu1 %v6690_v10 }
0x1610   :  { %6444 = vmatpush3.bf16.msra.mxu1 %v6443_v51  ;;  %v6473_v51 = vpack.c.bf16 %v4460_v50, %v4459_v47  ;;  %v4482_v47 = vld [vmem:[%s7796_s23 + $0x2f8] sm:$0xff]  ;;  %v4499_v50 = vld [vmem:[%s6880_s6 + $0x2f0] sm:$0xff] }
0x1611   :  { %6445 = vmatprep.subr.bf16.mxu1 %v6690_v10 }
0x1614   :  { %6447 = vmatpush3.bf16.msra.mxu1 %v6446_v52  ;;  %v6476_v52 = vpack.c.bf16 %v4462_v61, %v4461_v27  ;;  %v4500_v27 = vld [vmem:[%s6880_s6 + $0x2f8] sm:$0xff] }
0x1615   :  { %6448 = vmatprep.subr.bf16.mxu1 %v6690_v10  ;;  %v6527_v61 = vpack.c.bf16 %v4500_v27, %v4499_v50 }
0x1618   :  { %6450 = vmatpush3.bf16.msra.mxu1 %v6449_v55  ;;  %v6479_v55 = vpack.c.bf16 %v4464_v54, %v4463_v53 }
0x1619   :  { %6451 = vmatprep.subr.bf16.mxu1 %v6690_v10 }
0x161c   :  { %6453 = vmatpush3.bf16.msra.mxu1 %v6452_v37  ;;  %v6482_v37 = vpack.c.bf16 %v4468_v57, %v4467_v56 }
0x161d   :  { %6454 = vmatprep.subr.bf16.mxu1 %v6690_v10 }
0x1620   :  { %6456 = vmatpush3.bf16.msra.mxu1 %v6455_v1  ;;  %v6488_v1 = vpack.c.bf16 %v4472_v0, %v4471_v63 }
0x1621   :  { %6481 = vmatprep.subr.bf16.mxu1 %v6690_v10 }
0x16d6   :  { %v3447_v5 = vpop.f32.mrb[38].mxu1 }
0x16d7   :  { %v3448_v6 = vadd.f32 %v4408_v2, %v3447_v5  ;;  %v5748_v7 = vpop.f32.mrb[39].mxu1  ;;  %v4473_v2 = vld [vmem:[%s7796_s23 + $0x2b0] sm:$0xff]  ;;  %v4474_v5 = vld [vmem:[%s7796_s23 + $0x2b8] sm:$0xff] }
0x16d8   :  { %v4475_v7 = vld [vmem:[%s7796_s23 + $0x2c0] sm:$0xff] }
0x16d9   :  { %v3451_v31 = vmax.f32 %v3448_v6, 0.0  ;;  %v6491_v6 = vpack.c.bf16 %v4474_v5, %v4473_v2 }
0x16db   :  { %5782 = vmatmul.mubr.f32.vlgmr.msra.gmra.mrb[26].mxu0 %v3451_v31  ;;  %5817 = vmatmul.mubr.f32.vlgmr.msra.gmra.mrb[40].mxu1 %v3451_v31  ;;  %v4476_v31 = vld [vmem:[%s7796_s23 + $0x2c8] sm:$0xff] }
0x16dc   :  { %5821 = vmatprep.mubr.msk.f32.mxu0 %vm6689_vm1, %v6688_v3  ;;  %5891 = vmatprep.mubr.msk.f32.mxu1 %vm6689_vm1, %v6688_v3 }
0x16dd   :  { %5820 = vmatpush3.msra.mxu0 %v4445_v18  ;;  %6483 = vmatpush3.bf16.msra.mxu1 %v6482_v37  ;;  %v4486_v18 = vld [vmem:[%s6880_s6 + $0x288] sm:$0xff] }
0x16de   :  { %6457 = vmatprep.subr.bf16.mxu0 %v6690_v10  ;;  %6484 = vmatprep.subr.bf16.mxu1 %v6690_v10 }
0x16e1   :  { %6486 = vmatpush3.bf16.msra.mxu1 %v6485_v62 }
0x16e2   :  { %6487 = vmatprep.subr.bf16.mxu1 %v6690_v10 }
0x16e5   :  { %6489 = vmatpush3.bf16.msra.mxu1 %v6488_v1 }
0x16e6   :  { %6490 = vmatprep.subr.bf16.mxu1 %v6690_v10 }
0x16e9   :  { %6492 = vmatpush3.bf16.msra.mxu1 %v6491_v6 }
0x16ea   :  { %6493 = vmatprep.subr.bf16.mxu1 %v6690_v10 }
0x17ae   :  { %v3543_v9 = vpop.f32.mrb[26].mxu0  ;;  %v3640_v11 = vpop.f32.mrb[40].mxu1 }
0x17af   :  { %v3544_v12 = vadd.f32 %v4426_v8, %v3543_v9  ;;  %v5783_v13 = vpop.f32.mrb[27].mxu0  ;;  %v5818_v14 = vpop.f32.mrb[41].mxu1  ;;  %v3641_v29 = vadd.f32 %v4444_v24, %v3640_v11  ;;  %v6494_v8 = vpack.c.bf16 %v4476_v31, %v4475_v7  ;;  %v4477_v9 = vld [vmem:[%s7796_s23 + $0x2d0] sm:$0xff]  ;;  %v4478_v11 = vld [vmem:[%s7796_s23 + $0x2d8] sm:$0xff] }
0x17b0   :  { %v4479_v13 = vld [vmem:[%s7796_s23 + $0x2e0] sm:$0xff]  ;;  %v4480_v14 = vld [vmem:[%s7796_s23 + $0x2e8] sm:$0xff] }
0x17b1   :  { %6615 = vtanh.f32 %v3544_v12  ;;  %6495 = vmatpush3.bf16.msra.mxu1 %v6494_v8  ;;  %v6497_v12 = vpack.c.bf16 %v4478_v11, %v4477_v9  ;;  %v4484_v11 = vld [vmem:[%s6875_s13 + $0x5] ss:$0 sm:$0xff]  ;;  %s6638_s13 = scalar_lea.hbm %s6890_s21, 16 }
0x17b2   :  { %6496 = vmatprep.subr.bf16.mxu1 %v6690_v10  ;;  %p6639_p0 = scmp.ne.s32.totalorder %s6890_s21, %s6638_s13  ;;  %p6642_p1 = scmp.lt.u32.totalorder %s6638_s13, %s6890_s21 }
0x17b4   :  { %p6644_p2 = pnand %p6642_p1, %p6639_p0 }
0x17b5   :  { %6498 = vmatpush3.bf16.msra.mxu1 %v6497_v12 }
0x17b6   :  { %6499 = vmatprep.subr.bf16.mxu1 %v6690_v10 }
0x17bb   :  { %v6616_v15 = vpop.eup %6615 }
0x17bc   :  { %v3548_v16 = vmul.f32 0.1, %v6616_v15  ;;  %v6500_v15 = vpack.c.bf16 %v4480_v14, %v4479_v13 }
0x17be   :  { %v3644_v17 = vsel %vm163_vm0, %v3548_v16, 0.0  ;;  %6501 = vmatpush3.bf16.msra.mxu1 %v6500_v15 }
0x17bf   :  { %3645 = vadd.xlane.f32.xlu0 %v3644_v17  ;;  %6502 = vmatprep.subr.bf16.mxu1 %v6690_v10  ;;  %v4485_v17 = vld [vmem:[%s6880_s6 + $0x280] sm:$0xff] }
0x184c   :  { %v3646_v19 = vpop.xlane.xlu0 %3645 }
0x184d   :  { %v3647_v21 = vmul.f32 %v7640_v20, %v3646_v19 }
0x184f   :  { %v3648_v22 = vsub.f32 %v3548_v16, %v3647_v21  ;;  %v4447_v16 = vld [vmem:[%s7797_s26 + $0x5] ss:$0 sm:$0xff] }
0x1851   :  { %v3649_v23 = vmul.f32 1.442695, %v3648_v22 }
0x1853   :  { %6617 = vpow2.f32 %v3649_v23  ;;  %v6506_v23 = vpack.c.bf16 %v4486_v18, %v4485_v17 }
0x185d   :  { %v6618_v28 = vpop.eup %6617 }
0x185e   :  { %v3651_v30 = vmul.f32 %v6618_v28, %v7458_v60  ;;  %v4453_v60 = vld [vmem:[%s7795_s22 + $0x2a0] sm:$0xff]  ;;  %v6509_v28 = vpack.c.bf16 %v4488_v26, %v4487_v25 }
0x185f   :  { %v6464_v39 = vpack.c.bf16 %v4454_v38, %v4453_v60  ;;  %v4493_v60 = vld [vmem:[%s6880_s6 + $0x2c0] sm:$0xff] }
0x1860   :  { %v7647_v33 = vadd.f32 %v3651_v30, %v3641_v29  ;;  %v4489_v29 = vld [vmem:[%s6880_s6 + $0x2a0] sm:$0xff]  ;;  %v4490_v30 = vld [vmem:[%s6880_s6 + $0x2a8] sm:$0xff] }
0x1862   :  { %5822 = vmatmul.mubr.msk.f32.vlgmr.msra.gmra.mrb[28].mxu0 %vm163_vm0, %v7647_v33  ;;  %v4052_v57 = vand.u32 2147483647, %v7647_v33  ;;  %v4051_v7 = vmax.f32 %v7647_v33, 0.0 }
0x1863   :  { %6459 = vmatpush3.bf16.msra.mxu0 %v6458_v32  ;;  %5856 = vmatprep.mubr.msk.f32.mxu0 %vm6689_vm1, %v6688_v3  ;;  %v6512_v32 = vpack.c.bf16 %v4490_v30, %v4489_v29 }
0x1864   :  { %6460 = vmatprep.subr.bf16.mxu0 %v6690_v10  ;;  %v4053_v37 = vsub.f32 0.0, %v4052_v57 }
0x1866   :  { %v4054_v58 = vmul.f32 1.442695, %v4053_v37  ;;  %v4096_v37 = vsel %vm734_vm5, %v4095_v49, 0.0 }
0x1867   :  { %6462 = vmatpush3.bf16.msra.mxu0 %v6461_v36  ;;  %v6515_v36 = vpack.c.bf16 %v4492_v35, %v4491_v34 }
0x1868   :  { %6463 = vmatprep.subr.bf16.mxu0 %v6690_v10  ;;  %6619 = vpow2.f32 %v4054_v58 }
0x186b   :  { %6465 = vmatpush3.bf16.msra.mxu0 %v6464_v39  ;;  %v4495_v39 = vld [vmem:[%s6880_s6 + $0x2d0] sm:$0xff] }
0x186c   :  { %6466 = vmatprep.subr.bf16.mxu0 %v6690_v10  ;;  %v6521_v42 = vpack.c.bf16 %v4496_v40, %v4495_v39 }
0x186f   :  { %6468 = vmatpush3.bf16.msra.mxu0 %v6467_v4  ;;  %v4497_v4 = vld [vmem:[%s6880_s6 + $0x2e0] sm:$0xff] }
0x1870   :  { %6469 = vmatprep.subr.bf16.mxu0 %v6690_v10  ;;  %v6524_v44 = vpack.c.bf16 %v4498_v43, %v4497_v4 }
0x1873   :  { %6471 = vmatpush3.bf16.msra.mxu0 %v6470_v45  ;;  %v4481_v45 = vld [vmem:[%s7796_s23 + $0x2f0] sm:$0xff] }
0x1874   :  { %6472 = vmatprep.subr.bf16.mxu0 %v6690_v10 }
0x1877   :  { %6474 = vmatpush3.bf16.msra.mxu0 %v6473_v51  ;;  %v6503_v51 = vpack.c.bf16 %v4482_v47, %v4481_v45 }
0x1878   :  { %6475 = vmatprep.subr.bf16.mxu0 %v6690_v10 }
0x1879   :  { %6504 = vmatpush3.bf16.msra.mxu1 %v6503_v51 }
0x187b   :  { %6477 = vmatpush3.bf16.msra.mxu0 %v6476_v52  ;;  %v4466_v52 = vld [vmem:[%s7798_s28 + $0x5] ss:$0 sm:$0xff] }
0x187c   :  { %6478 = vmatprep.subr.bf16.mxu0 %v6690_v10 }
0x187f   :  { %6480 = vmatpush3.bf16.msra.mxu0 %v6479_v55 }
0x1880   :  { %6505 = vmatprep.subr.bf16.mxu0 %v6690_v10 }
0x1935   :  { %v3732_v19 = vpop.f32.mrb[28].mxu0 }
0x1936   :  { %v3733_v21 = vadd.f32 %v4447_v16, %v3732_v19  ;;  %v5823_v22 = vpop.f32.mrb[29].mxu0  ;;  %v6636_v19 = vld [vmem:[%s6705_s9] sm:$0xff] }
0x1938   :  { %v3736_v24 = vmax.f32 %v3733_v21, 0.0 }
0x193a   :  { %5857 = vmatmul.mubr.f32.vlgmr.msra.gmra.mrb[30].mxu0 %v3736_v24 }
0x193b   :  { %6507 = vmatpush3.bf16.msra.mxu0 %v6506_v23  ;;  %5926 = vmatprep.mubr.msk.f32.mxu0 %vm6689_vm1, %v6688_v3  ;;  %v4494_v3 = vld [vmem:[%s6880_s6 + $0x2c8] sm:$0xff] }
0x193c   :  { %6508 = vmatprep.subr.bf16.mxu0 %v6690_v10  ;;  %v6518_v38 = vpack.c.bf16 %v4494_v3, %v4493_v60 }
0x193f   :  { %6510 = vmatpush3.bf16.msra.mxu0 %v6509_v28 }
0x1940   :  { %6511 = vmatprep.subr.bf16.mxu0 %v6690_v10 }
0x1943   :  { %6513 = vmatpush3.bf16.msra.mxu0 %v6512_v32  ;;  %v4502_v32 = vld [vmem:[%s6885_s4 + $0x5] ss:$0 sm:$0xff] }
0x1944   :  { %6514 = vmatprep.subr.bf16.mxu0 %v6690_v10 }
0x1947   :  { %6516 = vmatpush3.bf16.msra.mxu0 %v6515_v36 }
0x1948   :  { %6517 = vmatprep.subr.bf16.mxu0 %v6690_v10 }
0x194b   :  { %6519 = vmatpush3.bf16.msra.mxu0 %v6518_v38 }
0x194c   :  { %6520 = vmatprep.subr.bf16.mxu0 %v6690_v10 }
0x194f   :  { %6522 = vmatpush3.bf16.msra.mxu0 %v6521_v42 }
0x1950   :  { %6523 = vmatprep.subr.bf16.mxu0 %v6690_v10 }
0x1953   :  { %6525 = vmatpush3.bf16.msra.mxu0 %v6524_v44 }
0x1954   :  { %6526 = vmatprep.subr.bf16.mxu0 %v6690_v10  ;;  %v6620_v10 = vpop.eup %6619 }
0x1955   :  { %v4056_v59 = vadd.f32 1.0, %v6620_v10  ;;  %v4059_v62 = vmul.f32 -0.5, %v6620_v10  ;;  %v4062_v1 = vand.u32 2147483647, %v6620_v10 }
0x1957   :  { %6528 = vmatpush3.bf16.msra.mxu0 %v6527_v61  ;;  %6621 = vlog2.f32 %v4056_v59  ;;  %v4060_v0 = vadd.f32 1.0, %v4059_v62  ;;  %vm4063_vm6 = vcmp.lt.f32.partialorder %v4062_v1, 0.0004427343 }
0x1959   :  { %v4061_v5 = vmul.f32 %v6620_v10, %v4060_v0 }
0x1961   :  { %v6622_v63 = vpop.eup %6621 }
0x1962   :  { %v4058_v2 = vmul.f32 0.6931472, %v6622_v63 }
0x1964   :  { %v4064_v6 = vsel %vm4063_vm6, %v4061_v5, %v4058_v2 }
0x1965   :  { %v4065_v31 = vadd.f32 %v4064_v6, %v4051_v7 }
0x1967   :  { %v4066_v8 = vmax.f32 %v4065_v31, 1e-07 }
0x1969   :  { %v4067_v9 = vmin.f32 %v4066_v8, 10000000.0 }
0x196b   :  { %6623 = vlog2.f32 %v4067_v9 }
0x1975   :  { %v6624_v17 = vpop.eup %6623 }
0x1976   :  { %v4076_v18 = vmul.f32 0.6931472, %v6624_v17 }
0x1978   :  { %v4077_v21 = vmul.f32 %v6636_v19, %v4076_v18 }
0x197a   :  { %v4078_v24 = vsub.f32 %v4067_v9, %v4077_v21 }
0x197c   :  { %v4079_v25 = vsel %vm163_vm0, %v4078_v24, 0.0 }
0x1a0d   :  { %v3828_v53 = vpop.f32.mrb[30].mxu0 }
0x1a0e   :  { %v3829_v54 = vadd.f32 %v4466_v52, %v3828_v53  ;;  %v5858_v55 = vpop.f32.mrb[31].mxu0 }
0x1a10   :  { %v3832_v56 = vmax.f32 %v3829_v54, 0.0  ;;  %v6637_v54 = vld [vmem:[%s6700_s5] sm:$0xff] }
0x1a12   :  { %5892 = vmatmul.mubr.f32.vlgmr.msra.gmra.mrb[42].mxu1 %v3832_v56  ;;  %5927 = vmatmul.mubr.f32.vlgmr.msra.gmra.mrb[32].mxu0 %v3832_v56 }
0x1ae5   :  { %v3924_v12 = vpop.f32.mrb[42].mxu1  ;;  %v4021_v13 = vpop.f32.mrb[32].mxu0 }
0x1ae6   :  { %v3925_v14 = vadd.f32 %v4484_v11, %v3924_v12  ;;  %v5893_v15 = vpop.f32.mrb[43].mxu1  ;;  %v5928_v16 = vpop.f32.mrb[33].mxu0  ;;  %v4022_v35 = vadd.f32 %v4502_v32, %v4021_v13 }
0x1ae8   :  { %6625 = vtanh.f32 %v3925_v14 }
0x1af2   :  { %v6626_v22 = vpop.eup %6625 }
0x1af3   :  { %v3929_v23 = vmul.f32 0.1, %v6626_v22 }
0x1af5   :  { %v4025_v33 = vsel %vm163_vm0, %v3929_v23, 0.0 }
0x1af6   :  { %4026 = vadd.xlane.f32.xlu1 %v4025_v33 }
0x1afa   :  { %4080 = vadd.xlane.f32.xlu1 %v4079_v25 }
0x1b83   :  { %v4027_v26 = vpop.xlane.xlu1 %4026 }
0x1b84   :  { %v4028_v28 = vmul.f32 %v7640_v20, %v4027_v26 }
0x1b86   :  { %v4029_v29 = vsub.f32 %v3929_v23, %v4028_v28 }
0x1b87   :  { %v4081_v10 = vpop.xlane.xlu1 %4080 }
0x1b88   :  { %v4030_v30 = vmul.f32 1.442695, %v4029_v29 }
0x1b8a   :  { %6627 = vpow2.f32 %v4030_v30 }
0x1b94   :  { %v6628_v34 = vpop.eup %6627 }
0x1b95   :  { %v4032_v36 = vmul.f32 %v6628_v34, %v7551_v48 }
0x1b97   :  { %v4033_v60 = vadd.f32 %v4032_v36, %v4022_v35 }
0x1b99   :  { %v4035_v3 = vand.u32 2147483647, %v4033_v60  ;;  %v4034_v50 = vmax.f32 %v4033_v60, 0.0 }
0x1b9b   :  { %v4036_v38 = vsub.f32 0.0, %v4035_v3 }
0x1b9d   :  { %v4037_v39 = vmul.f32 1.442695, %v4036_v38 }
0x1b9f   :  { %6629 = vpow2.f32 %v4037_v39 }
0x1ba9   :  { %v6630_v40 = vpop.eup %6629 }
0x1baa   :  { %v4039_v42 = vadd.f32 1.0, %v6630_v40  ;;  %v4042_v4 = vmul.f32 -0.5, %v6630_v40  ;;  %v4045_v20 = vand.u32 2147483647, %v6630_v40 }
0x1bac   :  { %6631 = vlog2.f32 %v4039_v42  ;;  %v4043_v43 = vadd.f32 1.0, %v4042_v4  ;;  %vm4046_vm7 = vcmp.lt.f32.partialorder %v4045_v20, 0.0004427343 }
0x1bae   :  { %v4044_v47 = vmul.f32 %v6630_v40, %v4043_v43 }
0x1bb6   :  { %v6632_v44 = vpop.eup %6631 }
0x1bb7   :  { %v4041_v45 = vmul.f32 0.6931472, %v6632_v44 }
0x1bb9   :  { %v4047_v51 = vsel %vm4046_vm7, %v4044_v47, %v4041_v45 }
0x1bba   :  { %v4048_v27 = vadd.f32 %v4047_v51, %v4034_v50 }
0x1bbc   :  { %v4049_v48 = vmax.f32 %v4048_v27, 1e-07 }
0x1bbe   :  { %v4050_v61 = vmin.f32 %v4049_v48, 10000000.0 }
0x1bc0   :  { %6633 = vlog2.f32 %v4050_v61 }
0x1bca   :  { %v6634_v52 = vpop.eup %6633 }
0x1bcb   :  { %v4069_v53 = vmul.f32 0.6931472, %v6634_v52 }
0x1bcd   :  { %v4070_v55 = vmul.f32 %v6637_v54, %v4069_v53 }
0x1bcf   :  { %v4071_v56 = vsub.f32 %v4050_v61, %v4070_v55 }
0x1bd1   :  { %v4072_v57 = vsel %vm163_vm0, %v4071_v56, 0.0 }
0x1bd2   :  { %4073 = vadd.xlane.f32.xlu0 %v4072_v57 }
0x1bd6   :  { %4097 = vadd.xlane.f32.xlu0 %v4096_v37 }
0x1c5f   :  { %v4074_v58 = vpop.xlane.xlu0 %4073 }
0x1c60   :  { %v4082_v62 = vadd.f32 %v4081_v10, %v4074_v58 }
0x1c63   :  { %v4098_v59 = vpop.xlane.xlu0 %4097 }
0x1c64   :  { %v4099_v63 = vmul.f32 0.5, %v4098_v59 }
0x1c66   :  { %v4100_v0 = vsub.f32 %v4082_v62, %v4099_v63 }
0x1c68   :  { %v4102_v1 = vsel %vm4101_vm8, %v4100_v0, 0.0 }
0x1c69   :  { %4103 = vadd.xlane.f32.xlu1 %v4102_v1 }
0x1cf6   :  { %v4104_v2 = vpop.xlane.xlu1 %4103 }
0x1cf7   :  { %v4105_v5 = vrot.slane %v4104_v2, 4 }
0x1cf9   :  { %v4106_v6 = vadd.f32 %v4105_v5, %v4104_v2 }
0x1cfb   :  { %v4107_v7 = vrot.slane %v4106_v6, 2 }
0x1cfd   :  { %v4108_v41 = vadd.f32 %v4107_v7, %v4106_v6 }
0x1cff   :  { %v4109_v46 = vrot.slane %v4108_v41, 1 }
0x1d01   :  { %v4110_v49 = vadd.f32 %v4109_v46, %v4108_v41 }
0x1d03   :  { %6537 = vpush %v4110_v49 }
0x1d34   :  { %s6538_s5 = spop %6537 }
0x1d35   :  { %s4126_s9 = smul.f32 0.125, %s6538_s5 }
0x1d37   :  { %4128 = sst [smem:[#allocation3]] %s4126_s9 }
0x1d38   :  { %6647 = shalt.err (!%p6644_p2)
}
0x1d39   :  { %s6691_s6 = smov [#allocation3]  }
0x1d3a   :  { %4136 = dma.smem_to_hbm %s6691_s6, 16, %s6890_s21, [#allocation4]  }
0x1d3b   :  { %6648 = dma.done.wait [#allocation4], 16  }
0x1d3c   :  { %6649 = vsyncadd [#allocation4], 4294967280 }
0x1d3d   :  { %4140 = sfence }
0x1d3e   :  { %4141 = vsyncpa [#allocation4], 1 }

</bundles_post_ra>
